<compile_context>
chip_gen: v5e
topology: v5e:2x2
jax: 0.10.0
libtpu: 0.0.40
codegen_flags: <defaults>
</compile_context>

<pallas_src>
import functools

import jax
import jax.numpy as jnp
import numpy as np
from jax.experimental import pallas as pl
from jax.experimental.pallas import tpu as pltpu


def _swish(x):
  return x * jax.nn.sigmoid(x)


# --------------------------------------------------------------------------
# Kernel 1: fused Q/K/V/U projection (+ swish on v, u; 1/sqrt(d) folded into q)
#   Outputs are head-major (B, H, N, head_dim).
#   The projection is computed per (quadrant, head-group) chunk so the live
#   f32 intermediate stays (tm, <=512) instead of (tm, 4*hidden).
# --------------------------------------------------------------------------
def _qkvu_proj_kernel(x_ref, w_ref, b_ref, q_ref, k_ref, v_ref, u_ref, *,
                      hidden, num_heads, head_dim, heads_per_chunk, scale):
  xt = x_ref[0]                                    # (TM, E) compute dtype
  outs = (q_ref, k_ref, v_ref, u_ref)
  posts = (lambda t: t * scale,                    # q: fold softmax scale
           lambda t: t,                            # k
           _swish,                                 # v (f32 math)
           _swish)                                 # u (f32 math)
  for qd in range(4):
    for h0 in range(0, num_heads, heads_per_chunk):
      nh = min(heads_per_chunk, num_heads - h0)
      lo = qd * hidden + h0 * head_dim
      w = w_ref[:, lo:lo + nh * head_dim]          # (E, nh*d) static slice
      b = b_ref[:, lo:lo + nh * head_dim]          # (1, nh*d) f32
      p = jnp.dot(xt, w, preferred_element_type=jnp.float32) + b
      p = posts[qd](p).astype(outs[qd].dtype)      # (TM, nh*d)
      for hh in range(nh):                         # head-major, lane-dense
        outs[qd][0, h0 + hh] = p[:, hh * head_dim:(hh + 1) * head_dim]


# --------------------------------------------------------------------------
# Kernel 2: flash-style attention with VMEM-resident K/V per (b, h) and the
#   u-gate fused into the epilogue.  grid = (B, H, N//TQ), all "parallel".
# --------------------------------------------------------------------------
def _flash_attn_kernel(q_ref, k_ref, v_ref, u_ref, o_ref, *, block_k, causal):
  tq = q_ref.shape[2]
  d = q_ref.shape[3]
  n_kv = k_ref.shape[2]
  num_chunks = n_kv // block_k

  q = q_ref[0, 0]                                  # (TQ, d), already scaled
  row0 = pl.program_id(2) * tq

  def body(j, carry):
    m_prev, l_prev, acc_prev = carry
    start = pl.multiple_of(j * block_k, block_k)
    k = k_ref[0, 0, pl.ds(start, block_k), :]      # (TK, d) from resident K
    v = v_ref[0, 0, pl.ds(start, block_k), :]      # (TK, d) from resident V
    s = jax.lax.dot_general(q, k, (((1,), (1,)), ((), ())),
                            preferred_element_type=jnp.float32)  # (TQ, TK)
    if causal:
      # Exact PyTorch semantics: energy += tril(ones(n, n)).  Only the
      # diagonal-straddling tiles need the iota mask; the rest add a scalar.
      col0 = j * block_k
      full_below = (col0 + block_k - 1) <= row0
      full_above = col0 > (row0 + tq - 1)

      def const_mask():
        fill = jnp.where(full_below, jnp.float32(1.0), jnp.float32(0.0))
        return jnp.broadcast_to(fill, (tq, block_k))

      def diag_mask():
        row = row0 + jax.lax.broadcasted_iota(jnp.int32, (tq, block_k), 0)
        col = col0 + jax.lax.broadcasted_iota(jnp.int32, (tq, block_k), 1)
        return (col <= row).astype(jnp.float32)

      s = s + jax.lax.cond(jnp.logical_or(full_below, full_above),
                           const_mask, diag_mask)

    m_new = jnp.maximum(m_prev, jnp.max(s, axis=-1, keepdims=True))
    alpha = jnp.exp(m_prev - m_new)
    p = jnp.exp(s - m_new)
    l_new = alpha * l_prev + jnp.sum(p, axis=-1, keepdims=True)
    acc_new = alpha * acc_prev + jnp.dot(
        p.astype(v.dtype), v, preferred_element_type=jnp.float32)
    return m_new, l_new, acc_new

  m0 = jnp.full((tq, 1), -jnp.inf, jnp.float32)
  l0 = jnp.zeros((tq, 1), jnp.float32)
  acc0 = jnp.zeros((tq, d), jnp.float32)
  m, l, acc = jax.lax.fori_loop(0, num_chunks, body, (m0, l0, acc0),
                                unroll=num_chunks <= 8)

  inv_l = pl.reciprocal(l, approx=True)
  gate = u_ref[0, 0].astype(jnp.float32)           # u-gate fused (f32 path)
  o_ref[0, 0] = (acc * inv_l * gate).astype(o_ref.dtype)


# --------------------------------------------------------------------------
# Kernel 3: output projection from head-major gated activations.
#   out = sum_h g[:, h] @ wo[h] + bo   (per-head MXU matmuls, f32 accumulate)
# --------------------------------------------------------------------------
def _out_proj_kernel(g_ref, w_ref, b_ref, o_ref, *, num_heads):
  tm = g_ref.shape[2]
  e = o_ref.shape[2]
  acc = jnp.zeros((tm, e), jnp.float32)
  for h in range(num_heads):
    acc = acc + jnp.dot(g_ref[0, h], w_ref[h],
                        preferred_element_type=jnp.float32)
  o_ref[0] = (acc + b_ref[...]).astype(o_ref.dtype)


# --------------------------------------------------------------------------
# Wrapper
# --------------------------------------------------------------------------
def norm_local_attention(x, params, *, num_heads, causal=False,
                         block_q=128, block_k=128, block_m=128,
                         compute_dtype=jnp.bfloat16):
  # block_q/block_k=128 keeps the (tq, tk) f32 softmax working set vreg-sized
  # (good on v5e); 256 fills the v6e/v7x 256-wide MXU better -- tune per gen.
  B, N, E = x.shape
  hidden = params["wq"].shape[1]
  assert hidden % num_heads == 0
  head_dim = hidden // num_heads
  # Head-major tiles keep everything lane-dense only for 128-multiples.
  # TODO(synk): head_dim < 128 (e.g. 64) path not implemented.
  assert head_dim % 128 == 0

  tm = min(block_m, N)
  tq = min(block_q, N)
  tk = min(block_k, N)
  assert N % tm == 0 and N % tq == 0 and N % tk == 0
  assert tm % 8 == 0 and tq % 8 == 0 and tk % 8 == 0

  orig_dtype = x.dtype
  cbytes = jnp.dtype(compute_dtype).itemsize
  scale = float(1.0 / np.sqrt(head_dim))
  heads_per_chunk = max(1, min(num_heads, 512 // head_dim))

  # Pre-cast MXU operands to the compute dtype (halves HBM traffic too).
  x_c = x.astype(compute_dtype)
  w_cat = jnp.concatenate(
      [params["wq"], params["wk"], params["wv"], params["wu"]],
      axis=1).astype(compute_dtype)                       # (E, 4*hidden)
  b_cat = jnp.concatenate(
      [params["bq"], params["bk"], params["bv"], params["bu"]],
      axis=1).astype(jnp.float32)                         # (1, 4*hidden)
  wo_hm = params["wo"].reshape(num_heads, head_dim, E).astype(compute_dtype)
  bo = params["bo"].astype(jnp.float32)                   # (1, E)

  hm_shape = (B, num_heads, N, head_dim)                  # head-major layout

  # ---------------- Kernel 1: fused QKVU projection ----------------
  proj_cost = pl.CostEstimate(
      flops=int(2 * B * N * E * 4 * hidden),
      transcendentals=int(2 * B * N * hidden),
      bytes_accessed=int(x_c.size * cbytes + w_cat.size * cbytes
                         + b_cat.size * 4 + 4 * B * N * hidden * cbytes))
  hm_out_spec = pl.BlockSpec((1, num_heads, tm, head_dim),
                             lambda b, i: (b, 0, i, 0))
  q, k, v, u = pl.pallas_call(
      functools.partial(_qkvu_proj_kernel, hidden=hidden,
                        num_heads=num_heads, head_dim=head_dim,
                        heads_per_chunk=heads_per_chunk, scale=scale),
      grid=(B, N // tm),
      in_specs=[
          pl.BlockSpec((1, tm, E), lambda b, i: (b, i, 0)),
          pl.BlockSpec((E, 4 * hidden), lambda b, i: (0, 0)),
          pl.BlockSpec((1, 4 * hidden), lambda b, i: (0, 0)),
      ],
      out_specs=[hm_out_spec] * 4,
      out_shape=[jax.ShapeDtypeStruct(hm_shape, compute_dtype)
                 for _ in range(4)],
      compiler_params=pltpu.CompilerParams(
          dimension_semantics=("parallel", "parallel")),
      cost_estimate=proj_cost,
  )(x_c, w_cat, b_cat)

  # ---------------- Kernel 2: flash attention (resident K/V, fused gate) ----
  attn_cost = pl.CostEstimate(
      flops=int(4 * B * num_heads * N * N * head_dim),
      transcendentals=int(B * num_heads * N * N),
      bytes_accessed=int(5 * B * N * hidden * cbytes))
  gated = pl.pallas_call(
      functools.partial(_flash_attn_kernel, block_k=tk, causal=causal),
      grid=(B, num_heads, N // tq),
      in_specs=[
          pl.BlockSpec((1, 1, tq, head_dim), lambda b, h, i: (b, h, i, 0)),
          # Full K / V per (b, h) resident in VMEM; block index is invariant
          # along the query-tile axis so they are DMA'd once per (b, h).
          pl.BlockSpec((1, 1, N, head_dim), lambda b, h, i: (b, h, 0, 0)),
          pl.BlockSpec((1, 1, N, head_dim), lambda b, h, i: (b, h, 0, 0)),
          pl.BlockSpec((1, 1, tq, head_dim), lambda b, h, i: (b, h, i, 0)),
      ],
      out_specs=pl.BlockSpec((1, 1, tq, head_dim),
                             lambda b, h, i: (b, h, i, 0)),
      out_shape=jax.ShapeDtypeStruct(hm_shape, compute_dtype),
      compiler_params=pltpu.CompilerParams(
          dimension_semantics=("parallel", "parallel", "parallel")),
      cost_estimate=attn_cost,
  )(q, k, v, u)

  # ---------------- Kernel 3: output projection ----------------
  out_cost = pl.CostEstimate(
      flops=int(2 * B * N * hidden * E),
      transcendentals=0,
      bytes_accessed=int(B * N * hidden * cbytes + wo_hm.size * cbytes
                         + B * N * E * jnp.dtype(orig_dtype).itemsize))
  out = pl.pallas_call(
      functools.partial(_out_proj_kernel, num_heads=num_heads),
      grid=(B, N // tm),
      in_specs=[
          pl.BlockSpec((1, num_heads, tm, head_dim),
                       lambda b, i: (b, 0, i, 0)),
          pl.BlockSpec((num_heads, head_dim, E), lambda b, i: (0, 0, 0)),
          pl.BlockSpec((1, E), lambda b, i: (0, 0)),
      ],
      out_specs=pl.BlockSpec((1, tm, E), lambda b, i: (b, i, 0)),
      out_shape=jax.ShapeDtypeStruct((B, N, E), orig_dtype),
      compiler_params=pltpu.CompilerParams(
          dimension_semantics=("parallel", "parallel")),
      cost_estimate=out_cost,
  )(gated, wo_hm, bo)

  return out


# --------------------------------------------------------------------------
# Pure-JAX f32 reference matching the PyTorch module semantics
# --------------------------------------------------------------------------
def reference_forward(x, params, *, num_heads, causal=False):
  hidden = params["wq"].shape[1]
  head_dim = hidden // num_heads
  lin = lambda z, w, b: z @ w + b[0]

  q = lin(x, params["wq"], params["bq"])
  u = _swish(lin(x, params["wu"], params["bu"]))
  k = lin(x, params["wk"], params["bk"])
  v = _swish(lin(x, params["wv"], params["bv"]))

  def to_heads(t):  # (B, N, h*d) -> (B, h, N, d)
    B, N, _ = t.shape
    return t.reshape(B, N, num_heads, head_dim).transpose(0, 2, 1, 3)

  qh, kh, vh = to_heads(q), to_heads(k), to_heads(v)
  energy = jnp.einsum("bhnd,bhmd->bhnm", qh, kh) / np.sqrt(head_dim)
  if causal:
    n = x.shape[1]
    energy = energy + jnp.tril(jnp.ones((n, n), jnp.float32))[None, None]
  energy = jax.nn.softmax(energy, axis=-1)
  out = jnp.einsum("bhnm,bhmd->bhnd", energy, vh)
  out = out.transpose(0, 2, 1, 3).reshape(x.shape[0], x.shape[1], hidden)
  out = u * out
  return lin(out, params["wo"], params["bo"])


def make_params(key, embed_dim, hidden_dim):
  """Deterministic synthetic parameters (PyTorch Linear shapes, pre-transposed)."""
  keys = jax.random.split(key, 10)
  def w(k, i, o): return jax.random.normal(k, (i, o), jnp.float32) * 0.1
  def b(k, o):    return jax.random.normal(k, (1, o), jnp.float32) * 0.1
  return {
      "wq": w(keys[0], embed_dim, hidden_dim), "bq": b(keys[1], hidden_dim),
      "wk": w(keys[2], embed_dim, hidden_dim), "bk": b(keys[3], hidden_dim),
      "wv": w(keys[4], embed_dim, hidden_dim), "bv": b(keys[5], hidden_dim),
      "wu": w(keys[6], embed_dim, hidden_dim), "bu": b(keys[7], hidden_dim),
      "wo": w(keys[8], hidden_dim, embed_dim), "bo": b(keys[9], embed_dim),
  }


if __name__ == "__main__":
  # Lane-aligned small config: head_dim = 256 / 2 = 128.
  B, N, E = 2, 256, 128
  HIDDEN, HEADS = 256, 2

  key = jax.random.PRNGKey(0)
  kx, kp = jax.random.split(key)
  x = jax.random.normal(kx, (B, N, E), jnp.float32)
  params = make_params(kp, E, HIDDEN)

  for causal in (False, True):
    out = norm_local_attention(x, params, num_heads=HEADS, causal=causal)
    out = jax.block_until_ready(out)
    ref = reference_forward(x, params, num_heads=HEADS, causal=causal)
    # bf16 MXU operands + flash reassociation + approx reciprocal vs f32 ref.
    np.testing.assert_allclose(np.asarray(out), np.asarray(ref),
                               rtol=3e-2, atol=3e-2)

  print("KERNEL_OK")
</pallas_src>

<mosaic_0001>
module attributes {stable_mosaic.version = 11 : i64} {
  func.func @_qkvu_proj_kernel(%arg0: i32, %arg1: i32, %arg2: memref<1x128x128xbf16, #tpu.memory_space<vmem>>, %arg3: memref<128x1024xbf16, #tpu.memory_space<vmem>>, %arg4: memref<1x1024xf32, #tpu.memory_space<vmem>>, %arg5: memref<1x2x128x128xbf16, #tpu.memory_space<vmem>>, %arg6: memref<1x2x128x128xbf16, #tpu.memory_space<vmem>>, %arg7: memref<1x2x128x128xbf16, #tpu.memory_space<vmem>>, %arg8: memref<1x2x128x128xbf16, #tpu.memory_space<vmem>>) attributes {dimension_semantics = [#tpu.dimension_semantics<parallel>, #tpu.dimension_semantics<parallel>], iteration_bounds = array<i64: 2, 2>, scalar_prefetch = 0 : i64, scratch_operands = 0 : i64, tpu.core_type = #tpu.core_type<tc>, window_params = [{transform_indices = @transform_0, window_bounds = array<i64: 1, 128, 128>}, {pipeline_mode = #tpu.pipeline_mode<synchronous>, transform_indices = @transform_1, window_bounds = array<i64: 128, 1024>}, {pipeline_mode = #tpu.pipeline_mode<synchronous>, transform_indices = @transform_2, window_bounds = array<i64: 1, 1024>}, {transform_indices = @transform_3, window_bounds = array<i64: 1, 2, 128, 128>}, {transform_indices = @transform_4, window_bounds = array<i64: 1, 2, 128, 128>}, {transform_indices = @transform_5, window_bounds = array<i64: 1, 2, 128, 128>}, {transform_indices = @transform_6, window_bounds = array<i64: 1, 2, 128, 128>}]} {
    %c0 = arith.constant 0 : index
    %c0_0 = arith.constant 0 : index
    %c0_1 = arith.constant 0 : index
    %0 = vector.load %arg2[%c0, %c0_0, %c0_1] : memref<1x128x128xbf16, #tpu.memory_space<vmem>>, vector<1x128x128xbf16>
    %1 = vector.shape_cast %0 : vector<1x128x128xbf16> to vector<128x128xbf16>
    %c0_2 = arith.constant 0 : index
    %c0_3 = arith.constant 0 : index
    %2 = vector.load %arg3[%c0_2, %c0_3] : memref<128x1024xbf16, #tpu.memory_space<vmem>>, vector<128x256xbf16>
    %c0_4 = arith.constant 0 : index
    %c0_5 = arith.constant 0 : index
    %3 = vector.load %arg4[%c0_4, %c0_5] : memref<1x1024xf32, #tpu.memory_space<vmem>>, vector<1x256xf32>
    %cst = arith.constant dense<0.000000e+00> : vector<128x256xf32>
    %4 = tpu.matmul %1, %2, %cst {dimension_numbers = #tpu.dot_dimension_numbers<[1], [0], [0], [1], [0, 0, 1, 1], [], []>} : vector<128x128xbf16>, vector<128x256xbf16>, vector<128x256xf32> -> vector<128x256xf32>
    %5 = vector.broadcast %3 : vector<1x256xf32> to vector<128x256xf32>
    %6 = arith.addf %4, %5 : vector<128x256xf32>
    %cst_6 = arith.constant 0.0883883461 : f32
    %7 = vector.broadcast %cst_6 : f32 to vector<128x256xf32>
    %8 = arith.mulf %6, %7 : vector<128x256xf32>
    %9 = arith.truncf %8 : vector<128x256xf32> to vector<128x256xbf16>
    %10 = vector.extract_strided_slice %9 {offsets = [0, 0], sizes = [128, 128], strides = [1, 1]} : vector<128x256xbf16> to vector<128x128xbf16>
    %c0_7 = arith.constant 0 : index
    %c0_8 = arith.constant 0 : index
    %c0_9 = arith.constant 0 : index
    %c0_10 = arith.constant 0 : index
    %11 = vector.load %arg5[%c0_7, %c0_8, %c0_9, %c0_10] : memref<1x2x128x128xbf16, #tpu.memory_space<vmem>>, vector<1x1x128x128xbf16>
    %12 = vector.shape_cast %11 : vector<1x1x128x128xbf16> to vector<128x128xbf16>
    %13 = vector.shape_cast %10 : vector<128x128xbf16> to vector<1x1x128x128xbf16>
    tpu.vector_store %arg5[%c0_7, %c0_8, %c0_9, %c0_10], %13 {strides = array<i32>} : memref<1x2x128x128xbf16, #tpu.memory_space<vmem>>, vector<1x1x128x128xbf16>,
    %14 = vector.extract_strided_slice %9 {offsets = [0, 128], sizes = [128, 128], strides = [1, 1]} : vector<128x256xbf16> to vector<128x128xbf16>
    %c0_11 = arith.constant 0 : index
    %c1 = arith.constant 1 : index
    %c0_12 = arith.constant 0 : index
    %c0_13 = arith.constant 0 : index
    %15 = vector.load %arg5[%c0_11, %c1, %c0_12, %c0_13] : memref<1x2x128x128xbf16, #tpu.memory_space<vmem>>, vector<1x1x128x128xbf16>
    %16 = vector.shape_cast %15 : vector<1x1x128x128xbf16> to vector<128x128xbf16>
    %17 = vector.shape_cast %14 : vector<128x128xbf16> to vector<1x1x128x128xbf16>
    tpu.vector_store %arg5[%c0_11, %c1, %c0_12, %c0_13], %17 {strides = array<i32>} : memref<1x2x128x128xbf16, #tpu.memory_space<vmem>>, vector<1x1x128x128xbf16>,
    %c0_14 = arith.constant 0 : index
    %c256 = arith.constant 256 : index
    %18 = vector.load %arg3[%c0_14, %c256] : memref<128x1024xbf16, #tpu.memory_space<vmem>>, vector<128x256xbf16>
    %c0_15 = arith.constant 0 : index
    %c256_16 = arith.constant 256 : index
    %19 = vector.load %arg4[%c0_15, %c256_16] : memref<1x1024xf32, #tpu.memory_space<vmem>>, vector<1x256xf32>
    %cst_17 = arith.constant dense<0.000000e+00> : vector<128x256xf32>
    %20 = tpu.matmul %1, %18, %cst_17 {dimension_numbers = #tpu.dot_dimension_numbers<[1], [0], [0], [1], [0, 0, 1, 1], [], []>} : vector<128x128xbf16>, vector<128x256xbf16>, vector<128x256xf32> -> vector<128x256xf32>
    %21 = vector.broadcast %19 : vector<1x256xf32> to vector<128x256xf32>
    %22 = arith.addf %20, %21 : vector<128x256xf32>
    %23 = arith.truncf %22 : vector<128x256xf32> to vector<128x256xbf16>
    %24 = vector.extract_strided_slice %23 {offsets = [0, 0], sizes = [128, 128], strides = [1, 1]} : vector<128x256xbf16> to vector<128x128xbf16>
    %c0_18 = arith.constant 0 : index
    %c0_19 = arith.constant 0 : index
    %c0_20 = arith.constant 0 : index
    %c0_21 = arith.constant 0 : index
    %25 = vector.load %arg6[%c0_18, %c0_19, %c0_20, %c0_21] : memref<1x2x128x128xbf16, #tpu.memory_space<vmem>>, vector<1x1x128x128xbf16>
    %26 = vector.shape_cast %25 : vector<1x1x128x128xbf16> to vector<128x128xbf16>
    %27 = vector.shape_cast %24 : vector<128x128xbf16> to vector<1x1x128x128xbf16>
    tpu.vector_store %arg6[%c0_18, %c0_19, %c0_20, %c0_21], %27 {strides = array<i32>} : memref<1x2x128x128xbf16, #tpu.memory_space<vmem>>, vector<1x1x128x128xbf16>,
    %28 = vector.extract_strided_slice %23 {offsets = [0, 128], sizes = [128, 128], strides = [1, 1]} : vector<128x256xbf16> to vector<128x128xbf16>
    %c0_22 = arith.constant 0 : index
    %c1_23 = arith.constant 1 : index
    %c0_24 = arith.constant 0 : index
    %c0_25 = arith.constant 0 : index
    %29 = vector.load %arg6[%c0_22, %c1_23, %c0_24, %c0_25] : memref<1x2x128x128xbf16, #tpu.memory_space<vmem>>, vector<1x1x128x128xbf16>
    %30 = vector.shape_cast %29 : vector<1x1x128x128xbf16> to vector<128x128xbf16>
    %31 = vector.shape_cast %28 : vector<128x128xbf16> to vector<1x1x128x128xbf16>
    tpu.vector_store %arg6[%c0_22, %c1_23, %c0_24, %c0_25], %31 {strides = array<i32>} : memref<1x2x128x128xbf16, #tpu.memory_space<vmem>>, vector<1x1x128x128xbf16>,
    %c0_26 = arith.constant 0 : index
    %c512 = arith.constant 512 : index
    %32 = vector.load %arg3[%c0_26, %c512] : memref<128x1024xbf16, #tpu.memory_space<vmem>>, vector<128x256xbf16>
    %c0_27 = arith.constant 0 : index
    %c512_28 = arith.constant 512 : index
    %33 = vector.load %arg4[%c0_27, %c512_28] : memref<1x1024xf32, #tpu.memory_space<vmem>>, vector<1x256xf32>
    %cst_29 = arith.constant dense<0.000000e+00> : vector<128x256xf32>
    %34 = tpu.matmul %1, %32, %cst_29 {dimension_numbers = #tpu.dot_dimension_numbers<[1], [0], [0], [1], [0, 0, 1, 1], [], []>} : vector<128x128xbf16>, vector<128x256xbf16>, vector<128x256xf32> -> vector<128x256xf32>
    %35 = vector.broadcast %33 : vector<1x256xf32> to vector<128x256xf32>
    %36 = arith.addf %34, %35 : vector<128x256xf32>
    %37 = arith.negf %36 : vector<128x256xf32>
    %38 = math.exp %37 : vector<128x256xf32>
    %cst_30 = arith.constant 1.000000e+00 : f32
    %39 = vector.broadcast %cst_30 : f32 to vector<128x256xf32>
    %40 = arith.addf %39, %38 : vector<128x256xf32>
    %41 = arith.divf %39, %40 : vector<128x256xf32>
    %42 = arith.mulf %36, %41 : vector<128x256xf32>
    %43 = arith.truncf %42 : vector<128x256xf32> to vector<128x256xbf16>
    %44 = vector.extract_strided_slice %43 {offsets = [0, 0], sizes = [128, 128], strides = [1, 1]} : vector<128x256xbf16> to vector<128x128xbf16>
    %c0_31 = arith.constant 0 : index
    %c0_32 = arith.constant 0 : index
    %c0_33 = arith.constant 0 : index
    %c0_34 = arith.constant 0 : index
    %45 = vector.load %arg7[%c0_31, %c0_32, %c0_33, %c0_34] : memref<1x2x128x128xbf16, #tpu.memory_space<vmem>>, vector<1x1x128x128xbf16>
    %46 = vector.shape_cast %45 : vector<1x1x128x128xbf16> to vector<128x128xbf16>
    %47 = vector.shape_cast %44 : vector<128x128xbf16> to vector<1x1x128x128xbf16>
    tpu.vector_store %arg7[%c0_31, %c0_32, %c0_33, %c0_34], %47 {strides = array<i32>} : memref<1x2x128x128xbf16, #tpu.memory_space<vmem>>, vector<1x1x128x128xbf16>,
    %48 = vector.extract_strided_slice %43 {offsets = [0, 128], sizes = [128, 128], strides = [1, 1]} : vector<128x256xbf16> to vector<128x128xbf16>
    %c0_35 = arith.constant 0 : index
    %c1_36 = arith.constant 1 : index
    %c0_37 = arith.constant 0 : index
    %c0_38 = arith.constant 0 : index
    %49 = vector.load %arg7[%c0_35, %c1_36, %c0_37, %c0_38] : memref<1x2x128x128xbf16, #tpu.memory_space<vmem>>, vector<1x1x128x128xbf16>
    %50 = vector.shape_cast %49 : vector<1x1x128x128xbf16> to vector<128x128xbf16>
    %51 = vector.shape_cast %48 : vector<128x128xbf16> to vector<1x1x128x128xbf16>
    tpu.vector_store %arg7[%c0_35, %c1_36, %c0_37, %c0_38], %51 {strides = array<i32>} : memref<1x2x128x128xbf16, #tpu.memory_space<vmem>>, vector<1x1x128x128xbf16>,
    %c0_39 = arith.constant 0 : index
    %c768 = arith.constant 768 : index
    %52 = vector.load %arg3[%c0_39, %c768] : memref<128x1024xbf16, #tpu.memory_space<vmem>>, vector<128x256xbf16>
    %c0_40 = arith.constant 0 : index
    %c768_41 = arith.constant 768 : index
    %53 = vector.load %arg4[%c0_40, %c768_41] : memref<1x1024xf32, #tpu.memory_space<vmem>>, vector<1x256xf32>
    %cst_42 = arith.constant dense<0.000000e+00> : vector<128x256xf32>
    %54 = tpu.matmul %1, %52, %cst_42 {dimension_numbers = #tpu.dot_dimension_numbers<[1], [0], [0], [1], [0, 0, 1, 1], [], []>} : vector<128x128xbf16>, vector<128x256xbf16>, vector<128x256xf32> -> vector<128x256xf32>
    %55 = vector.broadcast %53 : vector<1x256xf32> to vector<128x256xf32>
    %56 = arith.addf %54, %55 : vector<128x256xf32>
    %57 = arith.negf %56 : vector<128x256xf32>
    %58 = math.exp %57 : vector<128x256xf32>
    %cst_43 = arith.constant 1.000000e+00 : f32
    %59 = vector.broadcast %cst_43 : f32 to vector<128x256xf32>
    %60 = arith.addf %59, %58 : vector<128x256xf32>
    %61 = arith.divf %59, %60 : vector<128x256xf32>
    %62 = arith.mulf %56, %61 : vector<128x256xf32>
    %63 = arith.truncf %62 : vector<128x256xf32> to vector<128x256xbf16>
    %64 = vector.extract_strided_slice %63 {offsets = [0, 0], sizes = [128, 128], strides = [1, 1]} : vector<128x256xbf16> to vector<128x128xbf16>
    %c0_44 = arith.constant 0 : index
    %c0_45 = arith.constant 0 : index
    %c0_46 = arith.constant 0 : index
    %c0_47 = arith.constant 0 : index
    %65 = vector.load %arg8[%c0_44, %c0_45, %c0_46, %c0_47] : memref<1x2x128x128xbf16, #tpu.memory_space<vmem>>, vector<1x1x128x128xbf16>
    %66 = vector.shape_cast %65 : vector<1x1x128x128xbf16> to vector<128x128xbf16>
    %67 = vector.shape_cast %64 : vector<128x128xbf16> to vector<1x1x128x128xbf16>
    tpu.vector_store %arg8[%c0_44, %c0_45, %c0_46, %c0_47], %67 {strides = array<i32>} : memref<1x2x128x128xbf16, #tpu.memory_space<vmem>>, vector<1x1x128x128xbf16>,
    %68 = vector.extract_strided_slice %63 {offsets = [0, 128], sizes = [128, 128], strides = [1, 1]} : vector<128x256xbf16> to vector<128x128xbf16>
    %c0_48 = arith.constant 0 : index
    %c1_49 = arith.constant 1 : index
    %c0_50 = arith.constant 0 : index
    %c0_51 = arith.constant 0 : index
    %69 = vector.load %arg8[%c0_48, %c1_49, %c0_50, %c0_51] : memref<1x2x128x128xbf16, #tpu.memory_space<vmem>>, vector<1x1x128x128xbf16>
    %70 = vector.shape_cast %69 : vector<1x1x128x128xbf16> to vector<128x128xbf16>
    %71 = vector.shape_cast %68 : vector<128x128xbf16> to vector<1x1x128x128xbf16>
    tpu.vector_store %arg8[%c0_48, %c1_49, %c0_50, %c0_51], %71 {strides = array<i32>} : memref<1x2x128x128xbf16, #tpu.memory_space<vmem>>, vector<1x1x128x128xbf16>,
    return
  }
  func.func @transform_0(%arg0: i32, %arg1: i32) -> (i32, i32, i32) {
    %c0_i32 = arith.constant 0 : i32
    %c0_i32_0 = arith.constant 0 : i32
    return %arg0, %arg1, %c0_i32 : i32, i32, i32
  }
  func.func @transform_1(%arg0: i32, %arg1: i32) -> (i32, i32) {
    %c0_i32 = arith.constant 0 : i32
    %c0_i32_0 = arith.constant 0 : i32
    %c0_i32_1 = arith.constant 0 : i32
    return %c0_i32, %c0_i32_0 : i32, i32
  }
  func.func @transform_2(%arg0: i32, %arg1: i32) -> (i32, i32) {
    %c0_i32 = arith.constant 0 : i32
    %c0_i32_0 = arith.constant 0 : i32
    %c0_i32_1 = arith.constant 0 : i32
    return %c0_i32, %c0_i32_0 : i32, i32
  }
  func.func @transform_3(%arg0: i32, %arg1: i32) -> (i32, i32, i32, i32) {
    %c0_i32 = arith.constant 0 : i32
    %c0_i32_0 = arith.constant 0 : i32
    %c0_i32_1 = arith.constant 0 : i32
    return %arg0, %c0_i32, %arg1, %c0_i32_0 : i32, i32, i32, i32
  }
  func.func @transform_4(%arg0: i32, %arg1: i32) -> (i32, i32, i32, i32) {
    %c0_i32 = arith.constant 0 : i32
    %c0_i32_0 = arith.constant 0 : i32
    %c0_i32_1 = arith.constant 0 : i32
    return %arg0, %c0_i32, %arg1, %c0_i32_0 : i32, i32, i32, i32
  }
  func.func @transform_5(%arg0: i32, %arg1: i32) -> (i32, i32, i32, i32) {
    %c0_i32 = arith.constant 0 : i32
    %c0_i32_0 = arith.constant 0 : i32
    %c0_i32_1 = arith.constant 0 : i32
    return %arg0, %c0_i32, %arg1, %c0_i32_0 : i32, i32, i32, i32
  }
  func.func @transform_6(%arg0: i32, %arg1: i32) -> (i32, i32, i32, i32) {
    %c0_i32 = arith.constant 0 : i32
    %c0_i32_0 = arith.constant 0 : i32
    %c0_i32_1 = arith.constant 0 : i32
    return %arg0, %c0_i32, %arg1, %c0_i32_0 : i32, i32, i32, i32
  }
}

</mosaic_0001>

<bundles_post_ra>
// kernel: tpu_custom_call.1
= control target key start
LH: loop header
LB: loop body
LE: loop exit
PB: predicated region body
PF: predicated region fallthrough
CT: control target
= control target key end

     0   :  { %s6595_s0 = inlined_call_operand.hbm [shape: bf16[2,256,128], index: 0, kind: input, shape index: {}]   ;;  %s6596_s1 = inlined_call_operand.hbm [shape: bf16[128,1024], index: 1, kind: input, shape index: {}]   ;;  %s6597_s2 = inlined_call_operand.hbm [shape: f32[1,1024], index: 2, kind: input, shape index: {}]   ;;  %s6598_s3 = inlined_call_operand.hbm [shape: bf16[2,2,256,128], index: 3, kind: output, shape index: {0}]   ;;  %s6599_s4 = inlined_call_operand.hbm [shape: bf16[2,2,256,128], index: 4, kind: output, shape index: {1}]   ;;  %s6600_s5 = inlined_call_operand.hbm [shape: bf16[2,2,256,128], index: 5, kind: output, shape index: {2}]   ;;  %s6601_s6 = inlined_call_operand.hbm [shape: bf16[2,2,256,128], index: 6, kind: output, shape index: {3}]  }
   0x1   :  { %6606 = sst [smem:[#allocation30_spill]] %s6596_s1 }
   0x2   :  { %6607 = sst [smem:[#allocation31_spill]] %s6597_s2 }
   0x3   :  { %6608 = sst [smem:[#allocation32_spill]] %s6598_s3 }
   0x4   :  { %6609 = sst [smem:[#allocation33_spill]] %s6599_s4 }
   0x5   :  { %6610 = sst [smem:[#allocation34_spill]] %s6600_s5 }
   0x6   :  { %6611 = sst [smem:[#allocation35_spill]] %s6601_s6 }
   0x7   :  { %12 = vsyncpa [#allocation3], 0 }
   0x8   :  { %14 = vsyncpa [#allocation3 + $0x1], 0 }
   0x9   :  { %15 = vsyncpa [#allocation6], 0 }
   0xa   :  { %16 = vsyncpa [#allocation4], 0 }
   0xb   :  { %18 = vsyncpa [#allocation4 + $0x1], 0 }
   0xc   :  { %19 = vsyncpa [#allocation10], 0 }
   0xd   :  { %21 = vsyncpa [#allocation10 + $0x1], 0 }
   0xe   :  { %22 = vsyncpa [#allocation13], 0 }
   0xf   :  { %24 = vsyncpa [#allocation13 + $0x1], 0  ;;  %s4701_s21 = smov 0   ;;  %s4703_s22 = smov 0  }
  0x10   :  { %s4705_s23 = smov 0   ;;  %s4707_s24 = smov 0  }
  0x11   :  { %s4709_s25 = smov 0   ;;  %s4711_s26 = smov 0  }
  0x12   :  { %s4713_s27 = smov 0   ;;  %s4715_s28 = smov 0  }
  0x13 LB: > { %6612 = sst [smem:[#allocation27_spill]] %s4602_s21  ;;  %s4742_s29 = sadd.s32 4294967295, %s4630_s28   ;;  %s4630_s28 = sphi %s4715_s28, %s30_s28   ;;  %s4626_s27 = sphi %s4713_s27, %s6750_s27   ;;  %s4622_s26 = sphi %s4711_s26, %s6749_s26   ;;  %s4618_s25 = sphi %s4709_s25, %s6748_s25   ;;  %s4614_s24 = sphi %s4707_s24, %s6747_s24   ;;  %s4610_s23 = sphi %s4705_s23, %s6746_s23   ;;  %s4606_s22 = sphi %s4703_s22, %s6745_s22   ;;  %s4602_s21 = sphi %s4701_s21, %s6744_s21  }
  0x14   : > { %s6602_s30 = sadd.s32 4294967294, %s4630_s28   ;;  %p64_p0 = scmp.ne.s32.totalorder %s4606_s22, %s4602_s21 }
  0x15   : > { %p65_p1 = scmp.eq.s32.totalorder %s4742_s29, 0  ;;  %p132_p2 = scmp.eq.s32.totalorder %s4742_s29, 3 }
  0x16   : > { %p138_p3 = scmp.eq.s32.totalorder %s6602_s30, 3  ;;  %p3322_p5 = scmp.ge.s32.totalorder %s4630_s28, 1 }
  0x17   : > { %p4753_p4 = por %p65_p1, %p64_p0  ;;  %p229_p7 = scmp.lt.s32.totalorder %s4630_s28, 5 }
  0x18   : > { %p4758_p6 = por %p138_p3, %p64_p0  ;;  %s6616_s1 = sld [smem:[#allocation30_spill]] }
  0x19   : > { %p4766_p8 = pnand %p3322_p5, %p229_p7  ;;  %s4632_s13 = smov [#allocation5]  }
  0x1a   : > { %s6614_s8 = scalar_select %p4758_p6, 1, 0 }
  0x1b   : > { %p4074_p9 = pneg %p4766_p8  ;;  %s242_s14 = sshll.u32 %s4632_s13, 4  ;;  %s243_s14 = int_to_ptr.vmem [resolvable:$true] %s242_s14 }
  0x1c   : > { %6615 = sst [smem:[#allocation28_spill]] %s6614_s8  ;;  %s4633_s18 = smov 512  }
  0x1d   : > { %p4075_p10 = pnand %p4074_p9, %p65_p1  ;;  %s6618_s2 = sld [smem:[#allocation31_spill]] }
  0x1e   : > { %s240_s11 = sshll.u32 %s6616_s1, 4  ;;  %s4634_s19 = smov 32   ;;  %s241_s11 = int_to_ptr.hbm [resolvable:$true] %s240_s11 }
  0x1f   : > { %4077 = dma.hbm_to_vmem [thread:$0]  (!%p4075_p10), %s241_s11, 8192, %s243_s14, [#allocation6], %s4633_s18, %s4633_s18, %s4634_s19  }
  0x20   : > { %s4635_s20 = smov [#allocation7]   ;;  %s39_s10 = sadd.s32 1, %s4622_s26 }
  0x21   : > { %s257_s9 = sshll.u32 %s4635_s20, 4  ;;  %s42_s13 = sadd.s32 1, %s4626_s27  ;;  %s258_s9 = int_to_ptr.vmem [resolvable:$true] %s257_s9 }
  0x22   : > { %p40_p11 = scmp.ge.s32.totalorder %s39_s10, 2  ;;  %s51_s15 = sadd.s32 1, %s4610_s23 }
  0x23   : > { %s255_s17 = sshll.u32 %s6618_s2, 4  ;;  %p58_p12 = scmp.ne.s32.totalorder %s4610_s23, %s4606_s22  ;;  %s256_s17 = int_to_ptr.hbm [resolvable:$true] %s255_s17 }
  0x24   : > { %4080 = dma.hbm_to_vmem [thread:$0]  (!%p4075_p10), %s256_s17, 128, %s258_s9, [#allocation6]  }
  0x25   : > { %p59_p13 = scmp.eq.s32.totalorder %s4630_s28, 0  ;;  %s6752_s10 = smov (%p40_p11, %s39_s10), 0 }
  0x26   : > { %6619 = sst [smem:[#allocation29_spill]] %s6752_s10  ;;  %s6754_s13 = smov (!%p40_p11, %s42_s13), %s4626_s27 }
  0x27   : > { %s47_s11 = ssub.s32 %s4622_s26, %s6752_s10  ;;  %p4788_p0 = por %p59_p13, %p58_p12 }
  0x28   : > { %p44_p3 = scmp.ge.s32.totalorder %s6754_s13, 2  ;;  %p4794_p5 = por %p132_p2, %p58_p12 }
  0x29   : > { %p4100_p7 = scmp.lt.s32.totalorder %s4630_s28, 4  ;;  %s268_s17 = sand.u32 1, %s4610_s23  }
  0x2a   : > { %s6756_s13 = smov (%p44_p3, %s6754_s13), 0  ;;  %s3326_s18 = sshll.u32 %s268_s17, 6 }
  0x2b   : > { %s46_s19 = ssub.s32 %s4626_s27, %s6756_s13  ;;  %s3327_s9 = sshll.u32 %s4622_s26, 4 }
  0x2c   : > { %s48_s20 = sor.u32 %s47_s11, %s46_s19  ;;  %s3328_s30 = sshll.u32 %s4626_s27, 5 }
  0x2d   : > { %p49_p9 = scmp.eq.s32.totalorder %s48_s20, 0  ;;  %s277_s1 = sadd.s32 %s3328_s30, %s3327_s9 }
  0x2e   : > { %s272_s2 = scalar_lea.vmem [#allocation2], %s3326_s18  ;;  %s3329_s21 = sshll.u32 %s277_s1, 2 }
  0x2f   : > { %s282_s10 = sshll.u32 %s272_s2, 4  ;;  %s279_s4 = scalar_lea.hbm %s6595_s0, %s3329_s21  ;;  %s283_s10 = int_to_ptr.vmem [resolvable:$true] %s282_s10 }
  0x30   : > { %s4807_s8 = scalar_select %p49_p9, %s4610_s23, %s51_s15  }
  0x31   : > { %p4082_p2 = pnand %p4100_p7, %p4788_p0  ;;  %s280_s3 = sshll.u32 %s279_s4, 4  ;;  %s281_s3 = int_to_ptr.hbm [resolvable:$true] %s280_s3 }
  0x32   : > { %s269_s11 = scalar_lea.sflag [#allocation3], %s268_s17  ;;  %s4636_s19 = smov 64  }
  0x33   : > { %s4637_s20 = smov 4   ;;  %294 = sbr.rel (%p4766_p8) target bundleno = 717 (0x2cd), region = 32 }
  0x34   : > { %4084 = dma.hbm_to_vmem [thread:$0]  (!%p4082_p2), %s281_s3, 1024, %s283_s10, %s269_s11, %s4636_s19, %s4636_s19, %s4637_s20  }
  0x35   : > { %s4819_s1 = sand.u32 (!%p4766_p8), 1, %s4606_s22  }
  0x36   : > { %s3331_s2 = sshll.u32 (!%p4766_p8), %s4819_s1, 6  ;;  %s297_s5 = scalar_lea.sflag (!%p4766_p8), [#allocation3], %s4819_s1 }
  0x37   : > { %s4823_s6 = scalar_lea.vmem (!%p4766_p8), [#allocation2], %s3331_s2 }
  0x38   : > { %4581 = dma.done.wait (%p4753_p4), %s297_s5, 1024  }
  0x39   : > { %4583 = vsyncadd (%p4753_p4), %s297_s5, 4294966272 }
  0x3a   : > { %4585 = dma.done.wait (%p65_p1), [#allocation6], 8320  }
  0x3b   : > { %4587 = vsyncadd (%p65_p1), [#allocation6], 4294958976  ;;  %v3428_v0 = vld [vmem:[#allocation5 + $0x1c0] sm:$0xf]  ;;  %v3794_v2 = vld [vmem:[#allocation5 + $0x1c4] sm:$0xf] }
  0x3c   : > { %v3795_v1 = vld [vmem:[#allocation5 + $0x1dc] sm:$0xf0]  ;;  %v3430_v4 = vld [vmem:[#allocation5 + $0x1e0] sm:$0xf0]  ;;  %v3508_v5 = vld [vmem:[#allocation5 + $0x1c8] sm:$0xf] }
  0x3d   : > { %v3429_v3 = vor.u32 %v3795_v1, %v3428_v0  ;;  %v3811_v6 = vld [vmem:[#allocation5 + $0x1e4] sm:$0xf0]  ;;  %v3433_v7 = vor.u32 %v3794_v2, %v3430_v4  ;;  %v3810_v9 = vld [vmem:[#allocation5 + $0x1cc] sm:$0xf]  ;;  %v3420_v11 = vld [vmem:[#allocation5 + $0x180] sm:$0xf] }
  0x3e   : > { %v3509_v8 = vor.u32 %v3811_v6, %v3508_v5  ;;  %v3510_v10 = vld [vmem:[#allocation5 + $0x1e8] sm:$0xf0]  ;;  %v3793_v13 = vld [vmem:[#allocation5 + $0x19c] sm:$0xf0]  ;;  %v3792_v14 = vld [vmem:[#allocation5 + $0x184] sm:$0xf] }
  0x3f   : > { %526 = vmatpush.bf16.msra.mxu0 %v3429_v3  ;;  %v3513_v12 = vor.u32 %v3810_v9, %v3510_v10  ;;  %v3422_v15 = vld [vmem:[#allocation5 + $0x1a0] sm:$0xf0]  ;;  %575 = vmatpush.bf16.msra.mxu1 %v3433_v7  ;;  %v3421_v16 = vor.u32 %v3793_v13, %v3420_v11  ;;  %v3500_v18 = vld [vmem:[#allocation5 + $0x188] sm:$0xf]  ;;  %v3808_v20 = vld [vmem:[#allocation5 + $0x18c] sm:$0xf] }
  0x40   : > { %855 = vmatpush.bf16.msra.mxu2 %v3509_v8  ;;  %v3425_v17 = vor.u32 %v3792_v14, %v3422_v15  ;;  %v3809_v19 = vld [vmem:[#allocation5 + $0x1a4] sm:$0xf0]  ;;  %v3502_v22 = vld [vmem:[#allocation5 + $0x1a8] sm:$0xf0]  ;;  %v3412_v23 = vld [vmem:[#allocation5 + $0x140] sm:$0xf] }
  0x41   : > { %904 = vmatpush.bf16.msra.mxu3 %v3513_v12  ;;  %v3501_v21 = vor.u32 %v3809_v19, %v3500_v18  ;;  %v3791_v24 = vld [vmem:[#allocation5 + $0x15c] sm:$0xf0]  ;;  %v3505_v25 = vor.u32 %v3808_v20, %v3502_v22  ;;  %v3790_v26 = vld [vmem:[#allocation5 + $0x144] sm:$0xf]  ;;  %v3492_v28 = vld [vmem:[#allocation5 + $0x148] sm:$0xf] }
  0x42   : > { %v3414_v27 = vld [vmem:[#allocation5 + $0x160] sm:$0xf0]  ;;  %v3413_v29 = vor.u32 %v3791_v24, %v3412_v23  ;;  %v3807_v30 = vld [vmem:[#allocation5 + $0x164] sm:$0xf0]  ;;  %v3806_v31 = vld [vmem:[#allocation5 + $0x14c] sm:$0xf] }
  0x43   : > { %527 = vmatpush.bf16.msra.mxu0 %v3421_v16  ;;  %v3494_v32 = vld [vmem:[#allocation5 + $0x168] sm:$0xf0]  ;;  %576 = vmatpush.bf16.msra.mxu1 %v3425_v17  ;;  %v3417_v33 = vor.u32 %v3790_v26, %v3414_v27  ;;  %v3493_v34 = vor.u32 %v3807_v30, %v3492_v28  ;;  %v3404_v35 = vld [vmem:[#allocation5 + $0x100] sm:$0xf]  ;;  %v3788_v37 = vld [vmem:[#allocation5 + $0x104] sm:$0xf] }
  0x44   : > { %856 = vmatpush.bf16.msra.mxu2 %v3501_v21  ;;  %v3789_v36 = vld [vmem:[#allocation5 + $0x11c] sm:$0xf0]  ;;  %v3497_v38 = vor.u32 %v3806_v31, %v3494_v32  ;;  %v3406_v39 = vld [vmem:[#allocation5 + $0x120] sm:$0xf0]  ;;  %v3484_v40 = vld [vmem:[#allocation5 + $0x108] sm:$0xf] }
  0x45   : > { %905 = vmatpush.bf16.msra.mxu3 %v3505_v25  ;;  %v3805_v41 = vld [vmem:[#allocation5 + $0x124] sm:$0xf0]  ;;  %v3804_v42 = vld [vmem:[#allocation5 + $0x10c] sm:$0xf]  ;;  %v3405_v44 = vor.u32 %v3789_v36, %v3404_v35  ;;  %v3409_v45 = vor.u32 %v3788_v37, %v3406_v39  ;;  %v3396_v47 = vld [vmem:[#allocation5 + $0xc0] sm:$0xf] }
  0x46   : > { %v3486_v43 = vld [vmem:[#allocation5 + $0x128] sm:$0xf0]  ;;  %v3485_v46 = vor.u32 %v3805_v41, %v3484_v40  ;;  %v3787_v48 = vld [vmem:[#allocation5 + $0xdc] sm:$0xf0]  ;;  %v3786_v49 = vld [vmem:[#allocation5 + $0xc4] sm:$0xf] }
  0x47   : > { %528 = vmatpush.bf16.msra.mxu0 %v3413_v29  ;;  %577 = vmatpush.bf16.msra.mxu1 %v3417_v33  ;;  %v3489_v50 = vor.u32 %v3804_v42, %v3486_v43  ;;  %v3398_v51 = vld [vmem:[#allocation5 + $0xe0] sm:$0xf0]  ;;  %v3476_v52 = vld [vmem:[#allocation5 + $0xc8] sm:$0xf]  ;;  %v3802_v54 = vld [vmem:[#allocation5 + $0xcc] sm:$0xf]  ;;  %v3397_v56 = vor.u32 %v3787_v48, %v3396_v47 }
  0x48   : > { %857 = vmatpush.bf16.msra.mxu2 %v3493_v34  ;;  %v3803_v53 = vld [vmem:[#allocation5 + $0xe4] sm:$0xf0]  ;;  %v3478_v55 = vld [vmem:[#allocation5 + $0xe8] sm:$0xf0]  ;;  %v3401_v57 = vor.u32 %v3786_v49, %v3398_v51  ;;  %v3388_v59 = vld [vmem:[#allocation5 + $0x80] sm:$0xf] }
  0x49   : > { %906 = vmatpush.bf16.msra.mxu3 %v3497_v38  ;;  %v3477_v58 = vor.u32 %v3803_v53, %v3476_v52  ;;  %v3785_v60 = vld [vmem:[#allocation5 + $0x9c] sm:$0xf0]  ;;  %v3784_v61 = vld [vmem:[#allocation5 + $0x84] sm:$0xf]  ;;  %v3481_v62 = vor.u32 %v3802_v54, %v3478_v55  ;;  %v3468_v0 = vld [vmem:[#allocation5 + $0x88] sm:$0xf] }
  0x4a   : > { %v3390_v63 = vld [vmem:[#allocation5 + $0xa0] sm:$0xf0]  ;;  %v3801_v1 = vld [vmem:[#allocation5 + $0xa4] sm:$0xf0]  ;;  %v3800_v2 = vld [vmem:[#allocation5 + $0x8c] sm:$0xf]  ;;  %v3389_v4 = vor.u32 %v3785_v60, %v3388_v59 }
  0x4b   : > { %529 = vmatpush.bf16.msra.mxu0 %v3405_v44  ;;  %578 = vmatpush.bf16.msra.mxu1 %v3409_v45  ;;  %v3470_v3 = vld [vmem:[#allocation5 + $0xa8] sm:$0xf0]  ;;  %v3393_v5 = vor.u32 %v3784_v61, %v3390_v63  ;;  %v3469_v6 = vor.u32 %v3801_v1, %v3468_v0  ;;  %v3380_v7 = vld [vmem:[#allocation5 + $0x40] sm:$0xf]  ;;  %v3782_v9 = vld [vmem:[#allocation5 + $0x44] sm:$0xf] }
  0x4c   : > { %858 = vmatpush.bf16.msra.mxu2 %v3485_v46  ;;  %v3783_v8 = vld [vmem:[#allocation5 + $0x5c] sm:$0xf0]  ;;  %v3473_v10 = vor.u32 %v3800_v2, %v3470_v3  ;;  %v3382_v11 = vld [vmem:[#allocation5 + $0x60] sm:$0xf0]  ;;  %v3460_v12 = vld [vmem:[#allocation5 + $0x48] sm:$0xf] }
  0x4d   : > { %907 = vmatpush.bf16.msra.mxu3 %v3489_v50  ;;  %v3799_v13 = vld [vmem:[#allocation5 + $0x64] sm:$0xf0]  ;;  %v3798_v14 = vld [vmem:[#allocation5 + $0x4c] sm:$0xf]  ;;  %v3381_v16 = vor.u32 %v3783_v8, %v3380_v7  ;;  %v3372_v17 = vld [vmem:[#allocation5] sm:$0xf]  ;;  %v3385_v18 = vor.u32 %v3782_v9, %v3382_v11 }
  0x4e   : > { %v3462_v15 = vld [vmem:[#allocation5 + $0x68] sm:$0xf0]  ;;  %v3461_v19 = vor.u32 %v3799_v13, %v3460_v12  ;;  %v3781_v20 = vld [vmem:[#allocation5 + $0x1c] sm:$0xf0]  ;;  %v3780_v21 = vld [vmem:[#allocation5 + $0x4] sm:$0xf] }
  0x4f   : > { %530 = vmatpush.bf16.msra.mxu0 %v3397_v56  ;;  %579 = vmatpush.bf16.msra.mxu1 %v3401_v57  ;;  %v3374_v22 = vld [vmem:[#allocation5 + $0x20] sm:$0xf0]  ;;  %v3465_v23 = vor.u32 %v3798_v14, %v3462_v15  ;;  %v3452_v24 = vld [vmem:[#allocation5 + $0x8] sm:$0xf]  ;;  %v3796_v26 = vld [vmem:[#allocation5 + $0xc] sm:$0xf]  ;;  %v3373_v30 = vor.u32 %v3781_v20, %v3372_v17 }
  0x50   : > { %859 = vmatpush.bf16.msra.mxu2 %v3477_v58  ;;  %v3797_v25 = vld [vmem:[#allocation5 + $0x24] sm:$0xf0]  ;;  %v3454_v27 = vld [vmem:[#allocation5 + $0x28] sm:$0xf0]  ;;  %v3700_v28 = vld [vmem:[#allocation5 + $0x1d8] sm:$0xf]  ;;  %v3377_v33 = vor.u32 %v3780_v21, %v3374_v22 }
  0x51   : > { %908 = vmatpush.bf16.msra.mxu3 %v3481_v62  ;;  %v3843_v29 = vld [vmem:[#allocation5 + $0x1f4] sm:$0xf0]  ;;  %v3842_v31 = vld [vmem:[#allocation5 + $0x1dc] sm:$0xf]  ;;  %v3453_v34 = vor.u32 %v3797_v25, %v3452_v24  ;;  %v4834_v35 = vld [vmem:[%s4823_s6] sm:$0xff]  ;;  %v3457_v36 = vor.u32 %v3796_v26, %v3454_v27  ;;  %s4904_s3 = sshll.u32 %s4819_s1, 7 }
  0x52   : > { %v3702_v32 = vld [vmem:[#allocation5 + $0x1f8] sm:$0xf0]  ;;  %v3701_v37 = vor.u32 %v3843_v29, %v3700_v28  ;;  %v3588_v38 = vld [vmem:[#allocation5 + $0x1d0] sm:$0xf]  ;;  %v3826_v40 = vld [vmem:[#allocation5 + $0x1d4] sm:$0xf] }
  0x53   : > { %531 = vmatpush.bf16.msra.mxu0 %v3389_v4  ;;  %580 = vmatpush.bf16.msra.mxu1 %v3393_v5  ;;  %v3827_v39 = vld [vmem:[#allocation5 + $0x1ec] sm:$0xf0]  ;;  %v3705_v41 = vor.u32 %v3842_v31, %v3702_v32  ;;  %v3590_v42 = vld [vmem:[#allocation5 + $0x1f0] sm:$0xf0]  ;;  %v3692_v43 = vld [vmem:[#allocation5 + $0x198] sm:$0xf] }
  0x54   : > { %860 = vmatpush.bf16.msra.mxu2 %v3469_v6  ;;  %v3841_v44 = vld [vmem:[#allocation5 + $0x1b4] sm:$0xf0]  ;;  %v3840_v45 = vld [vmem:[#allocation5 + $0x19c] sm:$0xf]  ;;  %v3589_v47 = vor.u32 %v3827_v39, %v3588_v38  ;;  %v3593_v48 = vor.u32 %v3826_v40, %v3590_v42  ;;  %v3580_v50 = vld [vmem:[#allocation5 + $0x190] sm:$0xf] }
  0x55   : > { %909 = vmatpush.bf16.msra.mxu3 %v3473_v10  ;;  %v3694_v46 = vld [vmem:[#allocation5 + $0x1b8] sm:$0xf0]  ;;  %v3693_v49 = vor.u32 %v3841_v44, %v3692_v43  ;;  %v3825_v51 = vld [vmem:[#allocation5 + $0x1ac] sm:$0xf0]  ;;  %v3824_v53 = vld [vmem:[#allocation5 + $0x194] sm:$0xf] }
  0x56   : > { %v3697_v52 = vor.u32 %v3840_v45, %v3694_v46  ;;  %v3582_v54 = vld [vmem:[#allocation5 + $0x1b0] sm:$0xf0]  ;;  %v3581_v55 = vor.u32 %v3825_v51, %v3580_v50  ;;  %v3684_v56 = vld [vmem:[#allocation5 + $0x158] sm:$0xf]  ;;  %v3838_v58 = vld [vmem:[#allocation5 + $0x15c] sm:$0xf] }
  0x57   : > { %532 = vmatpush.bf16.msra.mxu0 %v3381_v16  ;;  %581 = vmatpush.bf16.msra.mxu1 %v3385_v18  ;;  %v3839_v57 = vld [vmem:[#allocation5 + $0x174] sm:$0xf0]  ;;  %v3585_v59 = vor.u32 %v3824_v53, %v3582_v54  ;;  %v3686_v61 = vld [vmem:[#allocation5 + $0x178] sm:$0xf0]  ;;  %v3572_v62 = vld [vmem:[#allocation5 + $0x150] sm:$0xf] }
  0x58   : > { %861 = vmatpush.bf16.msra.mxu2 %v3461_v19  ;;  %v3685_v60 = vor.u32 %v3839_v57, %v3684_v56  ;;  %v3823_v63 = vld [vmem:[#allocation5 + $0x16c] sm:$0xf0]  ;;  %v3689_v0 = vor.u32 %v3838_v58, %v3686_v61  ;;  %v3822_v1 = vld [vmem:[#allocation5 + $0x154] sm:$0xf]  ;;  %v4841_v5 = vld [vmem:[%s4823_s6 + $0x8] sm:$0xff]  ;;  %s4910_s4 = scalar_lea.vmem [#allocation8], %s4904_s3 }
  0x59   : > { %910 = vmatpush.bf16.msra.mxu3 %v3465_v23  ;;  %v3574_v2 = vld [vmem:[#allocation5 + $0x170] sm:$0xf0]  ;;  %v3573_v3 = vor.u32 %v3823_v63, %v3572_v62  ;;  %v3676_v6 = vld [vmem:[#allocation5 + $0x118] sm:$0xf]  ;;  %v3836_v8 = vld [vmem:[#allocation5 + $0x11c] sm:$0xf] }
  0x5a   : > { %v3577_v4 = vor.u32 %v3822_v1, %v3574_v2  ;;  %v3837_v7 = vld [vmem:[#allocation5 + $0x134] sm:$0xf0]  ;;  %v3678_v10 = vld [vmem:[#allocation5 + $0x138] sm:$0xf0]  ;;  %v3564_v11 = vld [vmem:[#allocation5 + $0x110] sm:$0xf] }
  0x5b   : > { %533 = vmatpush.bf16.msra.mxu0 %v3373_v30  ;;  %582 = vmatpush.bf16.msra.mxu1 %v3377_v33  ;;  %v3677_v9 = vor.u32 %v3837_v7, %v3676_v6  ;;  %v3821_v12 = vld [vmem:[#allocation5 + $0x12c] sm:$0xf0]  ;;  %v3681_v13 = vor.u32 %v3836_v8, %v3678_v10  ;;  %v3820_v15 = vld [vmem:[#allocation5 + $0x114] sm:$0xf]  ;;  %v3668_v19 = vld [vmem:[#allocation5 + $0xd8] sm:$0xf] }
  0x5c   : > { %862 = vmatpush.bf16.msra.mxu2 %v3453_v34  ;;  %v3565_v14 = vor.u32 %v3821_v12, %v3564_v11  ;;  %v3566_v16 = vld [vmem:[#allocation5 + $0x130] sm:$0xf0]  ;;  %v3835_v20 = vld [vmem:[#allocation5 + $0xf4] sm:$0xf0]  ;;  %v3834_v21 = vld [vmem:[#allocation5 + $0xdc] sm:$0xf] }
  0x5d   : > { %911 = vmatpush.bf16.msra.mxu3 %v3457_v36  ;;  %v3569_v17 = vor.u32 %v3820_v15, %v3566_v16  ;;  %v4848_v18 = vld [vmem:[%s4823_s6 + $0x10] sm:$0xff]  ;;  %v3669_v22 = vor.u32 %v3835_v20, %v3668_v19  ;;  %v3670_v23 = vld [vmem:[#allocation5 + $0xf8] sm:$0xf0]  ;;  %v3660_v32 = vld [vmem:[#allocation5 + $0x98] sm:$0xf]  ;;  %s4915_s21 = scalar_lea.vmem [#allocation9], %s4904_s3 }
  0x5e   : > { %534 = vmatmul.bf16.vlgmr.msra.gmra.mxu0 %v4834_v35  ;;  %583 = vmatmul.bf16.vlgmr.msra.gmra.mxu1 %v4834_v35  ;;  %v3556_v24 = vld [vmem:[#allocation5 + $0xd0] sm:$0xf]  ;;  %v3673_v26 = vor.u32 %v3834_v21, %v3670_v23  ;;  %v3818_v28 = vld [vmem:[#allocation5 + $0xd4] sm:$0xf]  ;;  %v4855_v31 = vld [vmem:[%s4823_s6 + $0x18] sm:$0xff]  ;;  %s5184_s30 = scalar_lea.vmem [#allocation11], %s4904_s3 }
  0x5f   : > { %863 = vmatmul.bf16.vlgmr.msra.gmra.mxu2 %v4834_v35  ;;  %1152 = vmatpush.bf16.msrb.mxu0 %v3589_v47  ;;  %v3819_v25 = vld [vmem:[#allocation5 + $0xec] sm:$0xf0]  ;;  %v3558_v29 = vld [vmem:[#allocation5 + $0xf0] sm:$0xf0]  ;;  %v3833_v33 = vld [vmem:[#allocation5 + $0xb4] sm:$0xf0] }
  0x60   : > { %2089 = vmatpush.bf16.msrb.mxu2 %v3701_v37  ;;  %912 = vmatmul.bf16.vlgmr.msra.gmra.mxu3 %v4834_v35  ;;  %v3557_v27 = vor.u32 %v3819_v25, %v3556_v24  ;;  %v3561_v30 = vor.u32 %v3818_v28, %v3558_v29  ;;  %v3832_v34 = vld [vmem:[#allocation5 + $0x9c] sm:$0xf]  ;;  %v3661_v36 = vor.u32 %v3833_v33, %v3660_v32  ;;  %v3548_v38 = vld [vmem:[#allocation5 + $0x90] sm:$0xf]  ;;  %v3816_v42 = vld [vmem:[#allocation5 + $0x94] sm:$0xf] }
  0x61   : > { %2138 = vmatpush.bf16.msrb.mxu3 %v3705_v41  ;;  %1201 = vmatpush.bf16.msrb.mxu1 %v3593_v48  ;;  %v3662_v37 = vld [vmem:[#allocation5 + $0xb8] sm:$0xf0]  ;;  %v3817_v39 = vld [vmem:[#allocation5 + $0xac] sm:$0xf0]  ;;  %v3550_v43 = vld [vmem:[#allocation5 + $0xb0] sm:$0xf0] }
  0x62   : > { %v3665_v40 = vor.u32 %v3832_v34, %v3662_v37  ;;  %v3549_v41 = vor.u32 %v3817_v39, %v3548_v38  ;;  %v3553_v44 = vor.u32 %v3816_v42, %v3550_v43  ;;  %v4862_v45 = vld [vmem:[%s4823_s6 + $0x20] sm:$0xff]  ;;  %v3652_v46 = vld [vmem:[#allocation5 + $0x58] sm:$0xf]  ;;  %v3830_v48 = vld [vmem:[#allocation5 + $0x5c] sm:$0xf]  ;;  %s5219_s7 = scalar_lea.vmem [#allocation12], %s4904_s3 }
  0x63   : > { %1153 = vmatpush.bf16.msrb.mxu0 %v3581_v55  ;;  %v3831_v47 = vld [vmem:[#allocation5 + $0x74] sm:$0xf0]  ;;  %v3654_v50 = vld [vmem:[#allocation5 + $0x78] sm:$0xf0]  ;;  %v3540_v51 = vld [vmem:[#allocation5 + $0x50] sm:$0xf] }
  0x64   : > { %2090 = vmatpush.bf16.msrb.mxu2 %v3693_v49  ;;  %v3653_v49 = vor.u32 %v3831_v47, %v3652_v46  ;;  %v3657_v53 = vor.u32 %v3830_v48, %v3654_v50  ;;  %v3814_v55 = vld [vmem:[#allocation5 + $0x54] sm:$0xf]  ;;  %v4869_v58 = vld [vmem:[%s4823_s6 + $0x28] sm:$0xff]  ;;  %v3828_v61 = vld [vmem:[#allocation5 + $0x1c] sm:$0xf]  ;;  %s2929_s12 = sand.u32 1, %s4742_s29  }
  0x65   : > { %2139 = vmatpush.bf16.msrb.mxu3 %v3697_v52  ;;  %1202 = vmatpush.bf16.msrb.mxu1 %v3585_v59  ;;  %v3815_v52 = vld [vmem:[#allocation5 + $0x6c] sm:$0xf0]  ;;  %v3542_v56 = vld [vmem:[#allocation5 + $0x70] sm:$0xf0]  ;;  %v3644_v59 = vld [vmem:[#allocation5 + $0x18] sm:$0xf] }
  0x66   : > { %v3541_v54 = vor.u32 %v3815_v52, %v3540_v51  ;;  %v3545_v57 = vor.u32 %v3814_v55, %v3542_v56  ;;  %v3646_v63 = vld [vmem:[#allocation5 + $0x38] sm:$0xf0]  ;;  %v3813_v1 = vld [vmem:[#allocation5 + $0x2c] sm:$0xf0]  ;;  %v3534_v6 = vld [vmem:[#allocation5 + $0x30] sm:$0xf0] }
  0x67   : > { %1154 = vmatpush.bf16.msrb.mxu0 %v3573_v3  ;;  %v3649_v2 = vor.u32 %v3828_v61, %v3646_v63  ;;  %v4876_v8 = vld [vmem:[%s4823_s6 + $0x30] sm:$0xff]  ;;  %v392_v10 = vld [vmem:[#allocation7] sm:$0x3]  ;;  %v769_v16 = vld [vmem:[#allocation7 + $0x2] sm:$0x3]  ;;  %s2925_s10 = scalar_lea.sflag [#allocation4], %s4819_s1 }
  0x68   : > { %2091 = vmatpush.bf16.msrb.mxu2 %v3685_v60  ;;  %v3829_v60 = vld [vmem:[#allocation5 + $0x34] sm:$0xf0]  ;;  %v4889_v11 = vperm.slane %v392_v10, 0  ;;  %v4891_v12 = vperm.slane %v392_v10, 1  ;;  %v4898_v21 = vperm.slane %v769_v16, 0  ;;  %s6478_s15 = scalar_lea.sflag [#allocation10], %s2929_s12 }
  0x69   : > { %2140 = vmatpush.bf16.msrb.mxu3 %v3689_v0  ;;  %1203 = vmatpush.bf16.msrb.mxu1 %v3577_v4  ;;  %v3645_v62 = vor.u32 %v3829_v60, %v3644_v59  ;;  %v3532_v0 = vld [vmem:[#allocation5 + $0x10] sm:$0xf]  ;;  %v3812_v4 = vld [vmem:[#allocation5 + $0x14] sm:$0xf]  ;;  %s2940_s14 = scalar_lea.sflag [#allocation13], %s4819_s1 }
  0x6a   : > { %v3533_v3 = vor.u32 %v3813_v1, %v3532_v0  ;;  %v3537_v7 = vor.u32 %v3812_v4, %v3534_v6 }
  0x6b   : > { %1155 = vmatpush.bf16.msrb.mxu0 %v3565_v14 }
  0x6c   : > { %2092 = vmatpush.bf16.msrb.mxu2 %v3677_v9  ;;  %v4883_v9 = vld [vmem:[%s4823_s6 + $0x38] sm:$0xff] }
  0x6d   : > { %2141 = vmatpush.bf16.msrb.mxu3 %v3681_v13  ;;  %1204 = vmatpush.bf16.msrb.mxu1 %v3569_v17 }
  0x6e   : > { %539 = vmatmul.bf16.gmra.mxu0 %v4841_v5  ;;  %588 = vmatmul.bf16.gmra.mxu1 %v4841_v5 }
  0x6f   : > { %868 = vmatmul.bf16.gmra.mxu2 %v4841_v5  ;;  %1156 = vmatpush.bf16.msrb.mxu0 %v3557_v27 }
  0x70   : > { %917 = vmatmul.bf16.gmra.mxu3 %v4841_v5  ;;  %2093 = vmatpush.bf16.msrb.mxu2 %v3669_v22  ;;  %v4901_v22 = vperm.slane %v769_v16, 1 }
  0x71   : > { %2142 = vmatpush.bf16.msrb.mxu3 %v3673_v26  ;;  %1205 = vmatpush.bf16.msrb.mxu1 %v3561_v30 }
  0x73   : > { %1157 = vmatpush.bf16.msrb.mxu0 %v3549_v41 }
  0x74   : > { %2094 = vmatpush.bf16.msrb.mxu2 %v3661_v36 }
  0x75   : > { %2143 = vmatpush.bf16.msrb.mxu3 %v3665_v40  ;;  %1206 = vmatpush.bf16.msrb.mxu1 %v3553_v44 }
  0x77   : > { %1158 = vmatpush.bf16.msrb.mxu0 %v3541_v54 }
  0x78   : > { %2095 = vmatpush.bf16.msrb.mxu2 %v3653_v49 }
  0x79   : > { %2144 = vmatpush.bf16.msrb.mxu3 %v3657_v53  ;;  %1207 = vmatpush.bf16.msrb.mxu1 %v3545_v57 }
  0x7b   : > { %1159 = vmatpush.bf16.msrb.mxu0 %v3533_v3 }
  0x7c   : > { %2096 = vmatpush.bf16.msrb.mxu2 %v3645_v62 }
  0x7d   : > { %2145 = vmatpush.bf16.msrb.mxu3 %v3649_v2  ;;  %1208 = vmatpush.bf16.msrb.mxu1 %v3537_v7 }
  0x7e   : > { %544 = vmatmul.bf16.gmra.mxu0 %v4848_v18  ;;  %593 = vmatmul.bf16.gmra.mxu1 %v4848_v18 }
  0x7f   : > { %873 = vmatmul.bf16.gmra.mxu2 %v4848_v18 }
  0x80   : > { %922 = vmatmul.bf16.gmra.mxu3 %v4848_v18 }
  0x8e   : > { %549 = vmatmul.bf16.gmra.mxu0 %v4855_v31  ;;  %598 = vmatmul.bf16.gmra.mxu1 %v4855_v31 }
  0x8f   : > { %878 = vmatmul.bf16.gmra.mxu2 %v4855_v31 }
  0x90   : > { %927 = vmatmul.bf16.gmra.mxu3 %v4855_v31 }
  0x9e   : > { %554 = vmatmul.bf16.gmra.mxu0 %v4862_v45  ;;  %603 = vmatmul.bf16.gmra.mxu1 %v4862_v45 }
  0x9f   : > { %883 = vmatmul.bf16.gmra.mxu2 %v4862_v45 }
  0xa0   : > { %932 = vmatmul.bf16.gmra.mxu3 %v4862_v45 }
  0xae   : > { %559 = vmatmul.bf16.gmra.mxu0 %v4869_v58  ;;  %608 = vmatmul.bf16.gmra.mxu1 %v4869_v58 }
  0xaf   : > { %888 = vmatmul.bf16.gmra.mxu2 %v4869_v58 }
  0xb0   : > { %937 = vmatmul.bf16.gmra.mxu3 %v4869_v58 }
  0xbe   : > { %564 = vmatmul.bf16.gmra.mxu0 %v4876_v8  ;;  %613 = vmatmul.bf16.gmra.mxu1 %v4876_v8 }
  0xbf   : > { %893 = vmatmul.bf16.gmra.mxu2 %v4876_v8 }
  0xc0   : > { %942 = vmatmul.bf16.gmra.mxu3 %v4876_v8 }
  0xce   : > { %569 = vmatmul.bf16.gmra.mxu0 %v4883_v9  ;;  %618 = vmatmul.bf16.gmra.mxu1 %v4883_v9 }
  0xcf   : > { %898 = vmatmul.bf16.gmra.mxu2 %v4883_v9 }
  0xd0   : > { %947 = vmatmul.bf16.gmra.mxu3 %v4883_v9 }
  0xdb   : > { %v535_v13 = vpop.f32.mrf.mxu0  ;;  %v584_v15 = vpop.f32.mrf.mxu1 }
  0xdc   : > { %v536_v14 = vadd.f32 %v535_v13, %v4889_v11  ;;  %v585_v17 = vadd.f32 %v584_v15, %v4891_v12 }
  0xde   : > { %v624_v19 = vmul.f32 0.088388346, %v536_v14  ;;  %1160 = vmatmul.bf16.vlgmr.msrb.gmra.mxu0 %v4834_v35  ;;  %v625_v20 = vmul.f32 0.088388346, %v585_v17  ;;  %1209 = vmatmul.bf16.vlgmr.msrb.gmra.mxu1 %v4834_v35 }
  0xdf   : > { %2097 = vmatmul.bf16.vlgmr.msrb.gmra.mxu2 %v4834_v35 }
  0xe0   : > { %2146 = vmatmul.bf16.vlgmr.msrb.gmra.mxu3 %v4834_v35  ;;  %v656_v23 = vpack.c.bf16 %v625_v20, %v624_v19 }
  0xe2   : > { %v864_v24 = vpop.f32.mrf.mxu2  ;;  %v704_v25 = vrot.slane %v656_v23, 4 }
  0xe3   : > { %v865_v26 = vadd.f32 %v864_v24, %v4898_v21  ;;  %v913_v27 = vpop.f32.mrf.mxu3  ;;  %v537_v28 = vpop.f32.mrf.mxu0 }
  0xe4   : > { %v914_v29 = vadd.f32 %v913_v27, %v4901_v22  ;;  %v538_v30 = vadd.f32 %v537_v28, %v4889_v11  ;;  %v586_v32 = vpop.f32.mrf.mxu1  ;;  %3434 = vst [vmem:[%s4910_s4 + $0x40] sm:$0xf] %v704_v25 }
  0xe5   : > { %v587_v35 = vadd.f32 %v586_v32, %v4891_v12 }
  0xe6   : > { %v953_v33 = vpack.c.bf16 %v914_v29, %v865_v26  ;;  %v626_v34 = vmul.f32 0.088388346, %v538_v30 }
  0xe7   : > { %v627_v36 = vmul.f32 0.088388346, %v587_v35 }
  0xe8   : > { %v1001_v37 = vrot.slane %v953_v33, 4  ;;  %v3847_v38 = vpack.c.bf16 %v626_v34, %v624_v19 }
  0xe9   : > { %v657_v39 = vpack.c.bf16 %v627_v36, %v626_v34 }
  0xea   : > { %3514 = vst [vmem:[%s4915_s21 + $0x40] sm:$0xf] %v1001_v37  ;;  %v866_v40 = vpop.f32.mrf.mxu2 }
  0xeb   : > { %3848 = vst [vmem:[%s4910_s4] sm:$0xff] %v3847_v38   ;;  %v705_v41 = vrot.slane %v657_v39, 4  ;;  %v867_v42 = vadd.f32 %v866_v40, %v4898_v21  ;;  %v915_v43 = vpop.f32.mrf.mxu3  ;;  %v540_v44 = vpop.f32.mrf.mxu0 }
  0xec   : > { %v916_v46 = vadd.f32 %v915_v43, %v4901_v22  ;;  %v541_v47 = vadd.f32 %v540_v44, %v4889_v11  ;;  %v589_v48 = vpop.f32.mrf.mxu1 }
  0xed   : > { %3435 = vst [vmem:[%s4910_s4 + $0x44] sm:$0xf] %v705_v41  ;;  %v3887_v49 = vpack.c.bf16 %v867_v42, %v865_v26  ;;  %v590_v50 = vadd.f32 %v589_v48, %v4891_v12 }
  0xee   : > { %v954_v51 = vpack.c.bf16 %v916_v46, %v867_v42  ;;  %v628_v52 = vmul.f32 0.088388346, %v541_v47  ;;  %1165 = vmatmul.bf16.gmra.mxu0 %v4841_v5  ;;  %1214 = vmatmul.bf16.gmra.mxu1 %v4841_v5 }
  0xef   : > { %3888 = vst [vmem:[%s4915_s21] sm:$0xff] %v3887_v49   ;;  %v629_v53 = vmul.f32 0.088388346, %v590_v50  ;;  %2102 = vmatmul.bf16.gmra.mxu2 %v4841_v5 }
  0xf0   : > { %v1002_v54 = vrot.slane %v954_v51, 4  ;;  %2151 = vmatmul.bf16.gmra.mxu3 %v4841_v5 }
  0xf1   : > { %v658_v55 = vpack.c.bf16 %v629_v53, %v628_v52 }
  0xf2   : > { %3515 = vst [vmem:[%s4915_s21 + $0x44] sm:$0xf] %v1002_v54  ;;  %v869_v56 = vpop.f32.mrf.mxu2 }
  0xf3   : > { %v706_v57 = vrot.slane %v658_v55, 4  ;;  %v870_v59 = vadd.f32 %v869_v56, %v4898_v21  ;;  %v918_v60 = vpop.f32.mrf.mxu3  ;;  %v542_v61 = vpop.f32.mrf.mxu0 }
  0xf4   : > { %v919_v62 = vadd.f32 %v918_v60, %v4901_v22  ;;  %v543_v63 = vadd.f32 %v542_v61, %v4889_v11  ;;  %v591_v0 = vpop.f32.mrf.mxu1 }
  0xf5   : > { %3436 = vst [vmem:[%s4910_s4 + $0x48] sm:$0xf] %v706_v57  ;;  %v592_v1 = vadd.f32 %v591_v0, %v4891_v12 }
  0xf6   : > { %v955_v2 = vpack.c.bf16 %v919_v62, %v870_v59  ;;  %v630_v5 = vmul.f32 0.088388346, %v543_v63 }
  0xf7   : > { %v631_v3 = vmul.f32 0.088388346, %v592_v1 }
  0xf8   : > { %v1003_v4 = vrot.slane %v955_v2, 4  ;;  %v3852_v6 = vpack.c.bf16 %v630_v5, %v628_v52 }
  0xf9   : > { %v659_v7 = vpack.c.bf16 %v631_v3, %v630_v5 }
  0xfa   : > { %3516 = vst [vmem:[%s4915_s21 + $0x48] sm:$0xf] %v1003_v4  ;;  %v871_v10 = vpop.f32.mrf.mxu2 }
  0xfb   : > { %4004 = vst [vmem:[%s4910_s4 + $0x8] sm:$0xff] %v3852_v6   ;;  %v707_v13 = vrot.slane %v659_v7, 4  ;;  %v872_v14 = vadd.f32 %v871_v10, %v4898_v21  ;;  %v920_v15 = vpop.f32.mrf.mxu3  ;;  %v545_v16 = vpop.f32.mrf.mxu0 }
  0xfc   : > { %v921_v17 = vadd.f32 %v920_v15, %v4901_v22  ;;  %v546_v19 = vadd.f32 %v545_v16, %v4889_v11  ;;  %v594_v20 = vpop.f32.mrf.mxu1 }
  0xfd   : > { %3437 = vst [vmem:[%s4910_s4 + $0x4c] sm:$0xf] %v707_v13  ;;  %v3892_v23 = vpack.c.bf16 %v872_v14, %v870_v59  ;;  %v595_v24 = vadd.f32 %v594_v20, %v4891_v12 }
  0xfe   : > { %v956_v25 = vpack.c.bf16 %v921_v17, %v872_v14  ;;  %v632_v26 = vmul.f32 0.088388346, %v546_v19  ;;  %1170 = vmatmul.bf16.gmra.mxu0 %v4848_v18  ;;  %1219 = vmatmul.bf16.gmra.mxu1 %v4848_v18 }
  0xff   : > { %4011 = vst [vmem:[%s4915_s21 + $0x8] sm:$0xff] %v3892_v23   ;;  %v633_v27 = vmul.f32 0.088388346, %v595_v24  ;;  %2107 = vmatmul.bf16.gmra.mxu2 %v4848_v18 }
 0x100   : > { %v1004_v28 = vrot.slane %v956_v25, 4  ;;  %2156 = vmatmul.bf16.gmra.mxu3 %v4848_v18 }
 0x101   : > { %v660_v29 = vpack.c.bf16 %v633_v27, %v632_v26 }
 0x102   : > { %3517 = vst [vmem:[%s4915_s21 + $0x4c] sm:$0xf] %v1004_v28  ;;  %v874_v30 = vpop.f32.mrf.mxu2 }
 0x103   : > { %v708_v32 = vrot.slane %v660_v29, 4  ;;  %v875_v35 = vadd.f32 %v874_v30, %v4898_v21  ;;  %v923_v33 = vpop.f32.mrf.mxu3  ;;  %v547_v34 = vpop.f32.mrf.mxu0 }
 0x104   : > { %v924_v36 = vadd.f32 %v923_v33, %v4901_v22  ;;  %v548_v37 = vadd.f32 %v547_v34, %v4889_v11  ;;  %v596_v38 = vpop.f32.mrf.mxu1 }
 0x105   : > { %3438 = vst [vmem:[%s4910_s4 + $0x50] sm:$0xf] %v708_v32  ;;  %v597_v39 = vadd.f32 %v596_v38, %v4891_v12 }
 0x106   : > { %v957_v40 = vpack.c.bf16 %v924_v36, %v875_v35  ;;  %v634_v18 = vmul.f32 0.088388346, %v548_v37 }
 0x107   : > { %v635_v41 = vmul.f32 0.088388346, %v597_v39 }
 0x108   : > { %v1005_v42 = vrot.slane %v957_v40, 4  ;;  %v3857_v43 = vpack.c.bf16 %v634_v18, %v632_v26 }
 0x109   : > { %v661_v44 = vpack.c.bf16 %v635_v41, %v634_v18 }
 0x10a   : > { %3518 = vst [vmem:[%s4915_s21 + $0x50] sm:$0xf] %v1005_v42  ;;  %v876_v46 = vpop.f32.mrf.mxu2 }
 0x10b   : > { %4005 = vst [vmem:[%s4910_s4 + $0x10] sm:$0xff] %v3857_v43   ;;  %v709_v47 = vrot.slane %v661_v44, 4  ;;  %v877_v48 = vadd.f32 %v876_v46, %v4898_v21  ;;  %v925_v49 = vpop.f32.mrf.mxu3  ;;  %v550_v50 = vpop.f32.mrf.mxu0 }
 0x10c   : > { %v926_v51 = vadd.f32 %v925_v49, %v4901_v22  ;;  %v551_v52 = vadd.f32 %v550_v50, %v4889_v11  ;;  %v599_v53 = vpop.f32.mrf.mxu1 }
 0x10d   : > { %3439 = vst [vmem:[%s4910_s4 + $0x54] sm:$0xf] %v709_v47  ;;  %v3897_v54 = vpack.c.bf16 %v877_v48, %v875_v35  ;;  %v600_v55 = vadd.f32 %v599_v53, %v4891_v12 }
 0x10e   : > { %v958_v56 = vpack.c.bf16 %v926_v51, %v877_v48  ;;  %v636_v57 = vmul.f32 0.088388346, %v551_v52  ;;  %1175 = vmatmul.bf16.gmra.mxu0 %v4855_v31  ;;  %1224 = vmatmul.bf16.gmra.mxu1 %v4855_v31 }
 0x10f   : > { %4012 = vst [vmem:[%s4915_s21 + $0x10] sm:$0xff] %v3897_v54   ;;  %v637_v59 = vmul.f32 0.088388346, %v600_v55  ;;  %2112 = vmatmul.bf16.gmra.mxu2 %v4855_v31 }
 0x110   : > { %v1006_v60 = vrot.slane %v958_v56, 4  ;;  %2161 = vmatmul.bf16.gmra.mxu3 %v4855_v31 }
 0x111   : > { %v662_v61 = vpack.c.bf16 %v637_v59, %v636_v57 }
 0x112   : > { %3519 = vst [vmem:[%s4915_s21 + $0x54] sm:$0xf] %v1006_v60  ;;  %v879_v62 = vpop.f32.mrf.mxu2 }
 0x113   : > { %v710_v63 = vrot.slane %v662_v61, 4  ;;  %v880_v0 = vadd.f32 %v879_v62, %v4898_v21  ;;  %v928_v1 = vpop.f32.mrf.mxu3  ;;  %v552_v2 = vpop.f32.mrf.mxu0 }
 0x114   : > { %v929_v5 = vadd.f32 %v928_v1, %v4901_v22  ;;  %v553_v3 = vadd.f32 %v552_v2, %v4889_v11  ;;  %v601_v4 = vpop.f32.mrf.mxu1 }
 0x115   : > { %3440 = vst [vmem:[%s4910_s4 + $0x58] sm:$0xf] %v710_v63  ;;  %v602_v6 = vadd.f32 %v601_v4, %v4891_v12 }
 0x116   : > { %v959_v7 = vpack.c.bf16 %v929_v5, %v880_v0  ;;  %v638_v31 = vmul.f32 0.088388346, %v553_v3 }
 0x117   : > { %v639_v10 = vmul.f32 0.088388346, %v602_v6 }
 0x118   : > { %v1007_v13 = vrot.slane %v959_v7, 4  ;;  %v3862_v14 = vpack.c.bf16 %v638_v31, %v636_v57 }
 0x119   : > { %v663_v15 = vpack.c.bf16 %v639_v10, %v638_v31 }
 0x11a   : > { %3520 = vst [vmem:[%s4915_s21 + $0x58] sm:$0xf] %v1007_v13  ;;  %v881_v16 = vpop.f32.mrf.mxu2 }
 0x11b   : > { %4006 = vst [vmem:[%s4910_s4 + $0x18] sm:$0xff] %v3862_v14   ;;  %v711_v17 = vrot.slane %v663_v15, 4  ;;  %v882_v19 = vadd.f32 %v881_v16, %v4898_v21  ;;  %v930_v20 = vpop.f32.mrf.mxu3  ;;  %v555_v23 = vpop.f32.mrf.mxu0 }
 0x11c   : > { %v931_v24 = vadd.f32 %v930_v20, %v4901_v22  ;;  %v556_v25 = vadd.f32 %v555_v23, %v4889_v11  ;;  %v604_v26 = vpop.f32.mrf.mxu1 }
 0x11d   : > { %3441 = vst [vmem:[%s4910_s4 + $0x5c] sm:$0xf] %v711_v17  ;;  %v3902_v27 = vpack.c.bf16 %v882_v19, %v880_v0  ;;  %v605_v28 = vadd.f32 %v604_v26, %v4891_v12 }
 0x11e   : > { %v960_v29 = vpack.c.bf16 %v931_v24, %v882_v19  ;;  %v640_v30 = vmul.f32 0.088388346, %v556_v25  ;;  %1180 = vmatmul.bf16.gmra.mxu0 %v4862_v45  ;;  %1229 = vmatmul.bf16.gmra.mxu1 %v4862_v45 }
 0x11f   : > { %4013 = vst [vmem:[%s4915_s21 + $0x18] sm:$0xff] %v3902_v27   ;;  %v641_v32 = vmul.f32 0.088388346, %v605_v28  ;;  %2117 = vmatmul.bf16.gmra.mxu2 %v4862_v45 }
 0x120   : > { %v1008_v35 = vrot.slane %v960_v29, 4  ;;  %2166 = vmatmul.bf16.gmra.mxu3 %v4862_v45 }
 0x121   : > { %v664_v33 = vpack.c.bf16 %v641_v32, %v640_v30 }
 0x122   : > { %3521 = vst [vmem:[%s4915_s21 + $0x5c] sm:$0xf] %v1008_v35  ;;  %v884_v34 = vpop.f32.mrf.mxu2 }
 0x123   : > { %v712_v36 = vrot.slane %v664_v33, 4  ;;  %v885_v37 = vadd.f32 %v884_v34, %v4898_v21  ;;  %v933_v38 = vpop.f32.mrf.mxu3  ;;  %v557_v39 = vpop.f32.mrf.mxu0 }
 0x124   : > { %v934_v40 = vadd.f32 %v933_v38, %v4901_v22  ;;  %v558_v18 = vadd.f32 %v557_v39, %v4889_v11  ;;  %v606_v41 = vpop.f32.mrf.mxu1 }
 0x125   : > { %3442 = vst [vmem:[%s4910_s4 + $0x60] sm:$0xf] %v712_v36  ;;  %v607_v42 = vadd.f32 %v606_v41, %v4891_v12 }
 0x126   : > { %v961_v43 = vpack.c.bf16 %v934_v40, %v885_v37  ;;  %v642_v45 = vmul.f32 0.088388346, %v558_v18 }
 0x127   : > { %v643_v44 = vmul.f32 0.088388346, %v607_v42 }
 0x128   : > { %v1009_v46 = vrot.slane %v961_v43, 4  ;;  %v3867_v47 = vpack.c.bf16 %v642_v45, %v640_v30 }
 0x129   : > { %v665_v48 = vpack.c.bf16 %v643_v44, %v642_v45 }
 0x12a   : > { %3522 = vst [vmem:[%s4915_s21 + $0x60] sm:$0xf] %v1009_v46  ;;  %v886_v49 = vpop.f32.mrf.mxu2 }
 0x12b   : > { %4007 = vst [vmem:[%s4910_s4 + $0x20] sm:$0xff] %v3867_v47   ;;  %v713_v50 = vrot.slane %v665_v48, 4  ;;  %v887_v51 = vadd.f32 %v886_v49, %v4898_v21  ;;  %v935_v52 = vpop.f32.mrf.mxu3  ;;  %v560_v53 = vpop.f32.mrf.mxu0 }
 0x12c   : > { %v936_v54 = vadd.f32 %v935_v52, %v4901_v22  ;;  %v561_v55 = vadd.f32 %v560_v53, %v4889_v11  ;;  %v609_v56 = vpop.f32.mrf.mxu1 }
 0x12d   : > { %3443 = vst [vmem:[%s4910_s4 + $0x64] sm:$0xf] %v713_v50  ;;  %v3907_v57 = vpack.c.bf16 %v887_v51, %v885_v37  ;;  %v610_v59 = vadd.f32 %v609_v56, %v4891_v12 }
 0x12e   : > { %v962_v60 = vpack.c.bf16 %v936_v54, %v887_v51  ;;  %v644_v61 = vmul.f32 0.088388346, %v561_v55  ;;  %1185 = vmatmul.bf16.gmra.mxu0 %v4869_v58  ;;  %1234 = vmatmul.bf16.gmra.mxu1 %v4869_v58 }
 0x12f   : > { %4014 = vst [vmem:[%s4915_s21 + $0x20] sm:$0xff] %v3907_v57   ;;  %v645_v62 = vmul.f32 0.088388346, %v610_v59  ;;  %2122 = vmatmul.bf16.gmra.mxu2 %v4869_v58 }
 0x130   : > { %v1010_v63 = vrot.slane %v962_v60, 4  ;;  %2171 = vmatmul.bf16.gmra.mxu3 %v4869_v58 }
 0x131   : > { %v666_v0 = vpack.c.bf16 %v645_v62, %v644_v61 }
 0x132   : > { %3523 = vst [vmem:[%s4915_s21 + $0x64] sm:$0xf] %v1010_v63  ;;  %v889_v1 = vpop.f32.mrf.mxu2 }
 0x133   : > { %v714_v2 = vrot.slane %v666_v0, 4  ;;  %v890_v5 = vadd.f32 %v889_v1, %v4898_v21  ;;  %v938_v3 = vpop.f32.mrf.mxu3  ;;  %v562_v4 = vpop.f32.mrf.mxu0 }
 0x134   : > { %v939_v6 = vadd.f32 %v938_v3, %v4901_v22  ;;  %v563_v7 = vadd.f32 %v562_v4, %v4889_v11  ;;  %v611_v31 = vpop.f32.mrf.mxu1 }
 0x135   : > { %3444 = vst [vmem:[%s4910_s4 + $0x68] sm:$0xf] %v714_v2  ;;  %v612_v10 = vadd.f32 %v611_v31, %v4891_v12 }
 0x136   : > { %v963_v13 = vpack.c.bf16 %v939_v6, %v890_v5  ;;  %v646_v58 = vmul.f32 0.088388346, %v563_v7 }
 0x137   : > { %v647_v14 = vmul.f32 0.088388346, %v612_v10 }
 0x138   : > { %v1011_v15 = vrot.slane %v963_v13, 4  ;;  %v3872_v16 = vpack.c.bf16 %v646_v58, %v644_v61 }
 0x139   : > { %v667_v17 = vpack.c.bf16 %v647_v14, %v646_v58  ;;  %v1066_v58 = vld [vmem:[#allocation7 + $0x4] sm:$0x3] }
 0x13a   : > { %3524 = vst [vmem:[%s4915_s21 + $0x68] sm:$0xf] %v1011_v15  ;;  %v891_v19 = vpop.f32.mrf.mxu2 }
 0x13b   : > { %4008 = vst [vmem:[%s4910_s4 + $0x28] sm:$0xff] %v3872_v16   ;;  %v715_v20 = vrot.slane %v667_v17, 4  ;;  %v892_v23 = vadd.f32 %v891_v19, %v4898_v21  ;;  %v940_v24 = vpop.f32.mrf.mxu3  ;;  %v565_v25 = vpop.f32.mrf.mxu0  ;;  %v5043_v19 = vperm.slane %v1066_v58, 0 }
 0x13c   : > { %v941_v26 = vadd.f32 %v940_v24, %v4901_v22  ;;  %v566_v27 = vadd.f32 %v565_v25, %v4889_v11  ;;  %v614_v28 = vpop.f32.mrf.mxu1 }
 0x13d   : > { %3445 = vst [vmem:[%s4910_s4 + $0x6c] sm:$0xf] %v715_v20  ;;  %v3912_v29 = vpack.c.bf16 %v892_v23, %v890_v5  ;;  %v615_v30 = vadd.f32 %v614_v28, %v4891_v12 }
 0x13e   : > { %v964_v32 = vpack.c.bf16 %v941_v26, %v892_v23  ;;  %v648_v35 = vmul.f32 0.088388346, %v566_v27  ;;  %1190 = vmatmul.bf16.gmra.mxu0 %v4876_v8  ;;  %1239 = vmatmul.bf16.gmra.mxu1 %v4876_v8  ;;  %v5045_v23 = vperm.slane %v1066_v58, 1 }
 0x13f   : > { %4015 = vst [vmem:[%s4915_s21 + $0x28] sm:$0xff] %v3912_v29   ;;  %v649_v33 = vmul.f32 0.088388346, %v615_v30  ;;  %2127 = vmatmul.bf16.gmra.mxu2 %v4876_v8  ;;  %v2003_v30 = vld [vmem:[#allocation7 + $0x6] sm:$0x3] }
 0x140   : > { %v1012_v34 = vrot.slane %v964_v32, 4  ;;  %2176 = vmatmul.bf16.gmra.mxu3 %v4876_v8 }
 0x141   : > { %v668_v36 = vpack.c.bf16 %v649_v33, %v648_v35 }
 0x142   : > { %3525 = vst [vmem:[%s4915_s21 + $0x6c] sm:$0xf] %v1012_v34  ;;  %v894_v37 = vpop.f32.mrf.mxu2 }
 0x143   : > { %v716_v38 = vrot.slane %v668_v36, 4  ;;  %v895_v39 = vadd.f32 %v894_v37, %v4898_v21  ;;  %v943_v40 = vpop.f32.mrf.mxu3  ;;  %v567_v18 = vpop.f32.mrf.mxu0  ;;  %v5061_v36 = vperm.slane %v2003_v30, 0  ;;  %v5063_v37 = vperm.slane %v2003_v30, 1 }
 0x144   : > { %v944_v41 = vadd.f32 %v943_v40, %v4901_v22  ;;  %v568_v42 = vadd.f32 %v567_v18, %v4889_v11  ;;  %v616_v43 = vpop.f32.mrf.mxu1 }
 0x145   : > { %3446 = vst [vmem:[%s4910_s4 + $0x70] sm:$0xf] %v716_v38  ;;  %v617_v45 = vadd.f32 %v616_v43, %v4891_v12 }
 0x146   : > { %v965_v44 = vpack.c.bf16 %v944_v41, %v895_v39  ;;  %v650_v8 = vmul.f32 0.088388346, %v568_v42 }
 0x147   : > { %v651_v46 = vmul.f32 0.088388346, %v617_v45 }
 0x148   : > { %v1013_v47 = vrot.slane %v965_v44, 4  ;;  %v3877_v48 = vpack.c.bf16 %v650_v8, %v648_v35 }
 0x149   : > { %v669_v49 = vpack.c.bf16 %v651_v46, %v650_v8 }
 0x14a   : > { %3526 = vst [vmem:[%s4915_s21 + $0x70] sm:$0xf] %v1013_v47  ;;  %v896_v50 = vpop.f32.mrf.mxu2 }
 0x14b   : > { %4009 = vst [vmem:[%s4910_s4 + $0x30] sm:$0xff] %v3877_v48   ;;  %v717_v51 = vrot.slane %v669_v49, 4  ;;  %v897_v52 = vadd.f32 %v896_v50, %v4898_v21  ;;  %v945_v53 = vpop.f32.mrf.mxu3  ;;  %v570_v54 = vpop.f32.mrf.mxu0 }
 0x14c   : > { %v946_v55 = vadd.f32 %v945_v53, %v4901_v22  ;;  %v571_v56 = vadd.f32 %v570_v54, %v4889_v11  ;;  %v619_v57 = vpop.f32.mrf.mxu1 }
 0x14d   : > { %3447 = vst [vmem:[%s4910_s4 + $0x74] sm:$0xf] %v717_v51  ;;  %v3917_v59 = vpack.c.bf16 %v897_v52, %v895_v39  ;;  %v620_v60 = vadd.f32 %v619_v57, %v4891_v12 }
 0x14e   : > { %v966_v61 = vpack.c.bf16 %v946_v55, %v897_v52  ;;  %v652_v62 = vmul.f32 0.088388346, %v571_v56  ;;  %1195 = vmatmul.bf16.gmra.mxu0 %v4883_v9  ;;  %1244 = vmatmul.bf16.gmra.mxu1 %v4883_v9 }
 0x14f   : > { %4016 = vst [vmem:[%s4915_s21 + $0x30] sm:$0xff] %v3917_v59   ;;  %v653_v63 = vmul.f32 0.088388346, %v620_v60  ;;  %2132 = vmatmul.bf16.gmra.mxu2 %v4883_v9 }
 0x150   : > { %v1014_v0 = vrot.slane %v966_v61, 4  ;;  %2181 = vmatmul.bf16.gmra.mxu3 %v4883_v9 }
 0x151   : > { %v670_v1 = vpack.c.bf16 %v653_v63, %v652_v62 }
 0x152   : > { %3527 = vst [vmem:[%s4915_s21 + $0x74] sm:$0xf] %v1014_v0  ;;  %v899_v2 = vpop.f32.mrf.mxu2 }
 0x153   : > { %v718_v5 = vrot.slane %v670_v1, 4  ;;  %v900_v3 = vadd.f32 %v899_v2, %v4898_v21  ;;  %v948_v4 = vpop.f32.mrf.mxu3  ;;  %v572_v6 = vpop.f32.mrf.mxu0 }
 0x154   : > { %v949_v7 = vadd.f32 %v948_v4, %v4901_v22  ;;  %v573_v31 = vadd.f32 %v572_v6, %v4889_v11  ;;  %v621_v10 = vpop.f32.mrf.mxu1 }
 0x155   : > { %3448 = vst [vmem:[%s4910_s4 + $0x78] sm:$0xf] %v718_v5  ;;  %v622_v13 = vadd.f32 %v621_v10, %v4891_v12 }
 0x156   : > { %v967_v9 = vpack.c.bf16 %v949_v7, %v900_v3  ;;  %v654_v14 = vmul.f32 0.088388346, %v573_v31 }
 0x157   : > { %v655_v15 = vmul.f32 0.088388346, %v622_v13 }
 0x158   : > { %v1015_v16 = vrot.slane %v967_v9, 4  ;;  %v3882_v17 = vpack.c.bf16 %v654_v14, %v652_v62 }
 0x159   : > { %v671_v20 = vpack.c.bf16 %v655_v15, %v654_v14 }
 0x15a   : > { %3528 = vst [vmem:[%s4915_s21 + $0x78] sm:$0xf] %v1015_v16  ;;  %v901_v24 = vpop.f32.mrf.mxu2 }
 0x15b   : > { %4010 = vst [vmem:[%s4910_s4 + $0x38] sm:$0xff] %v3882_v17   ;;  %v719_v11 = vrot.slane %v671_v20, 4  ;;  %v902_v25 = vadd.f32 %v901_v24, %v4898_v21  ;;  %v950_v12 = vpop.f32.mrf.mxu3  ;;  %v1161_v26 = vpop.f32.mrf.mxu0 }
 0x15c   : > { %v951_v27 = vadd.f32 %v950_v12, %v4901_v22  ;;  %v5052_v28 = vadd.f32 %v1161_v26, %v5043_v19  ;;  %v1210_v29 = vpop.f32.mrf.mxu1 }
 0x15d   : > { %3449 = vst [vmem:[%s4910_s4 + $0x7c] sm:$0xf] %v719_v11  ;;  %v3922_v32 = vpack.c.bf16 %v902_v25, %v900_v3  ;;  %v5056_v35 = vadd.f32 %v1210_v29, %v5045_v23 }
 0x15e   : > { %v968_v33 = vpack.c.bf16 %v951_v27, %v902_v25  ;;  %v3594_v34 = vmul.f32 -1.442695, %v5052_v28 }
 0x15f   : > { %4017 = vst [vmem:[%s4915_s21 + $0x38] sm:$0xff] %v3922_v32   ;;  %v3595_v21 = vmul.f32 -1.442695, %v5056_v35 }
 0x160   : > { %v1016_v22 = vrot.slane %v968_v33, 4  ;;  %4202 = vpow2.f32 %v3594_v34 }
 0x161   : > { %4204 = vpow2.f32 %v3595_v21 }
 0x162   : > { %3529 = vst [vmem:[%s4915_s21 + $0x7c] sm:$0xf] %v1016_v22  ;;  %v2098_v38 = vpop.f32.mrf.mxu2 }
 0x163   : > { %v5067_v39 = vadd.f32 %v2098_v38, %v5061_v36  ;;  %v2147_v40 = vpop.f32.mrf.mxu3  ;;  %v1163_v18 = vpop.f32.mrf.mxu0 }
 0x164   : > { %v5070_v41 = vadd.f32 %v2147_v40, %v5063_v37  ;;  %v5073_v42 = vadd.f32 %v1163_v18, %v5043_v19  ;;  %v1212_v43 = vpop.f32.mrf.mxu1 }
 0x165   : > { %v3706_v45 = vmul.f32 -1.442695, %v5067_v39  ;;  %v5077_v44 = vadd.f32 %v1212_v43, %v5045_v23 }
 0x166   : > { %v4203_v8 = vpop.eup %4202  ;;  %v3707_v46 = vmul.f32 -1.442695, %v5070_v41  ;;  %v3596_v49 = vmul.f32 -1.442695, %v5073_v42 }
 0x167   : > { %v4205_v47 = vpop.eup %4204  ;;  %v1346_v48 = vadd.f32 1.0, %v4203_v8  ;;  %4206 = vpow2.f32 %v3706_v45  ;;  %v3597_v51 = vmul.f32 -1.442695, %v5077_v44 }
 0x168   : > { %v5081_v50 = vadd.f32 1.0, %v4205_v47  ;;  %4208 = vpow2.f32 %v3707_v46 }
 0x169   : > { %4210 = vrcp.f32 %v1346_v48  ;;  %v1387_v55 = vand.u32 2147483647, %v1346_v48  ;;  %v1389_v56 = vand.u32 2147483648, %v1346_v48  ;;  %vm1383_vm0 = vweird.f32 %v1346_v48 }
 0x16a   : > { %4212 = vrcp.f32 %v5081_v50  ;;  %v2100_v52 = vpop.f32.mrf.mxu2  ;;  %v1402_v60 = vand.u32 2147483647, %v5081_v50  ;;  %v1404_v0 = vand.u32 2147483648, %v5081_v50  ;;  %vm1398_vm1 = vweird.f32 %v5081_v50 }
 0x16b   : > { %4214 = vpow2.f32 %v3596_v49  ;;  %v5086_v53 = vadd.f32 %v2100_v52, %v5061_v36  ;;  %v2149_v54 = vpop.f32.mrf.mxu3  ;;  %v1166_v57 = vpop.f32.mrf.mxu0  ;;  %vm5102_vm2 = vcmp.eq.f32.partialorder %v1387_v55, 8.507059e+37  ;;  %v1390_v10 = vor.u32 1.1754944e-38, %v1389_v56 }
 0x16c   : > { %4216 = vpow2.f32 %v3597_v51  ;;  %v5091_v62 = vadd.f32 %v2149_v54, %v5063_v37  ;;  %v5100_v3 = vadd.f32 %v1166_v57, %v5043_v19  ;;  %v1215_v4 = vpop.f32.mrf.mxu1  ;;  %vm5108_vm3 = vcmp.eq.f32.partialorder %v1402_v60, 8.507059e+37 }
 0x16d   : > { %v4207_v59 = vpop.eup %4206  ;;  %v3708_v61 = vmul.f32 -1.442695, %v5086_v53  ;;  %v1405_v17 = vor.u32 1.1754944e-38, %v1404_v0  ;;  %v5115_v20 = vadd.f32 %v1215_v4, %v5045_v23 }
 0x16e   : > { %v4209_v63 = vpop.eup %4208  ;;  %v5094_v1 = vadd.f32 1.0, %v4207_v59  ;;  %v3709_v14 = vmul.f32 -1.442695, %v5091_v62  ;;  %v3598_v25 = vmul.f32 -1.442695, %v5100_v3 }
 0x16f   : > { %v4211_v2 = vpop.eup %4210  ;;  %v5097_v5 = vadd.f32 1.0, %v4209_v63  ;;  %v5128_v22 = vmul.f32 -1.442695, %v5115_v20 }
 0x170   : > { %v4213_v6 = vpop.eup %4212  ;;  %v1379_v7 = vmul.f32 %v4211_v2, %v1346_v48  ;;  %4218 = vrcp.f32 %v5094_v1  ;;  %vm1384_vm4 = vweird.f32 %v4211_v2  ;;  %v2324_v11 = vand.u32 2147483647, %v5094_v1 }
 0x171   : > { %v4215_v13 = vpop.eup %4214  ;;  %v1394_v58 = vmul.f32 %v4213_v6, %v5081_v50  ;;  %4220 = vpow2.f32 %v3708_v61  ;;  %v2326_v26 = vand.u32 2147483648, %v5094_v1  ;;  %vm1399_vm5 = vweird.f32 %v4213_v6  ;;  %vm1385_vm6 = vmor %vm1383_vm0, %vm1384_vm4 }
 0x172   : > { %v4217_v15 = vpop.eup %4216  ;;  %v1380_v16 = vsub.f32 1.0, %v1379_v7  ;;  %4222 = vrcp.f32 %v5097_v5  ;;  %v5120_v27 = vadd.f32 1.0, %v4215_v13  ;;  %v2339_v32 = vand.u32 2147483647, %v5097_v5  ;;  %v2103_v43 = vpop.f32.mrf.mxu2  ;;  %vm1400_vm9 = vmor %vm1398_vm1, %vm1399_vm5 }
 0x173   : > { %v1395_v24 = vsub.f32 1.0, %v1394_v58  ;;  %v5122_v29 = vadd.f32 1.0, %v4217_v15  ;;  %4224 = vpow2.f32 %v3709_v14  ;;  %v2341_v21 = vand.u32 2147483648, %v5097_v5  ;;  %v2152_v46 = vpop.f32.mrf.mxu3 }
 0x174   : > { %v1381_v12 = vmul.f32 %v4211_v2, %v1380_v16  ;;  %4226 = vrcp.f32 %v5120_v27  ;;  %vm2320_vm7 = vweird.f32 %v5094_v1  ;;  %vm2335_vm8 = vweird.f32 %v5097_v5 }
 0x175   : > { %v1396_v30 = vmul.f32 %v4213_v6, %v1395_v24  ;;  %vm5138_vm10 = vcmp.eq.f32.partialorder %v2324_v11, 8.507059e+37  ;;  %v2327_v47 = vor.u32 1.1754944e-38, %v2326_v26  ;;  %4228 = vrcp.f32 %v5122_v29 }
 0x176   : > { %v4219_v33 = vpop.eup %4218  ;;  %v1382_v34 = vadd.f32 %v4211_v2, %v1381_v12  ;;  %vm5146_vm11 = vcmp.eq.f32.partialorder %v2339_v32, 8.507059e+37  ;;  %v2342_v56 = vor.u32 1.1754944e-38, %v2341_v21  ;;  %v5156_v57 = vadd.f32 %v2103_v43, %v5061_v36 }
 0x177   : > { %v4221_v38 = vpop.eup %4220  ;;  %v1397_v40 = vadd.f32 %v4213_v6, %v1396_v30  ;;  %v2316_v18 = vmul.f32 %v4219_v33, %v5094_v1  ;;  %vm2321_vm12 = vweird.f32 %v4219_v33  ;;  %vm1413_vm13 = vweird.f32 %v5120_v27 }
 0x178   : > { %v4223_v45 = vpop.eup %4222  ;;  %v1386_v8 = vsel %vm1385_vm6, %v4211_v2, %v1382_v34  ;;  %v5161_v2 = vadd.f32 1.0, %v4221_v38  ;;  %4230 = vpow2.f32 %v3598_v25  ;;  %vm2322_vm15 = vmor %vm2320_vm7, %vm2321_vm12  ;;  %v1432_v13 = vand.u32 2147483647, %v5122_v29 }
 0x179   : > { %v1391_v48 = vsel %vm5102_vm2, %v1390_v10, %v1386_v8  ;;  %v1401_v49 = vsel %vm1400_vm9, %v4213_v6, %v1397_v40  ;;  %v2317_v51 = vsub.f32 1.0, %v2316_v18  ;;  %v2331_v52 = vmul.f32 %v4223_v45, %v5097_v5  ;;  %v4225_v59 = vpop.eup %4224 }
 0x17a   : > { %v5151_v50 = vmul.f32 %v1391_v48, %v5052_v28  ;;  %v1406_v55 = vsel %vm5108_vm3, %v1405_v17, %v1401_v49  ;;  %v4227_v0 = vpop.eup %4226  ;;  %vm2336_vm14 = vweird.f32 %v4223_v45  ;;  %v1417_v28 = vand.u32 2147483647, %v5120_v27 }
 0x17b   : > { %v1859_v60 = vmul.f32 %v1406_v55, %v5056_v35  ;;  %v2318_v61 = vmul.f32 %v4219_v33, %v2317_v51  ;;  %v2332_v63 = vsub.f32 1.0, %v2331_v52  ;;  %v1409_v31 = vmul.f32 %v4227_v0, %v5120_v27  ;;  %v4229_v35 = vpop.eup %4228  ;;  %vm2337_vm0 = vmor %vm2335_vm8, %vm2336_vm14 }
 0x17c   : > { %v1419_v10 = vand.u32 2147483648, %v5120_v27  ;;  %4232 = vrcp.f32 %v5161_v2  ;;  %v5170_v58 = vadd.f32 1.0, %v4225_v59  ;;  %vm5177_vm1 = vcmp.eq.f32.partialorder %v1417_v28, 8.507059e+37 }
 0x17d   : > { %v1890_v4 = vpack.c.bf16 %v1859_v60, %v5151_v50  ;;  %v2319_v6 = vadd.f32 %v4219_v33, %v2318_v61  ;;  %v2333_v7 = vmul.f32 %v4223_v45, %v2332_v63  ;;  %v1410_v16 = vsub.f32 1.0, %v1409_v31 }
 0x17e   : > { %v1424_v24 = vmul.f32 %v4229_v35, %v5122_v29  ;;  %v1434_v11 = vand.u32 2147483648, %v5122_v29  ;;  %vm1414_vm2 = vweird.f32 %v4227_v0  ;;  %v4231_v5 = vpop.eup %4230  ;;  %vm1428_vm3 = vweird.f32 %v5122_v29 }
 0x17f   : > { %v1938_v9 = vrot.slane %v1890_v4, 4  ;;  %v2323_v14 = vsel %vm2322_vm15, %v4219_v33, %v2319_v6  ;;  %v2334_v15 = vadd.f32 %v4223_v45, %v2333_v7  ;;  %v1411_v26 = vmul.f32 %v4227_v0, %v1410_v16  ;;  %vm1415_vm5 = vmor %vm1413_vm13, %vm1414_vm2 }
 0x180   : > { %v2328_v17 = vsel %vm5138_vm10, %v2327_v47, %v2323_v14  ;;  %v1425_v32 = vsub.f32 1.0, %v1424_v24  ;;  %4234 = vrcp.f32 %v5170_v58  ;;  %v1420_v21 = vor.u32 1.1754944e-38, %v1419_v10  ;;  %v1217_v14 = vpop.f32.mrf.mxu1 }
 0x181   : > { %3626 = vst [vmem:[%s5184_s30 + $0x40] sm:$0xf] %v1938_v9  ;;  %v5188_v25 = vmul.f32 %v2328_v17, %v5067_v39  ;;  %v2338_v12 = vsel %vm2337_vm0, %v4223_v45, %v2334_v15  ;;  %v1412_v34 = vadd.f32 %v4227_v0, %v1411_v26  ;;  %vm5195_vm4 = vcmp.eq.f32.partialorder %v1432_v13, 8.507059e+37 }
 0x182   : > { %v2343_v30 = vsel %vm5146_vm11, %v2342_v56, %v2338_v12  ;;  %v4233_v39 = vpop.eup %4232  ;;  %v1426_v40 = vmul.f32 %v4229_v35, %v1425_v32  ;;  %vm1429_vm6 = vweird.f32 %v4229_v35  ;;  %v1435_v18 = vor.u32 1.1754944e-38, %v1434_v11 }
 0x183   : > { %v2796_v33 = vmul.f32 %v2343_v30, %v5070_v41  ;;  %vm2350_vm7 = vweird.f32 %v5161_v2  ;;  %v1416_v45 = vsel %vm1415_vm5, %v4227_v0, %v1412_v34  ;;  %v2346_v41 = vmul.f32 %v4233_v39, %v5161_v2  ;;  %vm1430_vm9 = vmor %vm1428_vm3, %vm1429_vm6  ;;  %v1168_v0 = vpop.f32.mrf.mxu0 }
 0x184   : > { %v2354_v8 = vand.u32 2147483647, %v5161_v2  ;;  %v1421_v47 = vsel %vm5177_vm1, %v1420_v21, %v1416_v45  ;;  %v1427_v48 = vadd.f32 %v4229_v35, %v1426_v40  ;;  %vm2351_vm8 = vweird.f32 %v4233_v39  ;;  %v2105_v21 = vpop.f32.mrf.mxu2 }
 0x185   : > { %v2827_v43 = vpack.c.bf16 %v2796_v33, %v5188_v25  ;;  %v2356_v27 = vand.u32 2147483648, %v5161_v2  ;;  %v1860_v51 = vmul.f32 %v1421_v47, %v5073_v42  ;;  %v2347_v52 = vsub.f32 1.0, %v2346_v41  ;;  %vm2352_vm12 = vmor %vm2350_vm7, %vm2351_vm8 }
 0x186   : > { %v5211_v54 = vadd.f32 1.0, %v4231_v5  ;;  %v4235_v55 = vpop.eup %4234  ;;  %v1431_v56 = vsel %vm1430_vm9, %v4229_v35, %v1427_v48  ;;  %4236 = vpow2.f32 %v5128_v22  ;;  %v3710_v59 = vmul.f32 -1.442695, %v5156_v57 }
 0x187   : > { %v2875_v49 = vrot.slane %v2827_v43, 4  ;;  %v5216_v60 = vadd.f32 %v2152_v46, %v5063_v37  ;;  %v3927_v42 = vpack.c.bf16 %v1860_v51, %v5151_v50  ;;  %v1436_v29 = vsel %vm5195_vm4, %v1435_v18, %v1431_v56  ;;  %v2154_v43 = vpop.f32.mrf.mxu3 }
 0x188   : > { %v2348_v61 = vmul.f32 %v4233_v39, %v2347_v52  ;;  %v2361_v63 = vmul.f32 %v4235_v55, %v5170_v58  ;;  %v1861_v22 = vmul.f32 %v1436_v29, %v5077_v44  ;;  %vm5227_vm10 = vcmp.eq.f32.partialorder %v2354_v8, 8.507059e+37  ;;  %v1220_v29 = vpop.f32.mrf.mxu1 }
 0x189   : > { %3738 = vst [vmem:[%s5219_s7 + $0x40] sm:$0xf] %v2875_v49  ;;  %vm2365_vm11 = vweird.f32 %v5170_v58  ;;  %4238 = vrcp.f32 %v5211_v54  ;;  %v2357_v50 = vor.u32 1.1754944e-38, %v2356_v27  ;;  %v2371_v7 = vand.u32 2147483648, %v5170_v58 }
 0x18a   : > { %3928 = vst [vmem:[%s5184_s30] sm:$0xff] %v3927_v42   ;;  %v2349_v4 = vadd.f32 %v4233_v39, %v2348_v61  ;;  %v2362_v6 = vsub.f32 1.0, %v2361_v63  ;;  %v1891_v31 = vpack.c.bf16 %v1861_v22, %v1860_v51  ;;  %4240 = vpow2.f32 %v3710_v59 }
 0x18b   : > { %v3711_v44 = vmul.f32 -1.442695, %v5216_v60  ;;  %v5240_v35 = vadd.f32 %v1168_v0, %v5043_v19  ;;  %vm2366_vm13 = vweird.f32 %v4235_v55  ;;  %v2369_v9 = vand.u32 2147483647, %v5170_v58 }
 0x18c   : > { %v2353_v10 = vsel %vm2352_vm12, %v4233_v39, %v2349_v4  ;;  %v2363_v13 = vmul.f32 %v4235_v55, %v2362_v6  ;;  %v4237_v15 = vpop.eup %4236  ;;  %v1939_v16 = vrot.slane %v1891_v31, 4  ;;  %v2372_v11 = vor.u32 1.1754944e-38, %v2371_v7  ;;  %vm2367_vm14 = vmor %vm2365_vm11, %vm2366_vm13 }
 0x18d   : > { %v2358_v17 = vsel %vm5227_vm10, %v2357_v50, %v2353_v10  ;;  %4242 = vpow2.f32 %v3711_v44  ;;  %v3600_v2 = vmul.f32 -1.442695, %v5240_v35  ;;  %v5247_v12 = vadd.f32 1.0, %v4237_v15 }
 0x18e   : > { %v2797_v1 = vmul.f32 %v2358_v17, %v5086_v53  ;;  %v2364_v24 = vadd.f32 %v4235_v55, %v2363_v13  ;;  %3627 = vst [vmem:[%s5184_s30 + $0x44] sm:$0xf] %v1939_v16  ;;  %v1447_v5 = vand.u32 2147483647, %v5211_v54  ;;  %v1449_v30 = vand.u32 2147483648, %v5211_v54 }
 0x18f   : > { %v4239_v26 = vpop.eup %4238  ;;  %4244 = vpow2.f32 %v3600_v2  ;;  %v5255_v32 = vadd.f32 %v1217_v14, %v5045_v23  ;;  %vm2370_vm15 = vcmp.eq.f32.partialorder %v2369_v9, 8.507059e+37  ;;  %vm1443_vm0 = vweird.f32 %v5211_v54 }
 0x190   : > { %v3967_v53 = vpack.c.bf16 %v2797_v1, %v5188_v25  ;;  %v2368_v33 = vsel %vm2367_vm14, %v4235_v55, %v2364_v24  ;;  %v1439_v34 = vmul.f32 %v4239_v26, %v5211_v54  ;;  %v4241_v38 = vpop.eup %4240  ;;  %4246 = vrcp.f32 %v5247_v12 }
 0x191   : > { %v2373_v39 = vsel %vm2370_vm15, %v2372_v11, %v2368_v33  ;;  %v5263_v18 = vadd.f32 1.0, %v4241_v38  ;;  %vm5265_vm1 = vcmp.eq.f32.partialorder %v1447_v5, 8.507059e+37  ;;  %v1450_v41 = vor.u32 1.1754944e-38, %v1449_v30 }
 0x192   : > { %3968 = vst [vmem:[%s5219_s7] sm:$0xff] %v3967_v53   ;;  %v2798_v58 = vmul.f32 %v2373_v39, %v5091_v62  ;;  %v1440_v40 = vsub.f32 1.0, %v1439_v34  ;;  %v3601_v8 = vmul.f32 -1.442695, %v5255_v32  ;;  %v5271_v46 = vadd.f32 %v2105_v21, %v5061_v36  ;;  %v1171_v62 = vpop.f32.mrf.mxu0 }
 0x193   : > { %v4243_v45 = vpop.eup %4242  ;;  %vm1444_vm2 = vweird.f32 %v4239_v26  ;;  %4248 = vrcp.f32 %v5263_v18  ;;  %v1462_v49 = vand.u32 2147483647, %v5247_v12  ;;  %v1464_v51 = vand.u32 2147483648, %v5247_v12 }
 0x194   : > { %v2828_v47 = vpack.c.bf16 %v2798_v58, %v2797_v1  ;;  %v1441_v48 = vmul.f32 %v4239_v26, %v1440_v40  ;;  %v5276_v52 = vadd.f32 1.0, %v4243_v45  ;;  %v5279_v55 = vadd.f32 %v2154_v43, %v5063_v37  ;;  %vm5285_vm3 = vmor %vm1443_vm0, %vm1444_vm2 }
 0x195   : > { %v4245_v27 = vpop.eup %4244  ;;  %4250 = vpow2.f32 %v3601_v8  ;;  %v2384_v0 = vand.u32 2147483647, %v5263_v18  ;;  %v2386_v22 = vand.u32 2147483648, %v5263_v18  ;;  %v5293_v28 = vadd.f32 %v1171_v62, %v5043_v19 }
 0x196   : > { %v2876_v56 = vrot.slane %v2828_v47, 4  ;;  %v1442_v59 = vadd.f32 %v4239_v26, %v1441_v48  ;;  %v5281_v42 = vadd.f32 1.0, %v4245_v27  ;;  %v4247_v61 = vpop.eup %4246  ;;  %4252 = vrcp.f32 %v5276_v52 }
 0x197   : > { %v1454_v50 = vmul.f32 %v4247_v61, %v5247_v12  ;;  %vm1458_vm4 = vweird.f32 %v5247_v12  ;;  %v3712_v54 = vmul.f32 -1.442695, %v5271_v46  ;;  %vm5301_vm5 = vcmp.eq.f32.partialorder %v1462_v49, 8.507059e+37 }
 0x198   : > { %3739 = vst [vmem:[%s5219_s7 + $0x44] sm:$0xf] %v2876_v56  ;;  %v1446_v4 = vsel %vm5285_vm3, %v4239_v26, %v1442_v59  ;;  %v1465_v7 = vor.u32 1.1754944e-38, %v1464_v51  ;;  %4254 = vrcp.f32 %v5281_v42  ;;  %v5307_v31 = vadd.f32 %v1220_v29, %v5045_v23 }
 0x199   : > { %v4249_v44 = vpop.eup %4248  ;;  %v1451_v10 = vsel %vm5265_vm1, %v1450_v41, %v1446_v4  ;;  %v1455_v13 = vsub.f32 1.0, %v1454_v50  ;;  %vm2380_vm6 = vweird.f32 %v5263_v18  ;;  %v2399_v9 = vand.u32 2147483647, %v5276_v52 }
 0x19a   : > { %vm1459_vm7 = vweird.f32 %v4247_v61  ;;  %v2376_v14 = vmul.f32 %v4249_v44, %v5263_v18  ;;  %vm5314_vm8 = vcmp.eq.f32.partialorder %v2384_v0, 8.507059e+37  ;;  %v2387_v16 = vor.u32 1.1754944e-38, %v2386_v22 }
 0x19b   : > { %v4251_v17 = vpop.eup %4250  ;;  %v1456_v2 = vmul.f32 %v4247_v61, %v1455_v13  ;;  %v2401_v1 = vand.u32 2147483648, %v5276_v52  ;;  %4256 = vpow2.f32 %v3712_v54  ;;  %v3713_v24 = vmul.f32 -1.442695, %v5279_v55  ;;  %vm1460_vm12 = vmor %vm1458_vm4, %vm1459_vm7 }
 0x19c   : > { %v4253_v11 = vpop.eup %4252  ;;  %v5321_v26 = vmul.f32 %v1451_v10, %v5100_v3  ;;  %v2377_v5 = vsub.f32 1.0, %v2376_v14  ;;  %vm2395_vm9 = vweird.f32 %v5276_v52  ;;  %v5324_v30 = vadd.f32 1.0, %v4251_v17 }
 0x19d   : > { %v1457_v53 = vadd.f32 %v4247_v61, %v1456_v2  ;;  %v2391_v33 = vmul.f32 %v4253_v11, %v5276_v52  ;;  %vm5327_vm10 = vcmp.eq.f32.partialorder %v2399_v9, 8.507059e+37  ;;  %vm1473_vm11 = vweird.f32 %v5281_v42 }
 0x19e   : > { %4258 = vpow2.f32 %v3713_v24  ;;  %v3602_v21 = vmul.f32 -1.442695, %v5293_v28  ;;  %v4255_v38 = vpop.eup %4254  ;;  %v2378_v3 = vmul.f32 %v4249_v44, %v2377_v5  ;;  %vm2381_vm13 = vweird.f32 %v4249_v44 }
 0x19f   : > { %v1477_v39 = vand.u32 2147483647, %v5281_v42  ;;  %4260 = vrcp.f32 %v5324_v30  ;;  %v1461_v58 = vsel %vm1460_vm12, %v4247_v61, %v1457_v53  ;;  %v2392_v40 = vsub.f32 1.0, %v2391_v33  ;;  %vm2382_vm15 = vmor %vm2380_vm6, %vm2381_vm13  ;;  %v2157_v53 = vpop.f32.mrf.mxu3 }
 0x1a0   : > { %v2402_v43 = vor.u32 1.1754944e-38, %v2401_v1  ;;  %v1469_v45 = vmul.f32 %v4255_v38, %v5281_v42  ;;  %v1466_v25 = vsel %vm5301_vm5, %v1465_v7, %v1461_v58  ;;  %v2379_v41 = vadd.f32 %v4249_v44, %v2378_v3 }
 0x1a1   : > { %vm2396_vm14 = vweird.f32 %v4253_v11  ;;  %v1479_v8 = vand.u32 2147483648, %v5281_v42  ;;  %v4257_v12 = vpop.eup %4256  ;;  %v1863_v47 = vmul.f32 %v1466_v25, %v5115_v20  ;;  %v2393_v48 = vmul.f32 %v4253_v11, %v2392_v40 }
 0x1a2   : > { %v1470_v62 = vsub.f32 1.0, %v1469_v45  ;;  %4262 = vpow2.f32 %v3602_v21  ;;  %v2383_v27 = vsel %vm2382_vm15, %v4249_v44, %v2379_v41  ;;  %vm1474_vm0 = vweird.f32 %v4255_v38  ;;  %vm2397_vm2 = vmor %vm2395_vm9, %vm2396_vm14 }
 0x1a3   : > { %vm5345_vm1 = vcmp.eq.f32.partialorder %v1477_v39, 8.507059e+37  ;;  %v5349_v51 = vadd.f32 1.0, %v4257_v12  ;;  %v1892_v59 = vpack.c.bf16 %v1863_v47, %v5321_v26  ;;  %v2388_v20 = vsel %vm5314_vm8, %v2387_v16, %v2383_v27  ;;  %vm1475_vm3 = vmor %vm1473_vm11, %vm1474_vm0  ;;  %v1173_v47 = vpop.f32.mrf.mxu0 }
 0x1a4   : > { %v4259_v56 = vpop.eup %4258  ;;  %v2394_v29 = vadd.f32 %v4253_v11, %v2393_v48  ;;  %v1471_v18 = vmul.f32 %v4255_v38, %v1470_v62  ;;  %v5355_v63 = vmul.f32 %v2388_v20, %v5156_v57  ;;  %v1480_v0 = vor.u32 1.1754944e-38, %v1479_v8 }
 0x1a5   : > { %v4261_v61 = vpop.eup %4260  ;;  %4264 = vrcp.f32 %v5349_v51  ;;  %v3603_v22 = vmul.f32 -1.442695, %v5307_v31  ;;  %v1940_v4 = vrot.slane %v1892_v59, 4  ;;  %v1492_v57 = vand.u32 2147483647, %v5324_v30 }
 0x1a6   : > { %v2398_v50 = vsel %vm2397_vm2, %v4253_v11, %v2394_v29  ;;  %v1472_v54 = vadd.f32 %v4255_v38, %v1471_v18  ;;  %v1484_v6 = vmul.f32 %v4261_v61, %v5324_v30  ;;  %v1494_v52 = vand.u32 2147483648, %v5324_v30 }
 0x1a7   : > { %v2403_v7 = vsel %vm5327_vm10, %v2402_v43, %v2398_v50  ;;  %v2414_v44 = vand.u32 2147483647, %v5349_v51  ;;  %3628 = vst [vmem:[%s5184_s30 + $0x48] sm:$0xf] %v1940_v4  ;;  %v5373_v15 = vadd.f32 1.0, %v4259_v56  ;;  %vm1489_vm4 = vweird.f32 %v4261_v61 }
 0x1a8   : > { %v4263_v10 = vpop.eup %4262  ;;  %v2800_v13 = vmul.f32 %v2403_v7, %v5216_v60  ;;  %v1476_v9 = vsel %vm1475_vm3, %v4255_v38, %v1472_v54  ;;  %v1485_v14 = vsub.f32 1.0, %v1484_v6  ;;  %4266 = vpow2.f32 %v3603_v22  ;;  %v2108_v60 = vpop.f32.mrf.mxu2 }
 0x1a9   : > { %v1481_v16 = vsel %vm5345_vm1, %v1480_v0, %v1476_v9  ;;  %v5377_v42 = vadd.f32 1.0, %v4263_v10  ;;  %4268 = vrcp.f32 %v5373_v15  ;;  %vm1488_vm5 = vweird.f32 %v5324_v30  ;;  %v1222_v6 = vpop.f32.mrf.mxu1 }
 0x1aa   : > { %v2829_v17 = vpack.c.bf16 %v2800_v13, %v5355_v63  ;;  %v1864_v2 = vmul.f32 %v1481_v16, %v5240_v35  ;;  %v1486_v1 = vmul.f32 %v4261_v61, %v1485_v14  ;;  %v2416_v11 = vand.u32 2147483648, %v5349_v51  ;;  %vm1490_vm6 = vmor %vm1488_vm5, %vm1489_vm4 }
 0x1ab   : > { %v4265_v24 = vpop.eup %4264  ;;  %v2431_v5 = vand.u32 2147483648, %v5373_v15  ;;  %4270 = vrcp.f32 %v5377_v42  ;;  %vm1493_vm7 = vcmp.eq.f32.partialorder %v1492_v57, 8.507059e+37  ;;  %v1495_v38 = vor.u32 1.1754944e-38, %v1494_v52  ;;  %v2159_v52 = vpop.f32.mrf.mxu3 }
 0x1ac   : > { %v2877_v33 = vrot.slane %v2829_v17, 4  ;;  %v3932_v34 = vpack.c.bf16 %v1864_v2, %v5321_v26  ;;  %v1487_v35 = vadd.f32 %v4261_v61, %v1486_v1  ;;  %v2406_v21 = vmul.f32 %v4265_v24, %v5349_v51 }
 0x1ad   : > { %v2429_v30 = vand.u32 2147483647, %v5373_v15  ;;  %vm2410_vm8 = vweird.f32 %v5349_v51  ;;  %vm5392_vm9 = vcmp.eq.f32.partialorder %v2414_v44, 8.507059e+37  ;;  %v2417_v43 = vor.u32 1.1754944e-38, %v2416_v11 }
 0x1ae   : > { %3740 = vst [vmem:[%s5219_s7 + $0x48] sm:$0xf] %v2877_v33  ;;  %v1491_v3 = vsel %vm1490_vm6, %v4261_v61, %v1487_v35  ;;  %v2407_v39 = vsub.f32 1.0, %v2406_v21  ;;  %v4267_v40 = vpop.eup %4266  ;;  %vm2425_vm10 = vweird.f32 %v5373_v15  ;;  %v5399_v45 = vadd.f32 %v2108_v60, %v5061_v36 }
 0x1af   : > { %4018 = vst [vmem:[%s5184_s30 + $0x8] sm:$0xff] %v3932_v34   ;;  %v1496_v26 = vsel %vm1493_vm7, %v1495_v38, %v1491_v3  ;;  %v4269_v25 = vpop.eup %4268  ;;  %vm2411_vm11 = vweird.f32 %v4265_v24  ;;  %v2432_v12 = vor.u32 1.1754944e-38, %v2431_v5  ;;  %vm5405_vm12 = vcmp.eq.f32.partialorder %v2429_v30, 8.507059e+37 }
 0x1b0   : > { %v1865_v41 = vmul.f32 %v1496_v26, %v5255_v32  ;;  %v2408_v8 = vmul.f32 %v4265_v24, %v2407_v39  ;;  %v2421_v62 = vmul.f32 %v4269_v25, %v5373_v15  ;;  %vm1503_vm13 = vweird.f32 %v5377_v42  ;;  %vm2412_vm14 = vmor %vm2410_vm8, %vm2411_vm11  ;;  %v2110_v7 = vpop.f32.mrf.mxu2  ;;  %v1176_v39 = vpop.f32.mrf.mxu0 }
 0x1b1   : > { %v5402_v48 = vpop.eup %4270  ;;  %v5410_v49 = vadd.f32 1.0, %v4267_v40  ;;  %v3714_v56 = vmul.f32 -1.442695, %v5399_v45  ;;  %v5416_v29 = vadd.f32 %v2157_v53, %v5063_v37  ;;  %v1507_v61 = vand.u32 2147483647, %v5377_v42 }
 0x1b2   : > { %v1893_v59 = vpack.c.bf16 %v1865_v41, %v1864_v2  ;;  %v2409_v32 = vadd.f32 %v4265_v24, %v2408_v8  ;;  %v1499_v20 = vmul.f32 %v5402_v48, %v5377_v42  ;;  %v2422_v18 = vsub.f32 1.0, %v2421_v62 }
 0x1b3   : > { %4272 = vrcp.f32 %v5410_v49  ;;  %v5423_v0 = vadd.f32 %v1173_v47, %v5043_v19  ;;  %v1509_v54 = vand.u32 2147483648, %v5377_v42  ;;  %vm2426_vm15 = vweird.f32 %v4269_v25  ;;  %v1225_v47 = vpop.f32.mrf.mxu1 }
 0x1b4   : > { %v1941_v22 = vrot.slane %v1893_v59, 4  ;;  %v2413_v4 = vsel %vm2412_vm14, %v4265_v24, %v2409_v32  ;;  %v1500_v50 = vsub.f32 1.0, %v1499_v20  ;;  %v2423_v57 = vmul.f32 %v4269_v25, %v2422_v18  ;;  %vm2427_vm1 = vmor %vm2425_vm10, %vm2426_vm15 }
 0x1b5   : > { %v2418_v51 = vsel %vm5392_vm9, %v2417_v43, %v2413_v4  ;;  %4274 = vpow2.f32 %v3714_v56  ;;  %vm1504_vm0 = vweird.f32 %v5402_v48  ;;  %v3715_v13 = vmul.f32 -1.442695, %v5416_v29 }
 0x1b6   : > { %3629 = vst [vmem:[%s5184_s30 + $0x4c] sm:$0xf] %v1941_v22  ;;  %v2801_v44 = vmul.f32 %v2418_v51, %v5271_v46  ;;  %v1501_v10 = vmul.f32 %v5402_v48, %v1500_v50  ;;  %v2424_v9 = vadd.f32 %v4269_v25, %v2423_v57  ;;  %v3604_v14 = vmul.f32 -1.442695, %v5423_v0  ;;  %vm5456_vm2 = vmor %vm1503_vm13, %vm1504_vm0 }
 0x1b7   : > { %v5435_v16 = vadd.f32 %v1222_v6, %v5045_v23  ;;  %v5438_v17 = vadd.f32 %v2110_v7, %v5061_v36  ;;  %4276 = vpow2.f32 %v3715_v13  ;;  %v5445_v1 = vadd.f32 %v2159_v52, %v5063_v37 }
 0x1b8   : > { %v3972_v2 = vpack.c.bf16 %v2801_v44, %v5355_v63  ;;  %v1502_v46 = vadd.f32 %v5402_v48, %v1501_v10  ;;  %v2428_v24 = vsel %vm2427_vm1, %v4269_v25, %v2424_v9  ;;  %4278 = vpow2.f32 %v3604_v14 }
 0x1b9   : > { %v4273_v60 = vpop.eup %4272  ;;  %v3605_v11 = vmul.f32 -1.442695, %v5435_v16  ;;  %v3716_v5 = vmul.f32 -1.442695, %v5438_v17  ;;  %v2433_v63 = vsel %vm5405_vm12, %v2432_v12, %v2428_v24  ;;  %v1510_v53 = vor.u32 1.1754944e-38, %v1509_v54 }
 0x1ba   : > { %4025 = vst [vmem:[%s5219_s7 + $0x8] sm:$0xff] %v3972_v2   ;;  %v1514_v33 = vmul.f32 %v4273_v60, %v5410_v49  ;;  %v2802_v35 = vmul.f32 %v2433_v63, %v5279_v55  ;;  %v1506_v21 = vsel %vm5456_vm2, %v5402_v48, %v1502_v46  ;;  %v1522_v38 = vand.u32 2147483647, %v5410_v49 }
 0x1bb   : > { %v4275_v34 = vpop.eup %4274  ;;  %4280 = vpow2.f32 %v3605_v11  ;;  %v3717_v42 = vmul.f32 -1.442695, %v5445_v1  ;;  %vm1508_vm3 = vcmp.eq.f32.partialorder %v1507_v61, 8.507059e+37  ;;  %vm1518_vm4 = vweird.f32 %v5410_v49 }
 0x1bc   : > { %v1515_v30 = vsub.f32 1.0, %v1514_v33  ;;  %v5466_v3 = vadd.f32 1.0, %v4275_v34  ;;  %4282 = vpow2.f32 %v3716_v5  ;;  %v2830_v58 = vpack.c.bf16 %v2802_v35, %v2801_v44 }
 0x1bd   : > { %v1524_v55 = vand.u32 2147483648, %v5410_v49  ;;  %v4277_v40 = vpop.eup %4276  ;;  %v1511_v26 = vsel %vm1508_vm3, %v1510_v53, %v1506_v21  ;;  %vm1519_vm5 = vweird.f32 %v4273_v60  ;;  %v5475_v12 = vadd.f32 %v1176_v39, %v5043_v19 }
 0x1be   : > { %v1516_v43 = vmul.f32 %v4273_v60, %v1515_v30  ;;  %4284 = vrcp.f32 %v5466_v3  ;;  %v4279_v25 = vpop.eup %4278  ;;  %v2878_v41 = vrot.slane %v2830_v58, 4  ;;  %v5472_v8 = vadd.f32 1.0, %v4277_v40  ;;  %vm1520_vm7 = vmor %vm1518_vm4, %vm1519_vm5 }
 0x1bf   : > { %vm1523_vm6 = vcmp.eq.f32.partialorder %v1522_v38, 8.507059e+37  ;;  %v5477_v62 = vadd.f32 1.0, %v4279_v25  ;;  %4286 = vpow2.f32 %v3717_v42  ;;  %v5481_v56 = vmul.f32 %v1511_v26, %v5293_v28 }
 0x1c0   : > { %v1517_v48 = vadd.f32 %v4273_v60, %v1516_v43  ;;  %3741 = vst [vmem:[%s5219_s7 + $0x4c] sm:$0xf] %v2878_v41  ;;  %v1525_v59 = vor.u32 1.1754944e-38, %v1524_v55  ;;  %v2444_v32 = vand.u32 2147483647, %v5466_v3  ;;  %4288 = vrcp.f32 %v5472_v8 }
 0x1c1   : > { %v4281_v27 = vpop.eup %4280  ;;  %v2446_v61 = vand.u32 2147483648, %v5466_v3  ;;  %4290 = vrcp.f32 %v5477_v62  ;;  %v5490_v22 = vadd.f32 %v1225_v47, %v5045_v23  ;;  %vm2440_vm8 = vweird.f32 %v5466_v3 }
 0x1c2   : > { %v4283_v20 = vpop.eup %4282  ;;  %v1521_v18 = vsel %vm1520_vm7, %v4273_v60, %v1517_v48  ;;  %v2459_v28 = vand.u32 2147483647, %v5472_v8  ;;  %v3606_v49 = vmul.f32 -1.442695, %v5475_v12  ;;  %v2461_v6 = vand.u32 2147483648, %v5472_v8 }
 0x1c3   : > { %v1526_v4 = vsel %vm1523_vm6, %v1525_v59, %v1521_v18  ;;  %v5497_v7 = vadd.f32 1.0, %v4281_v27  ;;  %v5499_v51 = vadd.f32 1.0, %v4283_v20  ;;  %vm5502_vm9 = vcmp.eq.f32.partialorder %v2444_v32, 8.507059e+37 }
 0x1c4   : > { %v4285_v50 = vpop.eup %4284  ;;  %v1867_v54 = vmul.f32 %v1526_v4, %v5307_v31  ;;  %v1537_v44 = vand.u32 2147483647, %v5477_v62  ;;  %v1539_v10 = vand.u32 2147483648, %v5477_v62  ;;  %v2447_v31 = vor.u32 1.1754944e-38, %v2446_v61 }
 0x1c5   : > { %v2436_v57 = vmul.f32 %v4285_v50, %v5466_v3  ;;  %v4287_v13 = vpop.eup %4286  ;;  %4292 = vrcp.f32 %v5497_v7  ;;  %v3607_v14 = vmul.f32 -1.442695, %v5490_v22  ;;  %vm2455_vm10 = vweird.f32 %v5472_v8 }
 0x1c6   : > { %v1894_v9 = vpack.c.bf16 %v1867_v54, %v5481_v56  ;;  %v4289_v2 = vpop.eup %4288  ;;  %vm1533_vm11 = vweird.f32 %v5477_v62  ;;  %4294 = vrcp.f32 %v5499_v51  ;;  %vm2441_vm12 = vweird.f32 %v4285_v50 }
 0x1c7   : > { %v2437_v46 = vsub.f32 1.0, %v2436_v57  ;;  %v4291_v60 = vpop.eup %4290  ;;  %v2451_v11 = vmul.f32 %v4289_v2, %v5472_v8  ;;  %vm5515_vm13 = vcmp.eq.f32.partialorder %v2459_v28, 8.507059e+37  ;;  %v2462_v63 = vor.u32 1.1754944e-38, %v2461_v6  ;;  %vm2442_vm0 = vmor %vm2440_vm8, %vm2441_vm12  ;;  %v2113_v8 = vpop.f32.mrf.mxu2 }
 0x1c8   : > { %v1942_v24 = vrot.slane %v1894_v9, 4  ;;  %v1529_v53 = vmul.f32 %v4291_v60, %v5477_v62  ;;  %vm5520_vm14 = vcmp.eq.f32.partialorder %v1537_v44, 8.507059e+37  ;;  %v1540_v34 = vor.u32 1.1754944e-38, %v1539_v10  ;;  %v2162_v9 = vpop.f32.mrf.mxu3 }
 0x1c9   : > { %v2438_v15 = vmul.f32 %v4285_v50, %v2437_v46  ;;  %v1552_v35 = vand.u32 2147483647, %v5497_v7  ;;  %v2452_v21 = vsub.f32 1.0, %v2451_v11  ;;  %v1554_v38 = vand.u32 2147483648, %v5497_v7  ;;  %v1178_v11 = vpop.f32.mrf.mxu0 }
 0x1ca   : > { %3630 = vst [vmem:[%s5184_s30 + $0x50] sm:$0xf] %v1942_v24  ;;  %v2474_v30 = vand.u32 2147483647, %v5499_v51  ;;  %4296 = vpow2.f32 %v3606_v49  ;;  %v1530_v39 = vsub.f32 1.0, %v1529_v53  ;;  %vm1548_vm15 = vweird.f32 %v5497_v7 }
 0x1cb   : > { %v2439_v42 = vadd.f32 %v4285_v50, %v2438_v15  ;;  %v5529_v58 = vadd.f32 1.0, %v4287_v13  ;;  %4298 = vpow2.f32 %v3607_v14  ;;  %v4293_v55 = vpop.eup %4292  ;;  %v2453_v40 = vmul.f32 %v4289_v2, %v2452_v21 }
 0x1cc   : > { %vm2456_vm1 = vweird.f32 %v4289_v2  ;;  %vm2470_vm2 = vweird.f32 %v5499_v51  ;;  %v2476_v26 = vand.u32 2147483648, %v5499_v51  ;;  %v4295_v43 = vpop.eup %4294  ;;  %v1531_v41 = vmul.f32 %v4291_v60, %v1530_v39  ;;  %v1227_v39 = vpop.f32.mrf.mxu1 }
 0x1cd   : > { %v2443_v25 = vsel %vm2442_vm0, %v4285_v50, %v2439_v42  ;;  %vm1534_vm3 = vweird.f32 %v4291_v60  ;;  %v1544_v47 = vmul.f32 %v4293_v55, %v5497_v7  ;;  %vm5537_vm4 = vcmp.eq.f32.partialorder %v1552_v35, 8.507059e+37  ;;  %vm2457_vm5 = vmor %vm2455_vm10, %vm2456_vm1 }
 0x1ce   : > { %v2448_v3 = vsel %vm5502_vm9, %v2447_v31, %v2443_v25  ;;  %v2454_v27 = vadd.f32 %v4289_v2, %v2453_v40  ;;  %v1555_v59 = vor.u32 1.1754944e-38, %v1554_v38  ;;  %v2466_v32 = vmul.f32 %v4295_v43, %v5499_v51  ;;  %vm1535_vm7 = vmor %vm1533_vm11, %vm1534_vm3 }
 0x1cf   : > { %v1532_v20 = vadd.f32 %v4291_v60, %v1531_v41  ;;  %v1545_v18 = vsub.f32 1.0, %v1544_v47  ;;  %vm5546_vm6 = vcmp.eq.f32.partialorder %v2474_v30, 8.507059e+37  ;;  %4300 = vrcp.f32 %v5529_v58 }
 0x1d0   : > { %v4297_v4 = vpop.eup %4296  ;;  %v2803_v28 = vmul.f32 %v2448_v3, %v5399_v45  ;;  %v2458_v49 = vsel %vm2457_vm5, %v4289_v2, %v2454_v27  ;;  %v2467_v50 = vsub.f32 1.0, %v2466_v32  ;;  %v2477_v54 = vor.u32 1.1754944e-38, %v2476_v26  ;;  %v2115_v26 = vpop.f32.mrf.mxu2 }
 0x1d1   : > { %v4299_v6 = vpop.eup %4298  ;;  %v2463_v57 = vsel %vm5515_vm13, %v2462_v63, %v2458_v49  ;;  %v1536_v52 = vsel %vm1535_vm7, %v4291_v60, %v1532_v20  ;;  %v1546_v44 = vmul.f32 %v4293_v55, %v1545_v18  ;;  %vm1549_vm8 = vweird.f32 %v4293_v55 }
 0x1d2   : > { %v2804_v10 = vmul.f32 %v2463_v57, %v5416_v29  ;;  %v1541_v45 = vsel %vm5520_vm14, %v1540_v34, %v1536_v52  ;;  %v2468_v13 = vmul.f32 %v4295_v43, %v2467_v50  ;;  %vm2471_vm9 = vweird.f32 %v4295_v43  ;;  %vm1550_vm10 = vmor %vm1548_vm15, %vm1549_vm8 }
 0x1d3   : > { %v1868_v62 = vmul.f32 %v1541_v45, %v5423_v0  ;;  %v1547_v31 = vadd.f32 %v4293_v55, %v1546_v44  ;;  %v5561_v14 = vadd.f32 1.0, %v4297_v4  ;;  %v5564_v2 = vadd.f32 %v2113_v8, %v5061_v36  ;;  %vm2472_vm11 = vmor %vm2470_vm2, %vm2471_vm9 }
 0x1d4   : > { %v2831_v46 = vpack.c.bf16 %v2804_v10, %v2803_v28  ;;  %v2469_v29 = vadd.f32 %v4295_v43, %v2468_v13  ;;  %v2489_v60 = vand.u32 2147483647, %v5529_v58  ;;  %v5569_v24 = vadd.f32 1.0, %v4299_v6 }
 0x1d5   : > { %v4301_v5 = vpop.eup %4300  ;;  %v3937_v0 = vpack.c.bf16 %v1868_v62, %v5481_v56  ;;  %v1551_v63 = vsel %vm1550_vm10, %v4293_v55, %v1547_v31  ;;  %v2491_v15 = vand.u32 2147483648, %v5529_v58  ;;  %4302 = vrcp.f32 %v5561_v14 }
 0x1d6   : > { %v2879_v7 = vrot.slane %v2831_v46, 4  ;;  %v1556_v53 = vsel %vm5537_vm4, %v1555_v59, %v1551_v63  ;;  %v2473_v33 = vsel %vm2472_vm11, %v4295_v43, %v2469_v29  ;;  %v2481_v34 = vmul.f32 %v4301_v5, %v5529_v58  ;;  %v2164_v59 = vpop.f32.mrf.mxu3 }
 0x1d7   : > { %4019 = vst [vmem:[%s5184_s30 + $0x10] sm:$0xff] %v3937_v0   ;;  %v1869_v35 = vmul.f32 %v1556_v53, %v5435_v16  ;;  %v2478_v56 = vsel %vm5546_vm6, %v2477_v54, %v2473_v33  ;;  %v3718_v51 = vmul.f32 -1.442695, %v5564_v2  ;;  %vm2485_vm12 = vweird.f32 %v5529_v58  ;;  %v1181_v54 = vpop.f32.mrf.mxu0 }
 0x1d8   : > { %3742 = vst [vmem:[%s5219_s7 + $0x50] sm:$0xf] %v2879_v7  ;;  %v2805_v21 = vmul.f32 %v2478_v56, %v5438_v17  ;;  %v2482_v38 = vsub.f32 1.0, %v2481_v34  ;;  %4304 = vrcp.f32 %v5569_v24  ;;  %vm5589_vm13 = vcmp.eq.f32.partialorder %v2489_v60, 8.507059e+37 }
 0x1d9   : > { %v1895_v30 = vpack.c.bf16 %v1869_v35, %v1868_v62  ;;  %v2492_v16 = vor.u32 1.1754944e-38, %v2491_v15  ;;  %vm1563_vm14 = vweird.f32 %v5561_v14  ;;  %vm2486_vm15 = vweird.f32 %v4301_v5 }
 0x1da   : > { %v3977_v55 = vpack.c.bf16 %v2805_v21, %v2803_v28  ;;  %v2483_v40 = vmul.f32 %v4301_v5, %v2482_v38  ;;  %v1569_v17 = vand.u32 2147483648, %v5561_v14  ;;  %v1567_v41 = vand.u32 2147483647, %v5561_v14  ;;  %vm2487_vm1 = vmor %vm2485_vm12, %vm2486_vm15 }
 0x1db   : > { %v4303_v43 = vpop.eup %4302  ;;  %v1943_v25 = vrot.slane %v1895_v30, 4  ;;  %4306 = vpow2.f32 %v3718_v51  ;;  %v5597_v47 = vadd.f32 %v2162_v9, %v5063_v37  ;;  %vm1578_vm0 = vweird.f32 %v5569_v24 }
 0x1dc   : > { %4026 = vst [vmem:[%s5219_s7 + $0x10] sm:$0xff] %v3977_v55   ;;  %v2484_v48 = vadd.f32 %v4301_v5, %v2483_v40  ;;  %v1559_v3 = vmul.f32 %v4303_v43, %v5561_v14  ;;  %v1582_v27 = vand.u32 2147483647, %v5569_v24  ;;  %v5609_v20 = vadd.f32 %v1178_v11, %v5043_v19 }
 0x1dd   : > { %3631 = vst [vmem:[%s5184_s30 + $0x54] sm:$0xf] %v1943_v25  ;;  %v3719_v32 = vmul.f32 -1.442695, %v5597_v47  ;;  %v5612_v18 = vadd.f32 %v1227_v39, %v5045_v23  ;;  %v5615_v61 = vadd.f32 %v2115_v26, %v5061_v36  ;;  %vm1564_vm2 = vweird.f32 %v4303_v43 }
 0x1de   : > { %v4305_v4 = vpop.eup %4304  ;;  %v2488_v28 = vsel %vm2487_vm1, %v4301_v5, %v2484_v48  ;;  %v1560_v49 = vsub.f32 1.0, %v1559_v3  ;;  %v1570_v50 = vor.u32 1.1754944e-38, %v1569_v17  ;;  %v5621_v6 = vadd.f32 %v2164_v59, %v5063_v37  ;;  %vm1565_vm3 = vmor %vm1563_vm14, %vm1564_vm2  ;;  %v1230_v5 = vpop.f32.mrf.mxu1 }
 0x1df   : > { %v2493_v58 = vsel %vm5589_vm13, %v2492_v16, %v2488_v28  ;;  %v1574_v8 = vmul.f32 %v4305_v4, %v5569_v24  ;;  %4308 = vpow2.f32 %v3719_v32  ;;  %v3608_v44 = vmul.f32 -1.442695, %v5609_v20 }
 0x1e0   : > { %v2806_v57 = vmul.f32 %v2493_v58, %v5445_v1  ;;  %v1561_v52 = vmul.f32 %v4303_v43, %v1560_v49  ;;  %v3609_v10 = vmul.f32 -1.442695, %v5612_v18  ;;  %v1584_v9 = vand.u32 2147483648, %v5569_v24 }
 0x1e1   : > { %v4307_v45 = vpop.eup %4306  ;;  %v1575_v13 = vsub.f32 1.0, %v1574_v8  ;;  %v3720_v62 = vmul.f32 -1.442695, %v5615_v61  ;;  %v5629_v31 = vadd.f32 %v1181_v54, %v5043_v19  ;;  %4310 = vpow2.f32 %v3608_v44 }
 0x1e2   : > { %v2832_v46 = vpack.c.bf16 %v2806_v57, %v2805_v21  ;;  %v1562_v29 = vadd.f32 %v4303_v43, %v1561_v52  ;;  %v5631_v60 = vadd.f32 1.0, %v4307_v45  ;;  %vm1579_vm4 = vweird.f32 %v4305_v4  ;;  %v2118_v21 = vpop.f32.mrf.mxu2 }
 0x1e3   : > { %v1576_v1 = vmul.f32 %v4305_v4, %v1575_v13  ;;  %4312 = vpow2.f32 %v3609_v10  ;;  %v3721_v11 = vmul.f32 -1.442695, %v5621_v6  ;;  %vm1568_vm5 = vcmp.eq.f32.partialorder %v1567_v41, 8.507059e+37  ;;  %vm1580_vm6 = vmor %vm1578_vm0, %vm1579_vm4 }
 0x1e4   : > { %v2880_v0 = vrot.slane %v2832_v46, 4  ;;  %v1566_v63 = vsel %vm1565_vm3, %v4303_v43, %v1562_v29  ;;  %4314 = vrcp.f32 %v5631_v60  ;;  %v3610_v33 = vmul.f32 -1.442695, %v5629_v31 }
 0x1e5   : > { %v4309_v15 = vpop.eup %4308  ;;  %v1571_v7 = vsel %vm1568_vm5, %v1570_v50, %v1566_v63  ;;  %v1577_v53 = vadd.f32 %v4305_v4, %v1576_v1  ;;  %v1585_v14 = vor.u32 1.1754944e-38, %v1584_v9  ;;  %4316 = vpow2.f32 %v3720_v62 }
 0x1e6   : > { %3743 = vst [vmem:[%s5219_s7 + $0x54] sm:$0xf] %v2880_v0  ;;  %v5642_v34 = vadd.f32 1.0, %v4309_v15  ;;  %v5645_v35 = vadd.f32 %v1230_v5, %v5045_v23  ;;  %v5648_v56 = vmul.f32 %v1571_v7, %v5475_v12  ;;  %vm1583_vm7 = vcmp.eq.f32.partialorder %v1582_v27, 8.507059e+37 }
 0x1e7   : > { %v1581_v51 = vsel %vm1580_vm6, %v4305_v4, %v1577_v53  ;;  %4318 = vpow2.f32 %v3721_v11  ;;  %v4311_v38 = vpop.eup %4310  ;;  %v2504_v42 = vand.u32 2147483647, %v5631_v60  ;;  %v2506_v39 = vand.u32 2147483648, %v5631_v60 }
 0x1e8   : > { %v1586_v30 = vsel %vm1583_vm7, %v1585_v14, %v1581_v51  ;;  %4320 = vrcp.f32 %v5642_v34  ;;  %v5654_v55 = vadd.f32 1.0, %v4311_v38  ;;  %v3611_v17 = vmul.f32 -1.442695, %v5645_v35 }
 0x1e9   : > { %v4313_v24 = vpop.eup %4312  ;;  %v1871_v16 = vmul.f32 %v1586_v30, %v5490_v22  ;;  %4322 = vpow2.f32 %v3610_v33  ;;  %v5660_v26 = vadd.f32 %v2118_v21, %v5061_v36  ;;  %v2519_v41 = vand.u32 2147483647, %v5642_v34 }
 0x1ea   : > { %v4315_v12 = vpop.eup %4314  ;;  %v5656_v40 = vadd.f32 1.0, %v4313_v24  ;;  %vm2500_vm8 = vweird.f32 %v5631_v60  ;;  %vm5666_vm9 = vcmp.eq.f32.partialorder %v2504_v42, 8.507059e+37  ;;  %v2521_v3 = vand.u32 2147483648, %v5642_v34 }
 0x1eb   : > { %v1896_v43 = vpack.c.bf16 %v1871_v16, %v5648_v56  ;;  %v2496_v25 = vmul.f32 %v4315_v12, %v5631_v60  ;;  %v4317_v22 = vpop.eup %4316  ;;  %4324 = vrcp.f32 %v5654_v55  ;;  %v2507_v4 = vor.u32 1.1754944e-38, %v2506_v39 }
 0x1ec   : > { %4326 = vrcp.f32 %v5656_v40  ;;  %vm2501_vm10 = vweird.f32 %v4315_v12  ;;  %vm2515_vm11 = vweird.f32 %v5642_v34  ;;  %v5675_v49 = vmul.f32 -1.442695, %v5660_v26 }
 0x1ed   : > { %v4319_v27 = vpop.eup %4318  ;;  %v1944_v59 = vrot.slane %v1896_v43, 4  ;;  %v2497_v32 = vsub.f32 1.0, %v2496_v25  ;;  %4328 = vpow2.f32 %v3611_v17  ;;  %vm5679_vm12 = vcmp.eq.f32.partialorder %v2519_v41, 8.507059e+37  ;;  %vm2502_vm13 = vmor %vm2500_vm8, %vm2501_vm10 }
 0x1ee   : > { %v4321_v28 = vpop.eup %4320  ;;  %v1597_v57 = vand.u32 2147483647, %v5654_v55  ;;  %v5684_v52 = vadd.f32 1.0, %v4317_v22  ;;  %v2522_v44 = vor.u32 1.1754944e-38, %v2521_v3  ;;  %v1599_v10 = vand.u32 2147483648, %v5654_v55 }
 0x1ef   : > { %v4323_v50 = vpop.eup %4322  ;;  %3632 = vst [vmem:[%s5184_s30 + $0x58] sm:$0xf] %v1944_v59  ;;  %v2498_v54 = vmul.f32 %v4315_v12, %v2497_v32  ;;  %v2511_v58 = vmul.f32 %v4321_v28, %v5642_v34  ;;  %v1612_v45 = vand.u32 2147483647, %v5656_v40  ;;  %v5688_v13 = vadd.f32 1.0, %v4319_v27 }
 0x1f0   : > { %v1614_v46 = vand.u32 2147483648, %v5656_v40  ;;  %4330 = vrcp.f32 %v5684_v52  ;;  %vm1593_vm14 = vweird.f32 %v5654_v55  ;;  %vm1608_vm15 = vweird.f32 %v5656_v40 }
 0x1f1   : > { %v2499_v9 = vadd.f32 %v4315_v12, %v2498_v54  ;;  %v2512_v62 = vsub.f32 1.0, %v2511_v58  ;;  %v4325_v29 = vpop.eup %4324  ;;  %4332 = vrcp.f32 %v5688_v13  ;;  %v5698_v1 = vadd.f32 1.0, %v4323_v50  ;;  %v1183_v50 = vpop.f32.mrf.mxu0 }
 0x1f2   : > { %v4327_v11 = vpop.eup %4326  ;;  %vm2516_vm0 = vweird.f32 %v4321_v28  ;;  %v1589_v63 = vmul.f32 %v4325_v29, %v5654_v55  ;;  %vm5701_vm1 = vcmp.eq.f32.partialorder %v1597_v57, 8.507059e+37  ;;  %v1600_v53 = vor.u32 1.1754944e-38, %v1599_v10 }
 0x1f3   : > { %v2503_v5 = vsel %vm2502_vm13, %v4315_v12, %v2499_v9  ;;  %v2513_v0 = vmul.f32 %v4321_v28, %v2512_v62  ;;  %v4329_v60 = vpop.eup %4328  ;;  %v1604_v33 = vmul.f32 %v4327_v11, %v5656_v40  ;;  %vm5708_vm2 = vcmp.eq.f32.partialorder %v1612_v45, 8.507059e+37  ;;  %vm2517_vm3 = vmor %vm2515_vm11, %vm2516_vm0 }
 0x1f4   : > { %v2508_v7 = vsel %vm5666_vm9, %v2507_v4, %v2503_v5  ;;  %v1590_v21 = vsub.f32 1.0, %v1589_v63  ;;  %v1615_v38 = vor.u32 1.1754944e-38, %v1614_v46  ;;  %v2534_v30 = vand.u32 2147483647, %v5684_v52 }
 0x1f5   : > { %v2514_v51 = vadd.f32 %v4321_v28, %v2513_v0  ;;  %v1605_v42 = vsub.f32 1.0, %v1604_v33  ;;  %vm2530_vm4 = vweird.f32 %v5684_v52  ;;  %v2536_v24 = vand.u32 2147483648, %v5684_v52 }
 0x1f6   : > { %4334 = vrcp.f32 %v5698_v1  ;;  %v4331_v16 = vpop.eup %4330  ;;  %v5719_v39 = vmul.f32 %v2508_v7, %v5564_v2  ;;  %v1591_v17 = vmul.f32 %v4325_v29, %v1590_v21  ;;  %vm1594_vm5 = vweird.f32 %v4325_v29 }
 0x1f7   : > { %v2518_v12 = vsel %vm2517_vm3, %v4321_v28, %v2514_v51  ;;  %vm2545_vm6 = vweird.f32 %v5688_v13  ;;  %v4333_v43 = vpop.eup %4332  ;;  %v1606_v25 = vmul.f32 %v4327_v11, %v1605_v42  ;;  %vm1609_vm7 = vweird.f32 %v4327_v11  ;;  %vm1595_vm9 = vmor %vm1593_vm14, %vm1594_vm5  ;;  %v2167_v28 = vpop.f32.mrf.mxu3 }
 0x1f8   : > { %v2523_v34 = vsel %vm5679_vm12, %v2522_v44, %v2518_v12  ;;  %v2526_v41 = vmul.f32 %v4331_v16, %v5684_v52  ;;  %v1592_v48 = vadd.f32 %v4325_v29, %v1591_v17  ;;  %vm5726_vm8 = vcmp.eq.f32.partialorder %v2534_v30, 8.507059e+37  ;;  %vm1610_vm10 = vmor %vm1608_vm15, %vm1609_vm7 }
 0x1f9   : > { %v2808_v22 = vmul.f32 %v2523_v34, %v5597_v47  ;;  %v2541_v2 = vmul.f32 %v4333_v43, %v5688_v13  ;;  %v1607_v27 = vadd.f32 %v4327_v11, %v1606_v25  ;;  %v2549_v32 = vand.u32 2147483647, %v5688_v13 }
 0x1fa   : > { %v2527_v59 = vsub.f32 1.0, %v2526_v41  ;;  %v2551_v4 = vand.u32 2147483648, %v5688_v13  ;;  %v1596_v54 = vsel %vm1595_vm9, %v4325_v29, %v1592_v48  ;;  %vm2531_vm11 = vweird.f32 %v4331_v16 }
 0x1fb   : > { %v2833_v47 = vpack.c.bf16 %v2808_v22, %v5719_v39  ;;  %v2542_v58 = vsub.f32 1.0, %v2541_v2  ;;  %v1601_v8 = vsel %vm5701_vm1, %v1600_v53, %v1596_v54  ;;  %v1611_v57 = vsel %vm1610_vm10, %v4327_v11, %v1607_v27  ;;  %vm2532_vm13 = vmor %vm2530_vm4, %vm2531_vm11  ;;  %v1232_v53 = vpop.f32.mrf.mxu1 }
 0x1fc   : > { %v5739_v55 = vpop.eup %4334  ;;  %v2528_v44 = vmul.f32 %v4331_v16, %v2527_v59  ;;  %vm2546_vm12 = vweird.f32 %v4333_v43  ;;  %v1872_v45 = vmul.f32 %v1601_v8, %v5609_v20  ;;  %v1616_v9 = vsel %vm5708_vm2, %v1615_v38, %v1611_v57 }
 0x1fd   : > { %v2881_v10 = vrot.slane %v2833_v47, 4  ;;  %v2543_v62 = vmul.f32 %v4333_v43, %v2542_v58  ;;  %v1873_v40 = vmul.f32 %v1616_v9, %v5612_v18  ;;  %v2537_v29 = vor.u32 1.1754944e-38, %v2536_v24  ;;  %vm2547_vm14 = vmor %vm2545_vm6, %vm2546_vm12 }
 0x1fe   : > { %v2529_v46 = vadd.f32 %v4331_v16, %v2528_v44  ;;  %v1619_v5 = vmul.f32 %v5739_v55, %v5698_v1  ;;  %v3942_v11 = vpack.c.bf16 %v1872_v45, %v5648_v56  ;;  %v2552_v0 = vor.u32 1.1754944e-38, %v2551_v4 }
 0x1ff   : > { %3744 = vst [vmem:[%s5219_s7 + $0x58] sm:$0xf] %v2881_v10  ;;  %v2544_v20 = vadd.f32 %v4333_v43, %v2543_v62  ;;  %v5754_v63 = vadd.f32 1.0, %v4329_v60  ;;  %v1897_v15 = vpack.c.bf16 %v1873_v40, %v1872_v45  ;;  %4336 = vpow2.f32 %v5675_v49  ;;  %v2120_v60 = vpop.f32.mrf.mxu2  ;;  %v2169_v24 = vpop.f32.mrf.mxu3 }
 0x200   : > { %v2533_v7 = vsel %vm2532_vm13, %v4331_v16, %v2529_v46  ;;  %v1620_v18 = vsub.f32 1.0, %v1619_v5  ;;  %4020 = vst [vmem:[%s5184_s30 + $0x18] sm:$0xff] %v3942_v11   ;;  %vm2550_vm15 = vcmp.eq.f32.partialorder %v2549_v32, 8.507059e+37  ;;  %vm1623_vm0 = vweird.f32 %v5698_v1 }
 0x201   : > { %v2538_v56 = vsel %vm5726_vm8, %v2537_v29, %v2533_v7  ;;  %v2548_v52 = vsel %vm2547_vm14, %v4333_v43, %v2544_v20  ;;  %4338 = vrcp.f32 %v5754_v63  ;;  %v1945_v33 = vrot.slane %v1897_v15, 4 }
 0x202   : > { %v2809_v14 = vmul.f32 %v2538_v56, %v5615_v61  ;;  %v2553_v51 = vsel %vm2550_vm15, %v2552_v0, %v2548_v52  ;;  %v1621_v13 = vmul.f32 %v5739_v55, %v1620_v18  ;;  %vm1624_vm1 = vweird.f32 %v5739_v55 }
 0x203   : > { %v2810_v49 = vmul.f32 %v2553_v51, %v5621_v6  ;;  %v5770_v21 = vadd.f32 %v2167_v28, %v5063_v37  ;;  %3633 = vst [vmem:[%s5184_s30 + $0x5c] sm:$0xf] %v1945_v33  ;;  %v5776_v61 = vadd.f32 %v1183_v50, %v5043_v19  ;;  %v5779_v42 = vadd.f32 %v1232_v53, %v5045_v23  ;;  %v1186_v6 = vpop.f32.mrf.mxu0  ;;  %vm5793_vm2 = vmor %vm1623_vm0, %vm1624_vm1  ;;  %v1235_v54 = vpop.f32.mrf.mxu1 }
 0x204   : > { %v3982_v38 = vpack.c.bf16 %v2809_v14, %v5719_v39  ;;  %v1622_v30 = vadd.f32 %v5739_v55, %v1621_v13  ;;  %v1629_v12 = vand.u32 2147483648, %v5698_v1  ;;  %v1627_v39 = vand.u32 2147483647, %v5698_v1 }
 0x205   : > { %v2834_v16 = vpack.c.bf16 %v2810_v49, %v2809_v14  ;;  %v3723_v17 = vmul.f32 -1.442695, %v5770_v21  ;;  %v4337_v43 = vpop.eup %4336  ;;  %v3612_v34 = vmul.f32 -1.442695, %v5776_v61  ;;  %v5787_v25 = vadd.f32 %v2120_v60, %v5061_v36 }
 0x206   : > { %4027 = vst [vmem:[%s5219_s7 + $0x18] sm:$0xff] %v3982_v38   ;;  %v5797_v3 = vadd.f32 1.0, %v4337_v43  ;;  %v3613_v2 = vmul.f32 -1.442695, %v5779_v42  ;;  %v1626_v27 = vsel %vm5793_vm2, %v5739_v55, %v1622_v30  ;;  %v1630_v32 = vor.u32 1.1754944e-38, %v1629_v12 }
 0x207   : > { %v4339_v41 = vpop.eup %4338  ;;  %v2882_v22 = vrot.slane %v2834_v16, 4  ;;  %4340 = vpow2.f32 %v3723_v17  ;;  %v1642_v1 = vand.u32 2147483647, %v5754_v63  ;;  %v1644_v4 = vand.u32 2147483648, %v5754_v63  ;;  %v2123_v8 = vpop.f32.mrf.mxu2 }
 0x208   : > { %v1634_v59 = vmul.f32 %v4339_v41, %v5754_v63  ;;  %4342 = vpow2.f32 %v3612_v34  ;;  %vm1628_vm3 = vcmp.eq.f32.partialorder %v1627_v39, 8.507059e+37  ;;  %v3724_v50 = vmul.f32 -1.442695, %v5787_v25  ;;  %v2172_v20 = vpop.f32.mrf.mxu3 }
 0x209   : > { %3745 = vst [vmem:[%s5219_s7 + $0x5c] sm:$0xf] %v2882_v22  ;;  %4344 = vrcp.f32 %v5797_v3  ;;  %v5810_v47 = vadd.f32 %v2169_v24, %v5063_v37  ;;  %v1631_v58 = vsel %vm1628_vm3, %v1630_v32, %v1626_v27  ;;  %vm1638_vm4 = vweird.f32 %v5754_v63 }
 0x20a   : > { %v1635_v28 = vsub.f32 1.0, %v1634_v59  ;;  %4346 = vpow2.f32 %v3613_v2  ;;  %v5814_v55 = vadd.f32 %v1186_v6, %v5043_v19  ;;  %vm1639_vm5 = vweird.f32 %v4339_v41 }
 0x20b   : > { %4348 = vpow2.f32 %v3724_v50  ;;  %v3725_v44 = vmul.f32 -1.442695, %v5810_v47  ;;  %vm5817_vm6 = vcmp.eq.f32.partialorder %v1642_v1, 8.507059e+37  ;;  %v1645_v9 = vor.u32 1.1754944e-38, %v1644_v4  ;;  %v1188_v0 = vpop.f32.mrf.mxu0  ;;  %vm1640_vm7 = vmor %vm1638_vm4, %vm1639_vm5 }
 0x20c   : > { %v1636_v57 = vmul.f32 %v4339_v41, %v1635_v28  ;;  %v2564_v62 = vand.u32 2147483647, %v5797_v3  ;;  %v5823_v40 = vadd.f32 %v1235_v54, %v5045_v23  ;;  %v5828_v11 = vadd.f32 %v2123_v8, %v5061_v36 }
 0x20d   : > { %v4341_v10 = vpop.eup %4340  ;;  %4350 = vpow2.f32 %v3725_v44  ;;  %v5831_v7 = vmul.f32 %v1631_v58, %v5629_v31  ;;  %vm2560_vm8 = vweird.f32 %v5797_v3  ;;  %v3614_v53 = vmul.f32 -1.442695, %v5814_v55 }
 0x20e   : > { %v4343_v46 = vpop.eup %4342  ;;  %v1637_v29 = vadd.f32 %v4339_v41, %v1636_v57  ;;  %v5825_v5 = vadd.f32 1.0, %v4341_v10  ;;  %v2566_v60 = vand.u32 2147483648, %v5797_v3  ;;  %vm5845_vm9 = vcmp.eq.f32.partialorder %v2564_v62, 8.507059e+37 }
 0x20f   : > { %v4345_v15 = vpop.eup %4344  ;;  %v5837_v18 = vadd.f32 1.0, %v4343_v46  ;;  %v3615_v14 = vmul.f32 -1.442695, %v5823_v40  ;;  %v5851_v51 = vadd.f32 %v2172_v20, %v5063_v37  ;;  %v5854_v13 = vadd.f32 %v1188_v0, %v5043_v19 }
 0x210   : > { %v1641_v56 = vsel %vm1640_vm7, %v4339_v41, %v1637_v29  ;;  %v2556_v52 = vmul.f32 %v4345_v15, %v5797_v3  ;;  %4352 = vrcp.f32 %v5825_v5  ;;  %v4347_v33 = vpop.eup %4346  ;;  %v5859_v24 = vmul.f32 -1.442695, %v5828_v11 }
 0x211   : > { %v1646_v31 = vsel %vm5817_vm6, %v1645_v9, %v1641_v56  ;;  %v4349_v49 = vpop.eup %4348  ;;  %4354 = vrcp.f32 %v5837_v18  ;;  %vm2561_vm10 = vweird.f32 %v4345_v15  ;;  %v2579_v6 = vand.u32 2147483647, %v5825_v5 }
 0x212   : > { %v1875_v38 = vmul.f32 %v1646_v31, %v5645_v35  ;;  %v2557_v30 = vsub.f32 1.0, %v2556_v52  ;;  %v2581_v16 = vand.u32 2147483648, %v5825_v5  ;;  %4356 = vpow2.f32 %v3614_v53  ;;  %vm5880_vm11 = vmor %vm2560_vm8, %vm2561_vm10 }
 0x213   : > { %v4351_v12 = vpop.eup %4350  ;;  %v5864_v39 = vadd.f32 1.0, %v4347_v33  ;;  %v5866_v34 = vadd.f32 1.0, %v4349_v49  ;;  %v2567_v35 = vor.u32 1.1754944e-38, %v2566_v60  ;;  %v1657_v41 = vand.u32 2147483647, %v5837_v18 }
 0x214   : > { %v1898_v17 = vpack.c.bf16 %v1875_v38, %v5831_v7  ;;  %v2558_v43 = vmul.f32 %v4345_v15, %v2557_v30  ;;  %v1659_v22 = vand.u32 2147483648, %v5837_v18  ;;  %v5871_v48 = vmul.f32 -1.442695, %v5851_v51 }
 0x215   : > { %4358 = vrcp.f32 %v5864_v39  ;;  %v5875_v32 = vmul.f32 -1.442695, %v5854_v13  ;;  %vm2575_vm12 = vweird.f32 %v5825_v5  ;;  %vm1653_vm13 = vweird.f32 %v5837_v18 }
 0x216   : > { %v4353_v2 = vpop.eup %4352  ;;  %v1946_v27 = vrot.slane %v1898_v17, 4  ;;  %v2559_v59 = vadd.f32 %v4345_v15, %v2558_v43  ;;  %v5887_v28 = vadd.f32 1.0, %v4351_v12  ;;  %vm5892_vm14 = vcmp.eq.f32.partialorder %v2579_v6, 8.507059e+37 }
 0x217   : > { %v2571_v4 = vmul.f32 %v4353_v2, %v5825_v5  ;;  %v4355_v50 = vpop.eup %4354  ;;  %v2582_v3 = vor.u32 1.1754944e-38, %v2581_v16  ;;  %4360 = vrcp.f32 %v5866_v34  ;;  %vm5898_vm15 = vcmp.eq.f32.partialorder %v1657_v41, 8.507059e+37 }
 0x218   : > { %3634 = vst [vmem:[%s5184_s30 + $0x60] sm:$0xf] %v1946_v27  ;;  %v2563_v54 = vsel %vm5880_vm11, %v4345_v15, %v2559_v59  ;;  %v4357_v8 = vpop.eup %4356  ;;  %v1649_v44 = vmul.f32 %v4355_v50, %v5837_v18  ;;  %v1660_v45 = vor.u32 1.1754944e-38, %v1659_v22  ;;  %4362 = vpow2.f32 %v3615_v14 }
 0x219   : > { %v2572_v57 = vsub.f32 1.0, %v2571_v4  ;;  %v2568_v9 = vsel %vm5845_vm9, %v2567_v35, %v2563_v54  ;;  %vm2576_vm0 = vweird.f32 %v4353_v2  ;;  %v1672_v62 = vand.u32 2147483647, %v5864_v39 }
 0x21a   : > { %v1674_v46 = vand.u32 2147483648, %v5864_v39  ;;  %v1650_v20 = vsub.f32 1.0, %v1649_v44  ;;  %v2594_v0 = vand.u32 2147483647, %v5866_v34  ;;  %4364 = vrcp.f32 %v5887_v28  ;;  %vm2577_vm4 = vmor %vm2575_vm12, %vm2576_vm0 }
 0x21b   : > { %v2573_v29 = vmul.f32 %v4353_v2, %v2572_v57  ;;  %v4359_v15 = vpop.eup %4358  ;;  %vm1654_vm1 = vweird.f32 %v4355_v50  ;;  %vm1668_vm2 = vweird.f32 %v5864_v39  ;;  %v2596_v53 = vand.u32 2147483648, %v5866_v34 }
 0x21c   : > { %v5910_v56 = vadd.f32 1.0, %v4357_v8  ;;  %v5913_v52 = vmul.f32 %v2568_v9, %v5660_v26  ;;  %v1651_v33 = vmul.f32 %v4355_v50, %v1650_v20  ;;  %v1664_v31 = vmul.f32 %v4359_v15, %v5864_v39  ;;  %vm1655_vm7 = vmor %vm1653_vm13, %vm1654_vm1 }
 0x21d   : > { %v2574_v60 = vadd.f32 %v4353_v2, %v2573_v29  ;;  %vm2590_vm3 = vweird.f32 %v5866_v34  ;;  %v4361_v63 = vpop.eup %4360  ;;  %vm5920_vm5 = vcmp.eq.f32.partialorder %v1672_v62, 8.507059e+37  ;;  %v1675_v49 = vor.u32 1.1754944e-38, %v1674_v46 }
 0x21e   : > { %v2609_v38 = vand.u32 2147483647, %v5887_v28  ;;  %4366 = vrcp.f32 %v5910_v56  ;;  %v4363_v26 = vpop.eup %4362  ;;  %v1652_v6 = vadd.f32 %v4355_v50, %v1651_v33  ;;  %v1665_v16 = vsub.f32 1.0, %v1664_v31 }
 0x21f   : > { %v2578_v30 = vsel %vm2577_vm4, %v4353_v2, %v2574_v60  ;;  %v2586_v12 = vmul.f32 %v4361_v63, %v5866_v34  ;;  %vm5927_vm6 = vcmp.eq.f32.partialorder %v2594_v0, 8.507059e+37  ;;  %vm1669_vm8 = vweird.f32 %v4359_v15 }
 0x220   : > { %v2583_v5 = vsel %vm5892_vm14, %v2582_v3, %v2578_v30  ;;  %v2597_v43 = vor.u32 1.1754944e-38, %v2596_v53  ;;  %vm2605_vm9 = vweird.f32 %v5887_v28  ;;  %v2611_v35 = vand.u32 2147483648, %v5887_v28  ;;  %v4365_v41 = vpop.eup %4364  ;;  %vm1670_vm12 = vmor %vm1668_vm2, %vm1669_vm8 }
 0x221   : > { %v2812_v22 = vmul.f32 %v2583_v5, %v5770_v21  ;;  %v1656_v2 = vsel %vm1655_vm7, %v4355_v50, %v1652_v6  ;;  %v1666_v27 = vmul.f32 %v4359_v15, %v1665_v16  ;;  %v2587_v59 = vsub.f32 1.0, %v2586_v12  ;;  %v2174_v16 = vpop.f32.mrf.mxu3 }
 0x222   : > { %v1661_v1 = vsel %vm5898_vm15, %v1660_v45, %v1656_v2  ;;  %vm2591_vm10 = vweird.f32 %v4361_v63  ;;  %v2601_v4 = vmul.f32 %v4365_v41, %v5887_v28  ;;  %vm5942_vm11 = vcmp.eq.f32.partialorder %v2609_v38, 8.507059e+37 }
 0x223   : > { %v2835_v54 = vpack.c.bf16 %v2812_v22, %v5913_v52  ;;  %v1876_v58 = vmul.f32 %v1661_v1, %v5776_v61  ;;  %v1667_v3 = vadd.f32 %v4359_v15, %v1666_v27  ;;  %v2588_v21 = vmul.f32 %v4361_v63, %v2587_v59  ;;  %vm2592_vm13 = vmor %vm2590_vm3, %vm2591_vm10  ;;  %v1191_v22 = vpop.f32.mrf.mxu0 }
 0x224   : > { %v5948_v50 = vpop.eup %4366  ;;  %v2602_v8 = vsub.f32 1.0, %v2601_v4  ;;  %v2612_v57 = vor.u32 1.1754944e-38, %v2611_v35  ;;  %v5953_v44 = vadd.f32 1.0, %v4363_v26  ;;  %4368 = vpow2.f32 %v5859_v24 }
 0x225   : > { %v2883_v10 = vrot.slane %v2835_v54, 4  ;;  %v3947_v45 = vpack.c.bf16 %v1876_v58, %v5831_v7  ;;  %v1671_v61 = vsel %vm1670_vm12, %v4359_v15, %v1667_v3  ;;  %v2589_v9 = vadd.f32 %v4361_v63, %v2588_v21  ;;  %v1237_v7 = vpop.f32.mrf.mxu1 }
 0x226   : > { %v1676_v62 = vsel %vm5920_vm5, %v1675_v49, %v1671_v61  ;;  %v2603_v39 = vmul.f32 %v4365_v41, %v2602_v8  ;;  %vm2606_vm14 = vweird.f32 %v4365_v41  ;;  %v1679_v46 = vmul.f32 %v5948_v50, %v5910_v56 }
 0x227   : > { %3746 = vst [vmem:[%s5219_s7 + $0x60] sm:$0xf] %v2883_v10  ;;  %v1877_v24 = vmul.f32 %v1676_v62, %v5779_v42  ;;  %v2593_v29 = vsel %vm2592_vm13, %v4361_v63, %v2589_v9  ;;  %vm1683_vm15 = vweird.f32 %v5910_v56  ;;  %4370 = vrcp.f32 %v5953_v44  ;;  %vm2607_vm0 = vmor %vm2605_vm9, %vm2606_vm14 }
 0x228   : > { %4021 = vst [vmem:[%s5184_s30 + $0x20] sm:$0xff] %v3947_v45   ;;  %v2598_v20 = vsel %vm5927_vm6, %v2597_v43, %v2593_v29  ;;  %v2604_v34 = vadd.f32 %v4365_v41, %v2603_v39  ;;  %v1680_v0 = vsub.f32 1.0, %v1679_v46  ;;  %v1687_v15 = vand.u32 2147483647, %v5910_v56 }
 0x229   : > { %v1899_v53 = vpack.c.bf16 %v1877_v24, %v1876_v58  ;;  %v2813_v60 = vmul.f32 %v2598_v20, %v5787_v25  ;;  %vm1684_vm1 = vweird.f32 %v5948_v50  ;;  %v1689_v42 = vand.u32 2147483648, %v5910_v56  ;;  %v2125_v25 = vpop.f32.mrf.mxu2 }
 0x22a   : > { %v4369_v33 = vpop.eup %4368  ;;  %v2608_v31 = vsel %vm2607_vm0, %v4365_v41, %v2604_v34  ;;  %v1681_v63 = vmul.f32 %v5948_v50, %v1680_v0  ;;  %4372 = vpow2.f32 %v5871_v48  ;;  %v5982_v14 = vadd.f32 %v1237_v7, %v5045_v23  ;;  %vm5996_vm2 = vmor %vm1683_vm15, %vm1684_vm1 }
 0x22b   : > { %v1947_v49 = vrot.slane %v1899_v53, 4  ;;  %v3987_v28 = vpack.c.bf16 %v2813_v60, %v5913_v52  ;;  %v2613_v38 = vsel %vm5942_vm11, %v2612_v57, %v2608_v31  ;;  %v5989_v6 = vadd.f32 1.0, %v4369_v33 }
 0x22c   : > { %v2814_v26 = vmul.f32 %v2613_v38, %v5810_v47  ;;  %v1682_v30 = vadd.f32 %v5948_v50, %v1681_v63  ;;  %vm6000_vm3 = vcmp.eq.f32.partialorder %v1687_v15, 8.507059e+37  ;;  %4374 = vpow2.f32 %v5875_v32 }
 0x22d   : > { %v4371_v12 = vpop.eup %4370  ;;  %3635 = vst [vmem:[%s5184_s30 + $0x64] sm:$0xf] %v1947_v49  ;;  %v3617_v47 = vmul.f32 -1.442695, %v5982_v14  ;;  %v6007_v17 = vadd.f32 %v2125_v25, %v5061_v36  ;;  %v1690_v43 = vor.u32 1.1754944e-38, %v1689_v42  ;;  %vm1698_vm4 = vweird.f32 %v5953_v44 }
 0x22e   : > { %4028 = vst [vmem:[%s5219_s7 + $0x20] sm:$0xff] %v3987_v28   ;;  %v2836_v5 = vpack.c.bf16 %v2814_v26, %v2813_v60  ;;  %v1686_v56 = vsel %vm5996_vm2, %v5948_v50, %v1682_v30  ;;  %v1694_v35 = vmul.f32 %v4371_v12, %v5953_v44  ;;  %v1702_v41 = vand.u32 2147483647, %v5953_v44 }
 0x22f   : > { %4376 = vrcp.f32 %v5989_v6  ;;  %v6018_v32 = vadd.f32 %v2174_v16, %v5063_v37  ;;  %vm1699_vm5 = vweird.f32 %v4371_v12  ;;  %v1704_v1 = vand.u32 2147483648, %v5953_v44 }
 0x230   : > { %v4373_v2 = vpop.eup %4372  ;;  %v2884_v27 = vrot.slane %v2836_v5, 4  ;;  %v1695_v59 = vsub.f32 1.0, %v1694_v35  ;;  %v1691_v4 = vsel %vm6000_vm3, %v1690_v43, %v1686_v56  ;;  %4378 = vpow2.f32 %v3617_v47  ;;  %vm1700_vm6 = vmor %vm1698_vm4, %vm1699_vm5 }
 0x231   : > { %v6023_v18 = vadd.f32 1.0, %v4373_v2  ;;  %v3728_v54 = vmul.f32 -1.442695, %v6007_v17  ;;  %v2624_v3 = vand.u32 2147483647, %v5989_v6  ;;  %v2626_v21 = vand.u32 2147483648, %v5989_v6  ;;  %v2128_v38 = vpop.f32.mrf.mxu2 }
 0x232   : > { %3747 = vst [vmem:[%s5219_s7 + $0x64] sm:$0xf] %v2884_v27  ;;  %v1696_v58 = vmul.f32 %v4371_v12, %v1695_v59  ;;  %v6030_v50 = vadd.f32 %v1191_v22, %v5043_v19  ;;  %v4375_v8 = vpop.eup %4374  ;;  %v3729_v57 = vmul.f32 -1.442695, %v6018_v32  ;;  %v6038_v62 = vmul.f32 %v1691_v4, %v5814_v55  ;;  %v1240_v55 = vpop.f32.mrf.mxu1 }
 0x233   : > { %4380 = vrcp.f32 %v6023_v18  ;;  %v6034_v45 = vadd.f32 1.0, %v4375_v8  ;;  %vm1703_vm7 = vcmp.eq.f32.partialorder %v1702_v41, 8.507059e+37  ;;  %v1705_v39 = vor.u32 1.1754944e-38, %v1704_v1 }
 0x234   : > { %v1697_v10 = vadd.f32 %v4371_v12, %v1696_v58  ;;  %4382 = vpow2.f32 %v3728_v54  ;;  %v3618_v61 = vmul.f32 -1.442695, %v6030_v50  ;;  %vm2620_vm8 = vweird.f32 %v5989_v6 }
 0x235   : > { %v4377_v9 = vpop.eup %4376  ;;  %vm6045_vm9 = vcmp.eq.f32.partialorder %v2624_v3, 8.507059e+37  ;;  %v2627_v7 = vor.u32 1.1754944e-38, %v2626_v21  ;;  %4384 = vrcp.f32 %v6034_v45  ;;  %v2639_v44 = vand.u32 2147483647, %v6023_v18 }
 0x236   : > { %v1701_v46 = vsel %vm1700_vm6, %v4371_v12, %v1697_v10  ;;  %v2616_v24 = vmul.f32 %v4377_v9, %v5989_v6  ;;  %v4379_v20 = vpop.eup %4378  ;;  %v2641_v0 = vand.u32 2147483648, %v6023_v18  ;;  %4386 = vpow2.f32 %v3729_v57 }
 0x237   : > { %v1706_v34 = vsel %vm1703_vm7, %v1705_v39, %v1701_v46  ;;  %v6053_v60 = vadd.f32 1.0, %v4379_v20  ;;  %4388 = vpow2.f32 %v3618_v61  ;;  %vm2635_vm10 = vweird.f32 %v6023_v18 }
 0x238   : > { %v1879_v15 = vmul.f32 %v1706_v34, %v5823_v40  ;;  %v2617_v53 = vsub.f32 1.0, %v2616_v24  ;;  %v1717_v33 = vand.u32 2147483647, %v6034_v45  ;;  %v1719_v31 = vand.u32 2147483648, %v6034_v45 }
 0x239   : > { %v4381_v42 = vpop.eup %4380  ;;  %v6059_v63 = vadd.f32 %v1240_v55, %v5045_v23  ;;  %vm2621_vm11 = vweird.f32 %v4377_v9  ;;  %vm6063_vm12 = vcmp.eq.f32.partialorder %v2639_v44, 8.507059e+37  ;;  %v2642_v30 = vor.u32 1.1754944e-38, %v2641_v0 }
 0x23a   : > { %v4383_v25 = vpop.eup %4382  ;;  %v1900_v49 = vpack.c.bf16 %v1879_v15, %v6038_v62  ;;  %v2618_v28 = vmul.f32 %v4377_v9, %v2617_v53  ;;  %v2631_v40 = vmul.f32 %v4381_v42, %v6023_v18  ;;  %vm1713_vm13 = vweird.f32 %v6034_v45  ;;  %vm2622_vm14 = vmor %vm2620_vm8, %vm2621_vm11 }
 0x23b   : > { %4390 = vrcp.f32 %v6053_v60  ;;  %v4385_v16 = vpop.eup %4384  ;;  %v6069_v47 = vadd.f32 1.0, %v4383_v25  ;;  %vm6074_vm15 = vcmp.eq.f32.partialorder %v1717_v33, 8.507059e+37  ;;  %v1720_v35 = vor.u32 1.1754944e-38, %v1719_v31 }
 0x23c   : > { %v1948_v12 = vrot.slane %v1900_v49, 4  ;;  %v2619_v48 = vadd.f32 %v4377_v9, %v2618_v28  ;;  %v2632_v52 = vsub.f32 1.0, %v2631_v40  ;;  %v4387_v5 = vpop.eup %4386  ;;  %v1709_v56 = vmul.f32 %v4385_v16, %v6034_v45  ;;  %v2177_v28 = vpop.f32.mrf.mxu3 }
 0x23d   : > { %v3619_v41 = vmul.f32 -1.442695, %v6059_v63  ;;  %v6080_v22 = vadd.f32 %v2128_v38, %v5061_v36  ;;  %v4389_v2 = vpop.eup %4388  ;;  %vm2636_vm0 = vweird.f32 %v4381_v42  ;;  %4392 = vrcp.f32 %v6069_v47 }
 0x23e   : > { %3636 = vst [vmem:[%s5184_s30 + $0x68] sm:$0xf] %v1948_v12  ;;  %v2623_v27 = vsel %vm2622_vm14, %v4377_v9, %v2619_v48  ;;  %v2633_v59 = vmul.f32 %v4381_v42, %v2632_v52  ;;  %v1710_v1 = vsub.f32 1.0, %v1709_v56  ;;  %v1732_v4 = vand.u32 2147483647, %v6053_v60  ;;  %vm2637_vm3 = vmor %vm2635_vm10, %vm2636_vm0 }
 0x23f   : > { %v2628_v6 = vsel %vm6045_vm9, %v2627_v7, %v2623_v27  ;;  %v1734_v54 = vand.u32 2147483648, %v6053_v60  ;;  %vm1714_vm1 = vweird.f32 %v4385_v16  ;;  %vm1728_vm2 = vweird.f32 %v6053_v60 }
 0x240   : > { %v2634_v58 = vadd.f32 %v4381_v42, %v2633_v59  ;;  %v6089_v3 = vadd.f32 1.0, %v4387_v5  ;;  %v6091_v21 = vadd.f32 1.0, %v4389_v2  ;;  %v1711_v57 = vmul.f32 %v4385_v16, %v1710_v1  ;;  %vm1715_vm5 = vmor %vm1713_vm13, %vm1714_vm1  ;;  %v1193_v5 = vpop.f32.mrf.mxu0 }
 0x241   : > { %v4391_v8 = vpop.eup %4390  ;;  %v2654_v10 = vand.u32 2147483647, %v6069_v47  ;;  %v2656_v61 = vand.u32 2147483648, %v6069_v47  ;;  %4394 = vpow2.f32 %v3619_v41  ;;  %v6098_v9 = vmul.f32 %v2628_v6, %v5828_v11 }
 0x242   : > { %v2638_v39 = vsel %vm2637_vm3, %v4381_v42, %v2634_v58  ;;  %v1724_v46 = vmul.f32 %v4391_v8, %v6053_v60  ;;  %4396 = vrcp.f32 %v6089_v3  ;;  %v1712_v29 = vadd.f32 %v4385_v16, %v1711_v57 }
 0x243   : > { %v2643_v24 = vsel %vm6063_vm12, %v2642_v30, %v2638_v39  ;;  %vm6104_vm4 = vcmp.eq.f32.partialorder %v1732_v4, 8.507059e+37  ;;  %v1735_v7 = vor.u32 1.1754944e-38, %v1734_v54  ;;  %v4393_v55 = vpop.eup %4392  ;;  %vm2650_vm6 = vweird.f32 %v6069_v47 }
 0x244   : > { %v2816_v20 = vmul.f32 %v2643_v24, %v5851_v51  ;;  %v1725_v11 = vsub.f32 1.0, %v1724_v46  ;;  %4398 = vrcp.f32 %v6091_v21  ;;  %v1716_v34 = vsel %vm1715_vm5, %v4385_v16, %v1712_v29  ;;  %v1242_v46 = vpop.f32.mrf.mxu1 }
 0x245   : > { %vm1729_vm7 = vweird.f32 %v4391_v8  ;;  %v2646_v44 = vmul.f32 %v4393_v55, %v6069_v47  ;;  %vm6115_vm8 = vcmp.eq.f32.partialorder %v2654_v10, 8.507059e+37  ;;  %v2657_v15 = vor.u32 1.1754944e-38, %v2656_v61 }
 0x246   : > { %v2837_v51 = vpack.c.bf16 %v2816_v20, %v6098_v9  ;;  %v1721_v45 = vsel %vm6074_vm15, %v1720_v35, %v1716_v34  ;;  %v1726_v53 = vmul.f32 %v4391_v8, %v1725_v11  ;;  %v2669_v42 = vand.u32 2147483647, %v6089_v3  ;;  %vm1730_vm10 = vmor %vm1728_vm2, %vm1729_vm7  ;;  %v2130_v34 = vpop.f32.mrf.mxu2 }
 0x247   : > { %v4395_v33 = vpop.eup %4394  ;;  %v1880_v31 = vmul.f32 %v1721_v45, %v5854_v13  ;;  %v2647_v25 = vsub.f32 1.0, %v2646_v44  ;;  %vm2651_vm9 = vweird.f32 %v4393_v55  ;;  %v2671_v49 = vand.u32 2147483648, %v6089_v3  ;;  %v2179_v44 = vpop.f32.mrf.mxu3 }
 0x248   : > { %v4397_v40 = vpop.eup %4396  ;;  %v2885_v38 = vrot.slane %v2837_v51, 4  ;;  %v1727_v26 = vadd.f32 %v4391_v8, %v1726_v53  ;;  %v1747_v30 = vand.u32 2147483647, %v6091_v21  ;;  %v6126_v16 = vadd.f32 1.0, %v4395_v33  ;;  %vm2652_vm13 = vmor %vm2650_vm6, %vm2651_vm9 }
 0x249   : > { %v3952_v12 = vpack.c.bf16 %v1880_v31, %v6038_v62  ;;  %v2648_v13 = vmul.f32 %v4393_v55, %v2647_v25  ;;  %v2661_v48 = vmul.f32 %v4397_v40, %v6089_v3  ;;  %v1749_v52 = vand.u32 2147483648, %v6091_v21 }
 0x24a   : > { %v6134_v56 = vpop.eup %4398  ;;  %3748 = vst [vmem:[%s5219_s7 + $0x68] sm:$0xf] %v2885_v38  ;;  %v1731_v43 = vsel %vm1730_vm10, %v4391_v8, %v1727_v26  ;;  %vm2665_vm11 = vweird.f32 %v6089_v3  ;;  %vm6138_vm12 = vcmp.eq.f32.partialorder %v2669_v42, 8.507059e+37  ;;  %4400 = vrcp.f32 %v6126_v16  ;;  %v1196_v42 = vpop.f32.mrf.mxu0 }
 0x24b   : > { %4022 = vst [vmem:[%s5184_s30 + $0x28] sm:$0xff] %v3952_v12   ;;  %v1736_v62 = vsel %vm6104_vm4, %v1735_v7, %v1731_v43  ;;  %v2649_v60 = vadd.f32 %v4393_v55, %v2648_v13  ;;  %v2662_v41 = vsub.f32 1.0, %v2661_v48  ;;  %v1739_v2 = vmul.f32 %v6134_v56, %v6091_v21 }
 0x24c   : > { %v1881_v27 = vmul.f32 %v1736_v62, %v5982_v14  ;;  %vm2666_vm14 = vweird.f32 %v4397_v40  ;;  %v2672_v59 = vor.u32 1.1754944e-38, %v2671_v49  ;;  %vm1743_vm15 = vweird.f32 %v6091_v21  ;;  %v1245_v62 = vpop.f32.mrf.mxu1 }
 0x24d   : > { %v2653_v6 = vsel %vm2652_vm13, %v4393_v55, %v2649_v60  ;;  %v2663_v1 = vmul.f32 %v4397_v40, %v2662_v41  ;;  %v1740_v4 = vsub.f32 1.0, %v1739_v2  ;;  %vm6153_vm0 = vcmp.eq.f32.partialorder %v1747_v30, 8.507059e+37  ;;  %vm2667_vm2 = vmor %vm2665_vm11, %vm2666_vm14 }
 0x24e   : > { %v1750_v58 = vor.u32 1.1754944e-38, %v1749_v52  ;;  %v1901_v8 = vpack.c.bf16 %v1881_v27, %v1880_v31  ;;  %v2658_v14 = vsel %vm6115_vm8, %v2657_v15, %v2653_v6  ;;  %vm1744_vm1 = vweird.f32 %v6134_v56 }
 0x24f   : > { %v3730_v47 = vmul.f32 -1.442695, %v6080_v22  ;;  %v2817_v57 = vmul.f32 %v2658_v14, %v6007_v17  ;;  %v2664_v10 = vadd.f32 %v4397_v40, %v2663_v1  ;;  %v1741_v61 = vmul.f32 %v6134_v56, %v1740_v4  ;;  %vm6183_vm3 = vmor %vm1743_vm15, %vm1744_vm1  ;;  %v2182_v1 = vpop.f32.mrf.mxu3 }
 0x250   : > { %v1762_v39 = vand.u32 2147483647, %v6126_v16  ;;  %v4401_v24 = vpop.eup %4400  ;;  %v1949_v29 = vrot.slane %v1901_v8, 4  ;;  %v6168_v18 = vadd.f32 %v2177_v28, %v5063_v37  ;;  %v6171_v17 = vadd.f32 %v1193_v5, %v5043_v19 }
 0x251   : > { %4402 = vpow2.f32 %v3730_v47  ;;  %v3992_v7 = vpack.c.bf16 %v2817_v57, %v6098_v9  ;;  %v2668_v55 = vsel %vm2667_vm2, %v4397_v40, %v2664_v10  ;;  %v1742_v20 = vadd.f32 %v6134_v56, %v1741_v61 }
 0x252   : > { %v1754_v11 = vmul.f32 %v4401_v24, %v6126_v16  ;;  %3637 = vst [vmem:[%s5184_s30 + $0x6c] sm:$0xf] %v1949_v29  ;;  %v2673_v3 = vsel %vm6138_vm12, %v2672_v59, %v2668_v55  ;;  %vm1758_vm4 = vweird.f32 %v6126_v16  ;;  %v3731_v9 = vmul.f32 -1.442695, %v6168_v18  ;;  %v2133_v59 = vpop.f32.mrf.mxu2 }
 0x253   : > { %v3620_v15 = vmul.f32 -1.442695, %v6171_v17  ;;  %4029 = vst [vmem:[%s5219_s7 + $0x28] sm:$0xff] %v3992_v7   ;;  %v2818_v51 = vmul.f32 %v2673_v3, %v6018_v32  ;;  %v1746_v45 = vsel %vm6183_vm3, %v6134_v56, %v1742_v20  ;;  %v6196_v21 = vadd.f32 %v1242_v46, %v5045_v23 }
 0x254   : > { %v1755_v53 = vsub.f32 1.0, %v1754_v11  ;;  %v1764_v33 = vand.u32 2147483648, %v6126_v16  ;;  %4404 = vpow2.f32 %v3731_v9  ;;  %v6200_v31 = vadd.f32 %v2130_v34, %v5061_v36 }
 0x255   : > { %v6203_v25 = vadd.f32 %v2179_v44, %v5063_v37  ;;  %v2838_v49 = vpack.c.bf16 %v2818_v51, %v2817_v57  ;;  %vm1759_vm5 = vweird.f32 %v4401_v24  ;;  %4406 = vpow2.f32 %v3620_v15 }
 0x256   : > { %v1756_v32 = vmul.f32 %v4401_v24, %v1755_v53  ;;  %v1751_v40 = vsel %vm6153_vm0, %v1750_v58, %v1746_v45  ;;  %v3621_v38 = vmul.f32 -1.442695, %v6196_v21  ;;  %v3732_v26 = vmul.f32 -1.442695, %v6200_v31  ;;  %vm1760_vm6 = vmor %vm1758_vm4, %vm1759_vm5 }
 0x257   : > { %v4403_v28 = vpop.eup %4402  ;;  %v6210_v30 = vadd.f32 %v1196_v42, %v5043_v19  ;;  %v2886_v12 = vrot.slane %v2838_v49, 4  ;;  %v3733_v52 = vmul.f32 -1.442695, %v6203_v25  ;;  %v1765_v5 = vor.u32 1.1754944e-38, %v1764_v33 }
 0x258   : > { %v1757_v13 = vadd.f32 %v4401_v24, %v1756_v32  ;;  %v6212_v48 = vadd.f32 1.0, %v4403_v28  ;;  %4408 = vpow2.f32 %v3621_v38  ;;  %v6220_v43 = vmul.f32 %v1751_v40, %v6030_v50 }
 0x259   : > { %v3622_v56 = vmul.f32 -1.442695, %v6210_v30  ;;  %3749 = vst [vmem:[%s5219_s7 + $0x6c] sm:$0xf] %v2886_v12  ;;  %vm1763_vm7 = vcmp.eq.f32.partialorder %v1762_v39, 8.507059e+37  ;;  %v6229_v50 = vadd.f32 %v1245_v62, %v5045_v23  ;;  %v6237_v8 = vadd.f32 %v2133_v59, %v5061_v36 }
 0x25a   : > { %v1761_v35 = vsel %vm1760_vm6, %v4401_v24, %v1757_v13  ;;  %4410 = vrcp.f32 %v6212_v48  ;;  %v4405_v60 = vpop.eup %4404  ;;  %v2684_v54 = vand.u32 2147483647, %v6212_v48  ;;  %vm2680_vm8 = vweird.f32 %v6212_v48 }
 0x25b   : > { %v1766_v41 = vsel %vm1763_vm7, %v1765_v5, %v1761_v35  ;;  %4412 = vpow2.f32 %v3732_v26  ;;  %v4407_v2 = vpop.eup %4406  ;;  %v6224_v27 = vadd.f32 1.0, %v4405_v60  ;;  %v6243_v10 = vadd.f32 %v2182_v1, %v5063_v37 }
 0x25c   : > { %v1883_v16 = vmul.f32 %v1766_v41, %v6059_v63  ;;  %4414 = vpow2.f32 %v3733_v52  ;;  %v6226_v6 = vadd.f32 1.0, %v4407_v2  ;;  %v2686_v63 = vand.u32 2147483648, %v6212_v48  ;;  %v1198_v2 = vpop.f32.mrf.mxu0 }
 0x25d   : > { %4416 = vpow2.f32 %v3622_v56  ;;  %v2699_v46 = vand.u32 2147483647, %v6224_v27  ;;  %v2701_v24 = vand.u32 2147483648, %v6224_v27  ;;  %v3623_v29 = vmul.f32 -1.442695, %v6229_v50 }
 0x25e   : > { %v1902_v4 = vpack.c.bf16 %v1883_v16, %v6220_v43  ;;  %4418 = vrcp.f32 %v6224_v27  ;;  %v4409_v58 = vpop.eup %4408  ;;  %vm6250_vm9 = vcmp.eq.f32.partialorder %v2684_v54, 8.507059e+37  ;;  %v1777_v20 = vand.u32 2147483647, %v6226_v6 }
 0x25f   : > { %4420 = vrcp.f32 %v6226_v6  ;;  %v6240_v57 = vadd.f32 1.0, %v4409_v58  ;;  %v1779_v11 = vand.u32 2147483648, %v6226_v6  ;;  %v2687_v3 = vor.u32 1.1754944e-38, %v2686_v63 }
 0x260   : > { %v4411_v14 = vpop.eup %4410  ;;  %v1950_v47 = vrot.slane %v1902_v4, 4  ;;  %v6260_v9 = vmul.f32 -1.442695, %v6237_v8  ;;  %vm2695_vm11 = vweird.f32 %v6224_v27  ;;  %vm1773_vm12 = vweird.f32 %v6226_v6 }
 0x261   : > { %v4413_v61 = vpop.eup %4412  ;;  %v2676_v39 = vmul.f32 %v4411_v14, %v6212_v48  ;;  %4422 = vrcp.f32 %v6240_v57  ;;  %vm2681_vm10 = vweird.f32 %v4411_v14  ;;  %vm6267_vm13 = vcmp.eq.f32.partialorder %v2699_v46, 8.507059e+37 }
 0x262   : > { %v4415_v7 = vpop.eup %4414  ;;  %3638 = vst [vmem:[%s5184_s30 + $0x70] sm:$0xf] %v1950_v47  ;;  %v6257_v0 = vadd.f32 1.0, %v4413_v61  ;;  %v2702_v49 = vor.u32 1.1754944e-38, %v2701_v24  ;;  %v1792_v32 = vand.u32 2147483647, %v6240_v57  ;;  %vm1788_vm15 = vweird.f32 %v6240_v57  ;;  %vm2682_vm0 = vmor %vm2680_vm8, %vm2681_vm10 }
 0x263   : > { %v4417_v34 = vpop.eup %4416  ;;  %v2677_v44 = vsub.f32 1.0, %v2676_v39  ;;  %v6264_v51 = vadd.f32 1.0, %v4415_v7  ;;  %vm6273_vm14 = vcmp.eq.f32.partialorder %v1777_v20, 8.507059e+37  ;;  %v1780_v38 = vor.u32 1.1754944e-38, %v1779_v11 }
 0x264   : > { %v4419_v15 = vpop.eup %4418  ;;  %v1794_v26 = vand.u32 2147483648, %v6240_v57  ;;  %4424 = vrcp.f32 %v6257_v0  ;;  %v6280_v52 = vadd.f32 1.0, %v4417_v34  ;;  %v6287_v35 = vmul.f32 -1.442695, %v6243_v10 }
 0x265   : > { %v4421_v45 = vpop.eup %4420  ;;  %v2678_v53 = vmul.f32 %v4411_v14, %v2677_v44  ;;  %v2691_v42 = vmul.f32 %v4419_v15, %v6224_v27  ;;  %4426 = vpow2.f32 %v3623_v29  ;;  %vm2696_vm1 = vweird.f32 %v4419_v15 }
 0x266   : > { %v1769_v28 = vmul.f32 %v4421_v45, %v6226_v6  ;;  %4428 = vrcp.f32 %v6264_v51  ;;  %vm1774_vm2 = vweird.f32 %v4421_v45  ;;  %vm6290_vm3 = vcmp.eq.f32.partialorder %v1792_v32, 8.507059e+37  ;;  %vm2697_vm5 = vmor %vm2695_vm11, %vm2696_vm1 }
 0x267   : > { %v2679_v12 = vadd.f32 %v4411_v14, %v2678_v53  ;;  %v2692_v13 = vsub.f32 1.0, %v2691_v42  ;;  %v4423_v5 = vpop.eup %4422  ;;  %v2714_v59 = vand.u32 2147483647, %v6257_v0  ;;  %v2716_v1 = vand.u32 2147483648, %v6257_v0  ;;  %vm1775_vm7 = vmor %vm1773_vm12, %vm1774_vm2 }
 0x268   : > { %v1770_v56 = vsub.f32 1.0, %v1769_v28  ;;  %v1784_v41 = vmul.f32 %v4423_v5, %v6240_v57  ;;  %v1795_v58 = vor.u32 1.1754944e-38, %v1794_v26  ;;  %vm2710_vm4 = vweird.f32 %v6257_v0 }
 0x269   : > { %v2683_v62 = vsel %vm2682_vm0, %v4411_v14, %v2679_v12  ;;  %v2693_v60 = vmul.f32 %v4419_v15, %v2692_v13  ;;  %vm1789_vm6 = vweird.f32 %v4423_v5  ;;  %v2729_v47 = vand.u32 2147483647, %v6264_v51 }
 0x26a   : > { %v2688_v48 = vsel %vm6250_vm9, %v2687_v3, %v2683_v62  ;;  %v1771_v16 = vmul.f32 %v4421_v45, %v1770_v56  ;;  %v1785_v54 = vsub.f32 1.0, %v1784_v41  ;;  %v4425_v63 = vpop.eup %4424  ;;  %4430 = vrcp.f32 %v6280_v52  ;;  %vm1790_vm10 = vmor %vm1788_vm15, %vm1789_vm6 }
 0x26b   : > { %v2694_v4 = vadd.f32 %v4419_v15, %v2693_v60  ;;  %v4427_v61 = vpop.eup %4426  ;;  %v6305_v39 = vmul.f32 %v2688_v48, %v6080_v22  ;;  %v2706_v29 = vmul.f32 %v4425_v63, %v6257_v0  ;;  %vm6313_vm8 = vcmp.eq.f32.partialorder %v2714_v59, 8.507059e+37  ;;  %v1247_v48 = vpop.f32.mrf.mxu1 }
 0x26c   : > { %v1772_v14 = vadd.f32 %v4421_v45, %v1771_v16  ;;  %v1786_v24 = vmul.f32 %v4423_v5, %v1785_v54  ;;  %v4429_v27 = vpop.eup %4428  ;;  %v2717_v11 = vor.u32 1.1754944e-38, %v2716_v1  ;;  %vm2725_vm9 = vweird.f32 %v6264_v51  ;;  %v2184_v54 = vpop.f32.mrf.mxu3 }
 0x26d   : > { %v2698_v46 = vsel %vm2697_vm5, %v4419_v15, %v2694_v4  ;;  %v2707_v44 = vsub.f32 1.0, %v2706_v29  ;;  %v2721_v15 = vmul.f32 %v4429_v27, %v6264_v51  ;;  %vm6326_vm11 = vcmp.eq.f32.partialorder %v2729_v47, 8.507059e+37  ;;  %v2135_v4 = vpop.f32.mrf.mxu2 }
 0x26e   : > { %v2703_v7 = vsel %vm6267_vm13, %v2702_v49, %v2698_v46  ;;  %v1776_v55 = vsel %vm1775_vm7, %v4421_v45, %v1772_v14  ;;  %v1787_v34 = vadd.f32 %v4423_v5, %v1786_v24  ;;  %vm2711_vm12 = vweird.f32 %v4425_v63 }
 0x26f   : > { %v2820_v22 = vmul.f32 %v2703_v7, %v6168_v18  ;;  %v1781_v6 = vsel %vm6273_vm14, %v1780_v38, %v1776_v55  ;;  %v2731_v18 = vand.u32 2147483648, %v6264_v51  ;;  %v2708_v33 = vmul.f32 %v4425_v63, %v2707_v44  ;;  %vm2712_vm13 = vmor %vm2710_vm4, %vm2711_vm12 }
 0x270   : > { %v1884_v3 = vmul.f32 %v1781_v6, %v6171_v17  ;;  %v1791_v42 = vsel %vm1790_vm10, %v4423_v5, %v1787_v34  ;;  %v6332_v17 = vpop.eup %4430  ;;  %v2722_v32 = vsub.f32 1.0, %v2721_v15  ;;  %v6337_v28 = vadd.f32 1.0, %v4427_v61 }
 0x271   : > { %v2839_v53 = vpack.c.bf16 %v2820_v22, %v6305_v39  ;;  %v1796_v49 = vsel %vm6290_vm3, %v1795_v58, %v1791_v42  ;;  %v2709_v26 = vadd.f32 %v4425_v63, %v2708_v33  ;;  %v1799_v12 = vmul.f32 %v6332_v17, %v6280_v52 }
 0x272   : > { %v3957_v57 = vpack.c.bf16 %v1884_v3, %v6220_v43  ;;  %v1885_v38 = vmul.f32 %v1796_v49, %v6196_v21  ;;  %v2723_v13 = vmul.f32 %v4429_v27, %v2722_v32  ;;  %vm2726_vm14 = vweird.f32 %v4429_v27 }
 0x273   : > { %v2887_v40 = vrot.slane %v2839_v53, 4  ;;  %v1807_v43 = vand.u32 2147483647, %v6280_v52  ;;  %4432 = vrcp.f32 %v6337_v28  ;;  %v2713_v56 = vsel %vm2712_vm13, %v4425_v63, %v2709_v26  ;;  %vm2727_vm0 = vmor %vm2725_vm9, %vm2726_vm14 }
 0x274   : > { %4023 = vst [vmem:[%s5184_s30 + $0x30] sm:$0xff] %v3957_v57   ;;  %v1903_v5 = vpack.c.bf16 %v1885_v38, %v1884_v3  ;;  %v1800_v62 = vsub.f32 1.0, %v1799_v12  ;;  %vm1803_vm15 = vweird.f32 %v6280_v52  ;;  %v2718_v21 = vsel %vm6313_vm8, %v2717_v11, %v2713_v56 }
 0x275   : > { %3750 = vst [vmem:[%s5219_s7 + $0x70] sm:$0xf] %v2887_v40  ;;  %v2724_v60 = vadd.f32 %v4429_v27, %v2723_v13  ;;  %v2732_v41 = vor.u32 1.1754944e-38, %v2731_v18  ;;  %v1809_v0 = vand.u32 2147483648, %v6280_v52  ;;  %v2821_v59 = vmul.f32 %v2718_v21, %v6200_v31 }
 0x276   : > { %v1951_v16 = vrot.slane %v1903_v5, 4  ;;  %v1801_v1 = vmul.f32 %v6332_v17, %v1800_v62  ;;  %4434 = vpow2.f32 %v6260_v9  ;;  %vm1804_vm1 = vweird.f32 %v6332_v17 }
 0x277   : > { %v2728_v58 = vsel %vm2727_vm0, %v4429_v27, %v2724_v60  ;;  %vm6359_vm2 = vcmp.eq.f32.partialorder %v1807_v43, 8.507059e+37  ;;  %4436 = vpow2.f32 %v6287_v35  ;;  %v3997_v31 = vpack.c.bf16 %v2821_v59, %v6305_v39  ;;  %vm6390_vm4 = vmor %vm1803_vm15, %vm1804_vm1 }
 0x278   : > { %3639 = vst [vmem:[%s5184_s30 + $0x74] sm:$0xf] %v1951_v16  ;;  %v2733_v51 = vsel %vm6326_vm11, %v2732_v41, %v2728_v58  ;;  %v1802_v9 = vadd.f32 %v6332_v17, %v1801_v1  ;;  %v6370_v14 = vadd.f32 %v1198_v2, %v5043_v19  ;;  %v6374_v46 = vadd.f32 %v1247_v48, %v5045_v23 }
 0x279   : > { %v4433_v47 = vpop.eup %4432  ;;  %v2822_v61 = vmul.f32 %v2733_v51, %v6203_v25  ;;  %v6377_v24 = vadd.f32 %v2135_v4, %v5061_v36  ;;  %v6380_v35 = vadd.f32 %v2184_v54, %v5063_v37  ;;  %4030 = vst [vmem:[%s5219_s7 + $0x30] sm:$0xff] %v3997_v31   ;;  %v1810_v39 = vor.u32 1.1754944e-38, %v1809_v0 }
 0x27a   : > { %v1814_v29 = vmul.f32 %v4433_v47, %v6337_v28  ;;  %vm1818_vm3 = vweird.f32 %v6337_v28  ;;  %v3624_v19 = vmul.f32 -1.442695, %v6370_v14  ;;  %v1822_v36 = vand.u32 2147483647, %v6337_v28 }
 0x27b   : > { %v2840_v27 = vpack.c.bf16 %v2822_v61, %v2821_v59  ;;  %v3625_v37 = vmul.f32 -1.442695, %v6374_v46  ;;  %v3736_v25 = vmul.f32 -1.442695, %v6377_v24  ;;  %v1806_v55 = vsel %vm6390_vm4, %v6332_v17, %v1802_v9 }
 0x27c   : > { %v4435_v7 = vpop.eup %4434  ;;  %v1815_v20 = vsub.f32 1.0, %v1814_v29  ;;  %v1824_v11 = vand.u32 2147483648, %v6337_v28  ;;  %4438 = vpow2.f32 %v3624_v19  ;;  %v3737_v34 = vmul.f32 -1.442695, %v6380_v35 }
 0x27d   : > { %v4437_v52 = vpop.eup %4436  ;;  %v2888_v22 = vrot.slane %v2840_v27, 4  ;;  %v2311_v6 = vadd.f32 1.0, %v4435_v7  ;;  %4440 = vpow2.f32 %v3625_v37  ;;  %vm1819_vm5 = vweird.f32 %v4433_v47 }
 0x27e   : > { %v1816_v44 = vmul.f32 %v4433_v47, %v1815_v20  ;;  %v2312_v3 = vadd.f32 1.0, %v4437_v52  ;;  %4442 = vpow2.f32 %v3736_v25  ;;  %v1811_v15 = vsel %vm6359_vm2, %v1810_v39, %v1806_v55  ;;  %vm1820_vm6 = vmor %vm1818_vm3, %vm1819_vm5 }
 0x27f   : > { %3751 = vst [vmem:[%s5219_s7 + $0x74] sm:$0xf] %v2888_v22  ;;  %4444 = vrcp.f32 %v2311_v6  ;;  %v1825_v18 = vor.u32 1.1754944e-38, %v1824_v11  ;;  %v6408_v42 = vmul.f32 %v1811_v15, %v6210_v30  ;;  %vm1823_vm7 = vcmp.eq.f32.partialorder %v1822_v36, 8.507059e+37 }
 0x280   : > { %v1817_v45 = vadd.f32 %v4433_v47, %v1816_v44  ;;  %4446 = vrcp.f32 %v2312_v3  ;;  %v2744_v28 = vand.u32 2147483647, %v2311_v6  ;;  %v2746_v43 = vand.u32 2147483648, %v2311_v6 }
 0x281   : > { %4448 = vpow2.f32 %v3737_v34  ;;  %v2759_v62 = vand.u32 2147483647, %v2312_v3  ;;  %vm2740_vm8 = vweird.f32 %v2311_v6  ;;  %vm2755_vm10 = vweird.f32 %v2312_v3 }
 0x282   : > { %v4439_v53 = vpop.eup %4438  ;;  %v1821_v33 = vsel %vm1820_vm6, %v4433_v47, %v1817_v45  ;;  %vm6418_vm9 = vcmp.eq.f32.partialorder %v2744_v28, 8.507059e+37  ;;  %v2747_v16 = vor.u32 1.1754944e-38, %v2746_v43 }
 0x283   : > { %v4441_v17 = vpop.eup %4440  ;;  %v1826_v57 = vsel %vm1823_vm7, %v1825_v18, %v1821_v33  ;;  %v6410_v49 = vadd.f32 1.0, %v4439_v53  ;;  %vm6427_vm13 = vcmp.eq.f32.partialorder %v2759_v62, 8.507059e+37 }
 0x284   : > { %v4443_v32 = vpop.eup %4442  ;;  %v1887_v40 = vmul.f32 %v1826_v57, %v6229_v50  ;;  %v6413_v38 = vadd.f32 1.0, %v4441_v17  ;;  %v2761_v50 = vand.u32 2147483648, %v2312_v3 }
 0x285   : > { %v4445_v26 = vpop.eup %4444  ;;  %4450 = vrcp.f32 %v6410_v49  ;;  %v6422_v2 = vadd.f32 1.0, %v4443_v32  ;;  %vm1833_vm14 = vweird.f32 %v6410_v49  ;;  %v1837_v47 = vand.u32 2147483647, %v6410_v49 }
 0x286   : > { %v4447_v12 = vpop.eup %4446  ;;  %v1904_v30 = vpack.c.bf16 %v1887_v40, %v6408_v42  ;;  %v2736_v13 = vmul.f32 %v4445_v26, %v2311_v6  ;;  %4452 = vrcp.f32 %v6413_v38  ;;  %vm2741_vm11 = vweird.f32 %v4445_v26 }
 0x287   : > { %v4449_v5 = vpop.eup %4448  ;;  %v2751_v56 = vmul.f32 %v4447_v12, %v2312_v3  ;;  %vm2756_vm12 = vweird.f32 %v4447_v12  ;;  %4454 = vrcp.f32 %v6422_v2  ;;  %v2762_v31 = vor.u32 1.1754944e-38, %v2761_v50  ;;  %vm2742_vm15 = vmor %vm2740_vm8, %vm2741_vm11 }
 0x288   : > { %v1952_v21 = vrot.slane %v1904_v30, 4  ;;  %v2737_v60 = vsub.f32 1.0, %v2736_v13  ;;  %v6425_v59 = vadd.f32 1.0, %v4449_v5  ;;  %v1839_v61 = vand.u32 2147483648, %v6410_v49  ;;  %vm2757_vm0 = vmor %vm2755_vm10, %vm2756_vm12 }
 0x289   : > { %v2752_v0 = vsub.f32 1.0, %v2751_v56  ;;  %v1852_v27 = vand.u32 2147483647, %v6413_v38  ;;  %v1854_v25 = vand.u32 2147483648, %v6413_v38  ;;  %vm6448_vm2 = vcmp.eq.f32.partialorder %v1837_v47, 8.507059e+37 }
 0x28a   : > { %3640 = vst [vmem:[%s5184_s30 + $0x78] sm:$0xf] %v1952_v21  ;;  %v2738_v48 = vmul.f32 %v4445_v26, %v2737_v60  ;;  %4456 = vrcp.f32 %v6425_v59  ;;  %v1840_v44 = vor.u32 1.1754944e-38, %v1839_v61  ;;  %vm1848_vm4 = vweird.f32 %v6413_v38 }
 0x28b   : > { %v4451_v1 = vpop.eup %4450  ;;  %v2753_v4 = vmul.f32 %v4447_v12, %v2752_v0  ;;  %vm1853_vm6 = vcmp.eq.f32.partialorder %v1852_v27, 8.507059e+37  ;;  %v2774_v33 = vand.u32 2147483647, %v6422_v2  ;;  %v2776_v17 = vand.u32 2147483648, %v6422_v2 }
 0x28c   : > { %v4453_v58 = vpop.eup %4452  ;;  %v2739_v63 = vadd.f32 %v4445_v26, %v2738_v48  ;;  %v1829_v51 = vmul.f32 %v4451_v1, %v6410_v49  ;;  %vm1834_vm1 = vweird.f32 %v4451_v1  ;;  %v2791_v56 = vand.u32 2147483648, %v6425_v59 }
 0x28d   : > { %v2754_v9 = vadd.f32 %v4447_v12, %v2753_v4  ;;  %v1844_v39 = vmul.f32 %v4453_v58, %v6413_v38  ;;  %v4455_v11 = vpop.eup %4454  ;;  %vm1849_vm3 = vweird.f32 %v4453_v58  ;;  %vm1835_vm5 = vmor %vm1833_vm14, %vm1834_vm1  ;;  %v2777_v5 = vor.u32 1.1754944e-38, %v2776_v17 }
 0x28e   : > { %v2743_v29 = vsel %vm2742_vm15, %v4445_v26, %v2739_v63  ;;  %v1830_v19 = vsub.f32 1.0, %v1829_v51  ;;  %vm1850_vm7 = vmor %vm1848_vm4, %vm1849_vm3  ;;  %vm2771_vm8 = vweird.f32 %v4455_v11  ;;  %v2789_v21 = vand.u32 2147483647, %v6425_v59 }
 0x28f   : > { %v2748_v23 = vsel %vm6418_vm9, %v2747_v16, %v2743_v29  ;;  %v2758_v36 = vsel %vm2757_vm0, %v4447_v12, %v2754_v9  ;;  %v1845_v37 = vsub.f32 1.0, %v1844_v39  ;;  %vm2770_vm9 = vweird.f32 %v6422_v2 }
 0x290   : > { %v2823_v7 = vmul.f32 %v2748_v23, %v6237_v8  ;;  %v2763_v55 = vsel %vm6427_vm13, %v2762_v31, %v2758_v36  ;;  %v1831_v20 = vmul.f32 %v4451_v1, %v1830_v19  ;;  %v2766_v8 = vmul.f32 %v4455_v11, %v6422_v2  ;;  %v4457_v45 = vpop.eup %4456  ;;  %vm2772_vm10 = vmor %vm2770_vm9, %vm2771_vm8 }
 0x291   : > { %v2824_v52 = vmul.f32 %v2763_v55, %v6243_v10  ;;  %v1846_v6 = vmul.f32 %v4453_v58, %v1845_v37  ;;  %v1855_v10 = vor.u32 1.1754944e-38, %v1854_v25  ;;  %v2781_v49 = vmul.f32 %v4457_v45, %v6425_v59 }
 0x292   : > { %v1832_v34 = vadd.f32 %v4451_v1, %v1831_v20  ;;  %v2767_v53 = vsub.f32 1.0, %v2766_v8  ;;  %vm2786_vm11 = vweird.f32 %v4457_v45  ;;  %vm2775_vm12 = vcmp.eq.f32.partialorder %v2774_v33, 8.507059e+37 }
 0x293   : > { %v2841_v3 = vpack.c.bf16 %v2824_v52, %v2823_v7  ;;  %v1847_v15 = vadd.f32 %v4453_v58, %v1846_v6  ;;  %v2782_v30 = vsub.f32 1.0, %v2781_v49  ;;  %vm2785_vm13 = vweird.f32 %v6425_v59 }
 0x294   : > { %v1836_v18 = vsel %vm1835_vm5, %v4451_v1, %v1832_v34  ;;  %v2768_v28 = vmul.f32 %v4455_v11, %v2767_v53  ;;  %vm2787_vm14 = vmor %vm2785_vm13, %vm2786_vm11  ;;  %v2792_v0 = vor.u32 1.1754944e-38, %v2791_v56  ;;  %vm2790_vm15 = vcmp.eq.f32.partialorder %v2789_v21, 8.507059e+37 }
 0x295   : > { %v2889_v57 = vrot.slane %v2841_v3, 4  ;;  %v1841_v32 = vsel %vm6448_vm2, %v1840_v44, %v1836_v18  ;;  %v1851_v40 = vsel %vm1850_vm7, %v4453_v58, %v1847_v15 }
 0x296   : > { %v1888_v38 = vmul.f32 %v1841_v32, %v6370_v14  ;;  %v1856_v26 = vsel %vm1853_vm6, %v1855_v10, %v1851_v40  ;;  %v2769_v43 = vadd.f32 %v4455_v11, %v2768_v28  ;;  %v2783_v14 = vmul.f32 %v4457_v45, %v2782_v30 }
 0x297   : > { %3752 = vst [vmem:[%s5219_s7 + $0x78] sm:$0xf] %v2889_v57  ;;  %v1889_v12 = vmul.f32 %v1856_v26, %v6374_v46 }
 0x298   : > { %v3962_v13 = vpack.c.bf16 %v1888_v38, %v6408_v42  ;;  %v2773_v60 = vsel %vm2772_vm10, %v4455_v11, %v2769_v43  ;;  %v2784_v42 = vadd.f32 %v4457_v45, %v2783_v14 }
 0x299   : > { %v1905_v62 = vpack.c.bf16 %v1889_v12, %v1888_v38  ;;  %v2778_v50 = vsel %vm2775_vm12, %v2777_v5, %v2773_v60 }
 0x29a   : > { %4024 = vst [vmem:[%s5184_s30 + $0x38] sm:$0xff] %v3962_v13   ;;  %v2825_v41 = vmul.f32 %v2778_v50, %v6377_v24  ;;  %v2788_v2 = vsel %vm2787_vm14, %v4457_v45, %v2784_v42 }
 0x29b   : > { %v1953_v46 = vrot.slane %v1905_v62, 4  ;;  %v2793_v16 = vsel %vm2790_vm15, %v2792_v0, %v2788_v2 }
 0x29c   : > { %v4002_v48 = vpack.c.bf16 %v2825_v41, %v2823_v7  ;;  %v2826_v1 = vmul.f32 %v2793_v16, %v6380_v35 }
 0x29d   : > { %3641 = vst [vmem:[%s5184_s30 + $0x7c] sm:$0xf] %v1953_v46 }
 0x29e   : > { %4031 = vst [vmem:[%s5219_s7 + $0x38] sm:$0xff] %v4002_v48   ;;  %v2842_v4 = vpack.c.bf16 %v2826_v1, %v2825_v41 }
 0x2a0   : > { %v2890_v54 = vrot.slane %v2842_v4, 4 }
 0x2a2   : > { %3753 = vst [vmem:[%s5219_s7 + $0x7c] sm:$0xf] %v2890_v54 }
 0x2a3   : > { %s3758_s17 = sshll.u32 %s4614_s24, 4  ;;  %s3759_s18 = sshll.u32 %s4618_s25, 6 }
 0x2a4   : > { %s2951_s9 = sadd.s32 %s3759_s18, %s3758_s17  ;;  %s2964_s11 = sshll.u32 %s4910_s4, 4  ;;  %s2965_s11 = int_to_ptr.vmem [resolvable:$true] %s2964_s11 }
 0x2a5   : > { %s6484_s19 = sshll.u32 %s2951_s9, 2  ;;  %s6736_s2 = sld [smem:[#allocation32_spill]] }
 0x2a6   : > { %s4638_s3 = smov 1024   ;;  %s4639_s24 = smov 2048  }
 0x2a7   : > { %4042 = sst [smem:[#allocation15]] (%p4794_p5), %s4638_s3  ;;  %s4640_s25 = smov 16  }
 0x2a8   : > { %4043 = sst [smem:[#allocation15 + $0x1]] (%p4794_p5), %s4639_s24  ;;  %s4641_s4 = smov 64  }
 0x2a9   : > { %4044 = sst [smem:[#allocation15 + $0x2]] (%p4794_p5), %s4640_s25  ;;  %s4642_s12 = smov 4  }
 0x2aa   : > { %4045 = sst [smem:[#allocation15 + $0x3]] (%p4794_p5), %s4641_s4  ;;  %s4643_s17 = smov [#allocation14]  }
 0x2ab   : > { %s2953_s5 = scalar_lea.hbm %s6736_s2, %s6484_s19  ;;  %4046 = sst [smem:[#allocation15 + $0x4]] (%p4794_p5), %s4641_s4 }
 0x2ac   : > { %s2966_s6 = sshll.u32 %s2953_s5, 4  ;;  %4047 = sst [smem:[#allocation15 + $0x5]] (%p4794_p5), %s4642_s12  ;;  %s2967_s6 = int_to_ptr.hbm [resolvable:$true] %s2966_s6 }
 0x2ad   : > { %s4644_s18 = smov 0  }
 0x2ae   : > { %4048 = dma.general (%p4794_p5), %s2965_s11, 2048, %s2967_s6, %s2925_s10, %s4643_s17, [#allocation15], %s4644_s18, 0  }
 0x2af   : > { %s6737_s20 = sld [smem:[#allocation33_spill]]  ;;  %s3006_s5 = sshll.u32 %s4915_s21, 4  ;;  %s3007_s5 = int_to_ptr.vmem [resolvable:$true] %s3006_s5 }
 0x2b0   : > { %s4645_s24 = smov 1024   ;;  %s4646_s10 = smov 2048  }
 0x2b1   : > { %4049 = sst [smem:[#allocation17]] (%p4794_p5), %s4645_s24  ;;  %s4647_s11 = smov 16  }
 0x2b2   : > { %4050 = sst [smem:[#allocation17 + $0x1]] (%p4794_p5), %s4646_s10  ;;  %s4648_s6 = smov 64  }
 0x2b3   : > { %4051 = sst [smem:[#allocation17 + $0x2]] (%p4794_p5), %s4647_s11  ;;  %s4649_s21 = smov 4  }
 0x2b4   : > { %4052 = sst [smem:[#allocation17 + $0x3]] (%p4794_p5), %s4648_s6  ;;  %s4650_s25 = smov [#allocation16]  }
 0x2b5   : > { %s2995_s2 = scalar_lea.hbm %s6737_s20, %s6484_s19  ;;  %4053 = sst [smem:[#allocation17 + $0x4]] (%p4794_p5), %s4648_s6 }
 0x2b6   : > { %s3008_s3 = sshll.u32 %s2995_s2, 4  ;;  %4054 = sst [smem:[#allocation17 + $0x5]] (%p4794_p5), %s4649_s21  ;;  %s3009_s3 = int_to_ptr.hbm [resolvable:$true] %s3008_s3 }
 0x2b7   : > { %s4651_s4 = smov 0  }
 0x2b8   : > { %4055 = dma.general (%p4794_p5), %s3007_s5, 2048, %s3009_s3, %s6478_s15, %s4650_s25, [#allocation17], %s4651_s4, 0  }
 0x2b9   : > { %s6738_s18 = sld [smem:[#allocation34_spill]]  ;;  %s3048_s29 = sshll.u32 %s5184_s30, 4  ;;  %s3049_s29 = int_to_ptr.vmem [resolvable:$true] %s3048_s29 }
 0x2ba   : > { %s4652_s2 = smov 1024   ;;  %s4653_s5 = smov 2048  }
 0x2bb   : > { %4056 = sst [smem:[#allocation19]] (%p4794_p5), %s4652_s2  ;;  %s4654_s3 = smov 16  }
 0x2bc   : > { %4057 = sst [smem:[#allocation19 + $0x1]] (%p4794_p5), %s4653_s5  ;;  %s4655_s24 = smov 64  }
 0x2bd   : > { %4058 = sst [smem:[#allocation19 + $0x2]] (%p4794_p5), %s4654_s3  ;;  %s4656_s30 = smov 4  }
 0x2be   : > { %4059 = sst [smem:[#allocation19 + $0x3]] (%p4794_p5), %s4655_s24  ;;  %s4657_s10 = smov [#allocation18]  }
 0x2bf   : > { %s3037_s9 = scalar_lea.hbm %s6738_s18, %s6484_s19  ;;  %4060 = sst [smem:[#allocation19 + $0x4]] (%p4794_p5), %s4655_s24 }
 0x2c0   : > { %s3050_s20 = sshll.u32 %s3037_s9, 4  ;;  %4061 = sst [smem:[#allocation19 + $0x5]] (%p4794_p5), %s4656_s30  ;;  %s3051_s20 = int_to_ptr.hbm [resolvable:$true] %s3050_s20 }
 0x2c1   : > { %s4658_s11 = smov 0  }
 0x2c2   : > { %4062 = dma.general (%p4794_p5), %s3049_s29, 2048, %s3051_s20, %s6478_s15, %s4657_s10, [#allocation19], %s4658_s11, 0  }
 0x2c3   : > { %s6739_s25 = sld [smem:[#allocation35_spill]]  ;;  %s3090_s12 = sshll.u32 %s5219_s7, 4  ;;  %s3091_s12 = int_to_ptr.vmem [resolvable:$true] %s3090_s12 }
 0x2c4   : > { %s4659_s18 = smov 1024   ;;  %s4660_s15 = smov 2048  }
 0x2c5   : > { %4063 = sst [smem:[#allocation21]] (%p4794_p5), %s4659_s18  ;;  %s4661_s9 = smov 16  }
 0x2c6   : > { %4064 = sst [smem:[#allocation21 + $0x1]] (%p4794_p5), %s4660_s15  ;;  %s4662_s29 = smov 64  }
 0x2c7   : > { %4065 = sst [smem:[#allocation21 + $0x2]] (%p4794_p5), %s4661_s9  ;;  %s4663_s7 = smov 4  }
 0x2c8   : > { %4066 = sst [smem:[#allocation21 + $0x3]] (%p4794_p5), %s4662_s29  ;;  %s4665_s20 = smov 0  }
 0x2c9   : > { %s3079_s4 = scalar_lea.hbm %s6739_s25, %s6484_s19  ;;  %4067 = sst [smem:[#allocation21 + $0x4]] (%p4794_p5), %s4662_s29 }
 0x2ca   : > { %s3092_s17 = sshll.u32 %s3079_s4, 4  ;;  %4068 = sst [smem:[#allocation21 + $0x5]] (%p4794_p5), %s4663_s7  ;;  %s3093_s17 = int_to_ptr.hbm [resolvable:$true] %s3092_s17 }
 0x2cb   : > { %s4664_s19 = smov [#allocation20]  }
 0x2cc   : > { %4069 = dma.general (%p4794_p5), %s3091_s12, 2048, %s3093_s17, %s2940_s14, %s4664_s19, [#allocation21], %s4665_s20, 0  }
 0x2cd PF: > { %s6740_s2 = sld [smem:[#allocation27_spill]]  ;;  %p4103_p1 = scmp.ge.s32.totalorder %s4630_s28, 2 }
 0x2cf   : > { %p4086_p4 = pnand %p4103_p1, %p4758_p6 }
 0x2d1   : > { %p4087_p8 = pneg %p4086_p4 }
 0x2d3   : > { %s3120_s3 = sand.u32 1, %s6740_s2  }
 0x2d4   : > { %s3121_s24 = scalar_lea.sflag [#allocation4], %s3120_s3 }
 0x2d5   : > { %4589 = dma.done.wait (%p4087_p8), %s3121_s24, 2048  }
 0x2d6   : > { %4591 = vsyncadd (%p4087_p8), %s3121_s24, 4294965248  ;;  %s6742_s30 = sadd.s32 4294967294, %s4630_s28  }
 0x2d7   : > { %s3130_s10 = sand.u32 1, %s6742_s30  }
 0x2d8   : > { %s3131_s11 = scalar_lea.sflag [#allocation10], %s3130_s10 }
 0x2d9   : > { %4593 = dma.done.wait (%p4087_p8), %s3131_s11, 4096  }
 0x2da   : > { %4595 = vsyncadd (%p4087_p8), %s3131_s11, 4294963200  ;;  %s3151_s16 = scalar_lea.sflag [#allocation13], %s3120_s3 }
 0x2db   : > { %4597 = dma.done.wait (%p4087_p8), %s3151_s16, 2048  }
 0x2dc   : > { %4599 = vsyncadd (%p4087_p8), %s3151_s16, 4294965248  ;;  %s30_s28 = sadd.s32 1, %s4630_s28   ;;  %s6743_s1 = sld [smem:[#allocation29_spill]] }
 0x2dd   : > { %p27_p10 = scmp.ge.s32.totalorder %s30_s28, 6   ;;  %s6744_s21 = smov %s4606_s22 }
 0x2de   : > { %s6745_s22 = smov %s4610_s23  ;;  %s6746_s23 = smov %s4807_s8 }
 0x2df   : > { %s6747_s24 = smov %s4622_s26  ;;  %s6748_s25 = smov %s4626_s27 }
 0x2e0   : > { %s6750_s27 = smov %s6756_s13  ;;  %29 = sbr.rel (!%p27_p10) target bundleno = 19 (0x13), region = 158 }
 0x2e2   : > { %s6749_s26 = smov %s6743_s1 }
 0x2e5   :  { %3157 = vsyncpa [#allocation3], 1 }
 0x2e6   :  { %3159 = vsyncpa [#allocation3 + $0x1], 1 }
 0x2e7   :  { %3160 = vsyncpa [#allocation6], 1 }
 0x2e8   :  { %3161 = vsyncpa [#allocation4], 1 }
 0x2e9   :  { %3163 = vsyncpa [#allocation4 + $0x1], 1 }
 0x2ea   :  { %3164 = vsyncpa [#allocation10], 1 }
 0x2eb   :  { %3166 = vsyncpa [#allocation10 + $0x1], 1 }
 0x2ec   :  { %3167 = vsyncpa [#allocation13], 1 }
 0x2ed   :  { %3169 = vsyncpa [#allocation13 + $0x1], 1 }

</bundles_post_ra>
